<compile_context>
chip_gen: v7x
topology: tpu7x:2x2x1
jax: 0.10.0
libtpu: 0.0.40
codegen_flags: <defaults>
</compile_context>

<pallas_src>
import functools

import jax
import jax.numpy as jnp
from jax.experimental import pallas as pl
from jax.experimental.pallas import tpu as pltpu

# Keep wrapper-side / reference f32 matmuls at full precision so the hidden
# state can be checked tightly against the in-kernel f32 MXU path.
jax.config.update("jax_default_matmul_precision", "highest")

LANE = 128
SUBLANE = 8


def _round_up(x, m):
    return (x + m - 1) // m * m


# ---------------------------------------------------------------------------
# Kernel 1: recurrent part (GRU cell -> dot attention -> concat layer),
# Tc decode steps per grid iteration, hidden carried in VMEM scratch.
# ---------------------------------------------------------------------------
def gru_attn_kernel(gi_ref,                         # (Tc, Bp, 3Hp)  streamed per chunk
                    h0_ref, enc_ref,                # (Bp, Hp), (Bp, S, Hp)
                    whh_ref, bhh_ref, wc_ref, bc_ref,
                    cat_ref, hid_ref,               # (Tc, Bp, Hp) output slabs
                    h_scr):                         # (Bp, Hp) carried hidden
    c = pl.program_id(0)

    @pl.when(c == 0)
    def _init():
        h_scr[...] = h0_ref[...]

    Bp, Hp = h_scr.shape
    Tc = gi_ref.shape[0]

    enc = enc_ref[...]                              # VMEM-resident, hoisted out of loop
    whh = whh_ref[...]
    bhh = bhh_ref[...]
    wc = wc_ref[...]
    bc = bc_ref[...]

    def step(s, carry):
        h = h_scr[...]                              # (Bp, Hp)
        gi = gi_ref[s]                              # (Bp, 3Hp) precomputed input proj

        # GRU cell (PyTorch gate order r, z, n; gates 128-lane aligned).
        gh = jnp.dot(h, whh, preferred_element_type=jnp.float32) + bhh
        r = jax.nn.sigmoid(gi[:, 0:Hp] + gh[:, 0:Hp])
        z = jax.nn.sigmoid(gi[:, Hp:2 * Hp] + gh[:, Hp:2 * Hp])
        n = jnp.tanh(gi[:, 2 * Hp:3 * Hp] + r * gh[:, 2 * Hp:3 * Hp])
        h_new = (1.0 - z) * n + z * h               # (Bp, Hp)

        # Dot attention over the source sequence on the VPU/XLU (avoids Bp
        # separate M=1 MXU matmuls on the serial path).
        scores = jnp.sum(h_new[:, None, :] * enc, axis=-1)           # (Bp, S)
        scores = scores - jnp.max(scores, axis=-1, keepdims=True)
        p = jnp.exp(scores)
        attn = p * pl.reciprocal(jnp.sum(p, axis=-1, keepdims=True), approx=True)
        context = jnp.sum(attn[:, :, None] * enc, axis=1)            # (Bp, Hp)

        # concat -> Linear(2H, H) -> tanh as ONE K=2*Hp matmul.
        cat = jnp.concatenate([h_new, context], axis=1)              # (Bp, 2Hp)
        co = jnp.tanh(jnp.dot(cat, wc, preferred_element_type=jnp.float32) + bc)

        cat_ref[s] = co
        hid_ref[s] = h_new
        h_scr[...] = h_new
        return carry

    jax.lax.fori_loop(0, Tc, step, 0, unroll=True)


# ---------------------------------------------------------------------------
# Kernel 2: deferred vocab projection + softmax, batched over all T*Bp rows.
# Vocab padding mask is folded into b_out (-1e30 on padded columns).
# ---------------------------------------------------------------------------
def vocab_softmax_kernel(x_ref, wo_ref, bo_ref, out_ref):
    x = x_ref[...].astype(jnp.bfloat16)             # bf16 MXU path, f32 accumulate
    logits = jnp.dot(x, wo_ref[...], preferred_element_type=jnp.float32) + bo_ref[...]
    logits = logits - jnp.max(logits, axis=1, keepdims=True)
    p = jnp.exp(logits)
    out_ref[...] = p * pl.reciprocal(jnp.sum(p, axis=1, keepdims=True), approx=True)


# ---------------------------------------------------------------------------
# Parameter creation / one-time preparation (pad + pre-transpose).
# ---------------------------------------------------------------------------
def init_params(key, vocab_size, hidden_size):
    ks = jax.random.split(key, 8)
    H, V = hidden_size, vocab_size
    s = 0.1
    return {
        "embedding": jax.random.normal(ks[0], (V, H), jnp.float32) * s,     # nn.Embedding(V, H)
        "w_ih": jax.random.normal(ks[1], (3 * H, H), jnp.float32) * s,      # GRU weight_ih_l0
        "w_hh": jax.random.normal(ks[2], (3 * H, H), jnp.float32) * s,      # GRU weight_hh_l0
        "b_ih": jax.random.normal(ks[3], (3 * H,), jnp.float32) * s,
        "b_hh": jax.random.normal(ks[4], (3 * H,), jnp.float32) * s,
        "w_concat": jax.random.normal(ks[5], (H, 2 * H), jnp.float32) * s,  # nn.Linear(2H, H)
        "b_concat": jnp.zeros((H,), jnp.float32),
        "w_out": jax.random.normal(ks[6], (V, H), jnp.float32) * s,         # nn.Linear(H, V)
        "b_out": jnp.zeros((V,), jnp.float32),
    }


def _pad2(a, rows, cols, dtype=jnp.float32):
    out = jnp.zeros((rows, cols), jnp.float32)
    out = out.at[:a.shape[0], :a.shape[1]].set(a.astype(jnp.float32))
    return out.astype(dtype)


def prepare_params(params):
    V, H = params["embedding"].shape
    Hp = _round_up(H, LANE)
    Vp = _round_up(V, LANE)

    def pad_gates_t(w):    # (3H, H), gates [r; z; n] -> (Hp, 3Hp), per-gate 128-aligned
        return jnp.concatenate(
            [_pad2(w[g * H:(g + 1) * H, :].T, Hp, Hp) for g in range(3)], axis=1)

    def pad_gate_bias(b):  # (3H,) -> (1, 3Hp)
        gs = [jnp.zeros((Hp,), jnp.float32).at[:H].set(b[g * H:(g + 1) * H]) for g in range(3)]
        return jnp.concatenate(gs)[None, :]

    wc = params["w_concat"]
    # Vocab padding mask folded into the output bias (large finite negative,
    # not -inf, to avoid -inf - (-inf) edge cases).
    b_out = jnp.full((1, Vp), -1e30, jnp.float32).at[0, :V].set(params["b_out"])

    return {
        "H": H, "V": V, "Hp": Hp, "Vp": Vp,
        "emb": _pad2(params["embedding"], Vp, Hp),                 # gathered in wrapper (XLA)
        "w_ih_t": pad_gates_t(params["w_ih"]),                     # hoisted input projection
        "b_ih": pad_gate_bias(params["b_ih"]),
        "w_hh_t": pad_gates_t(params["w_hh"]),
        "b_hh": pad_gate_bias(params["b_hh"]),
        "wc_t": jnp.concatenate([_pad2(wc[:, :H].T, Hp, Hp),       # (2Hp, Hp) stacked
                                 _pad2(wc[:, H:].T, Hp, Hp)], axis=0),
        "b_c": jnp.zeros((1, Hp), jnp.float32).at[0, :H].set(params["b_concat"]),
        "w_out_t": _pad2(params["w_out"].T, Hp, Vp, jnp.bfloat16), # bf16 weights for kernel 2
        "b_out": b_out,
    }


# ---------------------------------------------------------------------------
# Multi-step (teacher-forced) decode.
# ---------------------------------------------------------------------------
def luong_attn_decoder_decode(prepped, tokens, last_hidden, encoder_outputs,
                              steps_per_block=4):
    """
    tokens:          (T, B) int32 token ids
    last_hidden:     (1, B, H) float32   (n_layers = 1)
    encoder_outputs: (S, B, H) float32
    returns: (outputs (T, B, V) softmax, hiddens (T, B, H))
    """
    T, B = tokens.shape
    S = encoder_outputs.shape[0]
    H, V, Hp, Vp = prepped["H"], prepped["V"], prepped["Hp"], prepped["Vp"]
    Bp = _round_up(B, SUBLANE)
    Tc = max(1, min(steps_per_block, T))
    Tp = _round_up(T, Tc)
    n_chunks = Tp // Tc

    # --- Hoisted out of the recurrence: embedding gather + GRU input
    # projection for ALL steps as one big matmul (M = Tp*Bp fills the MXU).
    # TODO(synk): embedding_dropout skipped (eval-mode identity).
    x = prepped["emb"][tokens]                                        # (T, B, Hp) XLA gather
    x_p = jnp.zeros((Tp, Bp, Hp), jnp.float32).at[:T, :B].set(x)
    gi = (x_p.reshape(Tp * Bp, Hp) @ prepped["w_ih_t"]
          + prepped["b_ih"]).reshape(Tp, Bp, 3 * Hp)

    h0_p = jnp.zeros((Bp, Hp), jnp.float32).at[:B, :H].set(last_hidden[0].astype(jnp.float32))
    enc_bsh = jnp.transpose(encoder_outputs, (1, 0, 2)).astype(jnp.float32)
    enc_p = jnp.zeros((Bp, S, Hp), jnp.float32).at[:B, :, :H].set(enc_bsh)

    const2 = lambda c: (0, 0)
    const3 = lambda c: (0, 0, 0)

    cat_p, hid_p = pl.pallas_call(
        gru_attn_kernel,
        out_shape=(jax.ShapeDtypeStruct((Tp, Bp, Hp), jnp.float32),
                   jax.ShapeDtypeStruct((Tp, Bp, Hp), jnp.float32)),
        grid_spec=pltpu.PrefetchScalarGridSpec(
            num_scalar_prefetch=0,
            grid=(n_chunks,),
            in_specs=[
                pl.BlockSpec((Tc, Bp, 3 * Hp), lambda c: (c, 0, 0)),  # GI slab (pipelined)
                pl.BlockSpec((Bp, Hp), const2),                       # h0
                pl.BlockSpec((Bp, S, Hp), const3),                    # encoder outputs
                pl.BlockSpec((Hp, 3 * Hp), const2),                   # W_hh^T (gate-padded)
                pl.BlockSpec((1, 3 * Hp), const2),                    # b_hh
                pl.BlockSpec((2 * Hp, Hp), const2),                   # W_concat^T stacked
                pl.BlockSpec((1, Hp), const2),                        # b_concat
            ],
            out_specs=[
                pl.BlockSpec((Tc, Bp, Hp), lambda c: (c, 0, 0)),      # concat_out slab
                pl.BlockSpec((Tc, Bp, Hp), lambda c: (c, 0, 0)),      # hidden slab
            ],
            scratch_shapes=[pltpu.VMEM((Bp, Hp), jnp.float32)],       # carried hidden
        ),
        compiler_params=pltpu.CompilerParams(
            dimension_semantics=("arbitrary",)),      # hidden carried -> sequential
    )(gi, h0_p, enc_p, prepped["w_hh_t"], prepped["b_hh"],
      prepped["wc_t"], prepped["b_c"])

    # --- Deferred vocab projection + softmax, batched over all Tp*Bp rows.
    Mp = Tp * Bp
    tm = LANE if Mp >= LANE else Mp
    Mpad = _round_up(Mp, tm)
    cat_flat = cat_p.reshape(Mp, Hp)
    if Mpad != Mp:
        cat_flat = jnp.zeros((Mpad, Hp), jnp.float32).at[:Mp].set(cat_flat)

    out_flat = pl.pallas_call(
        vocab_softmax_kernel,
        out_shape=jax.ShapeDtypeStruct((Mpad, Vp), jnp.float32),
        grid_spec=pltpu.PrefetchScalarGridSpec(
            num_scalar_prefetch=0,
            grid=(Mpad // tm,),
            in_specs=[
                pl.BlockSpec((tm, Hp), lambda i: (i, 0)),             # concat_out rows
                pl.BlockSpec((Hp, Vp), lambda i: (0, 0)),             # W_out^T (bf16)
                pl.BlockSpec((1, Vp), lambda i: (0, 0)),              # b_out (+ mask)
            ],
            out_specs=pl.BlockSpec((tm, Vp), lambda i: (i, 0)),
        ),
        compiler_params=pltpu.CompilerParams(
            dimension_semantics=("parallel",)),
    )(cat_flat, prepped["w_out_t"], prepped["b_out"])

    out_p = out_flat[:Mp].reshape(Tp, Bp, Vp)
    return out_p[:T, :B, :V], hid_p[:T, :B, :H]


def luong_attn_decoder_forward(prepped, input_step, last_hidden, encoder_outputs):
    """Single decoder step, matching LuongAttnDecoderRNN.forward.
    input_step (1,B) int32 -> (output (B,V) softmax, hidden (1,B,H))."""
    out_seq, hid_seq = luong_attn_decoder_decode(
        prepped, input_step, last_hidden, encoder_outputs, steps_per_block=1)
    return out_seq[0], hid_seq[-1][None]


# ---------------------------------------------------------------------------
# Pure-JAX reference mirroring the PyTorch forward (eval mode).
# ---------------------------------------------------------------------------
def reference_step(params, tokens, h, encoder_outputs):
    H = h.shape[-1]
    embedded = params["embedding"][tokens]                              # (B, H)
    gi = embedded @ params["w_ih"].T + params["b_ih"]
    gh = h @ params["w_hh"].T + params["b_hh"]
    r = jax.nn.sigmoid(gi[:, :H] + gh[:, :H])
    z = jax.nn.sigmoid(gi[:, H:2 * H] + gh[:, H:2 * H])
    n = jnp.tanh(gi[:, 2 * H:] + r * gh[:, 2 * H:])
    h_new = (1.0 - z) * n + z * h                                       # (B, H)
    scores = jnp.sum(h_new[None, :, :] * encoder_outputs, axis=2)       # (S, B)
    attn = jax.nn.softmax(scores.T, axis=1)                             # (B, S)
    context = jnp.einsum("bs,sbh->bh", attn, encoder_outputs)           # (B, H)
    concat_in = jnp.concatenate([h_new, context], axis=1)
    concat_out = jnp.tanh(concat_in @ params["w_concat"].T + params["b_concat"])
    output = jax.nn.softmax(concat_out @ params["w_out"].T + params["b_out"], axis=1)
    return output, h_new


def reference_decode(params, tokens_TB, last_hidden, encoder_outputs):
    h = last_hidden[0]
    outs, hids = [], []
    for t in range(tokens_TB.shape[0]):
        o, h = reference_step(params, tokens_TB[t], h, encoder_outputs)
        outs.append(o)
        hids.append(h)
    return jnp.stack(outs), jnp.stack(hids)


if __name__ == "__main__":
    key = jax.random.PRNGKey(0)
    vocab_size = 64      # voc.num_words (synthetic); padded to 128 lanes
    hidden_size = 32     # padded to 128 lanes
    batch = 4            # padded to 8 sublanes
    src_len = 8
    dec_steps = 5        # not a multiple of the chunk size -> exercises T padding

    k_par, k_tok, k_hid, k_enc = jax.random.split(key, 4)
    params = init_params(k_par, vocab_size, hidden_size)
    prepped = prepare_params(params)     # one-time padded / pre-transposed weights

    tokens = jax.random.randint(k_tok, (dec_steps, batch), 0, vocab_size, dtype=jnp.int32)
    last_hidden = jax.random.normal(k_hid, (1, batch, hidden_size), jnp.float32)
    encoder_outputs = jax.random.normal(k_enc, (src_len, batch, hidden_size), jnp.float32)

    # Multi-step decode (chunked recurrence kernel + batched vocab-softmax kernel).
    out_seq, hid_seq = luong_attn_decoder_decode(
        prepped, tokens, last_hidden, encoder_outputs, steps_per_block=2)
    out_seq = jax.block_until_ready(out_seq)
    hid_seq = jax.block_until_ready(hid_seq)

    ref_out_seq, ref_hid_seq = reference_decode(params, tokens, last_hidden, encoder_outputs)
    assert out_seq.shape == (dec_steps, batch, vocab_size)
    assert hid_seq.shape == (dec_steps, batch, hidden_size)
    # Hidden path is pure f32 (no bf16 / approx-reciprocal) -> tight tolerance.
    assert jnp.allclose(hid_seq, ref_hid_seq, atol=1e-3, rtol=1e-3)
    # Output path uses bf16 vocab weights + approx reciprocals -> looser tolerance.
    assert jnp.allclose(out_seq, ref_out_seq, atol=5e-3, rtol=5e-2)
    assert jnp.allclose(jnp.sum(out_seq, axis=-1), 1.0, atol=5e-3)

    # Single module-equivalent step: forward(input_step, last_hidden, encoder_outputs).
    out1, hid1 = luong_attn_decoder_forward(prepped, tokens[:1], last_hidden, encoder_outputs)
    out1 = jax.block_until_ready(out1)
    hid1 = jax.block_until_ready(hid1)
    ref_out1, ref_h1 = reference_step(params, tokens[0], last_hidden[0], encoder_outputs)
    assert out1.shape == (batch, vocab_size)
    assert hid1.shape == (1, batch, hidden_size)
    assert jnp.allclose(out1, ref_out1, atol=5e-3, rtol=5e-2)
    assert jnp.allclose(hid1[0], ref_h1, atol=1e-3, rtol=1e-3)

    print("KERNEL_OK")
</pallas_src>

<mosaic_0001>
module attributes {stable_mosaic.version = 11 : i64} {
  func.func @gru_attn_kernel(%arg0: i32, %arg1: memref<2x8x384xf32, #tpu.memory_space<vmem>>, %arg2: memref<8x128xf32, #tpu.memory_space<vmem>>, %arg3: memref<8x8x128xf32, #tpu.memory_space<vmem>>, %arg4: memref<128x384xf32, #tpu.memory_space<vmem>>, %arg5: memref<1x384xf32, #tpu.memory_space<vmem>>, %arg6: memref<256x128xf32, #tpu.memory_space<vmem>>, %arg7: memref<1x128xf32, #tpu.memory_space<vmem>>, %arg8: memref<2x8x128xf32, #tpu.memory_space<vmem>>, %arg9: memref<2x8x128xf32, #tpu.memory_space<vmem>>, %arg10: memref<8x128xf32, #tpu.memory_space<vmem>>) attributes {dimension_semantics = [#tpu.dimension_semantics<arbitrary>], iteration_bounds = array<i64: 3>, scalar_prefetch = 0 : i64, scratch_operands = 1 : i64, tpu.core_type = #tpu.core_type<tc>, window_params = [{transform_indices = @transform_0, window_bounds = array<i64: 2, 8, 384>}, {pipeline_mode = #tpu.pipeline_mode<synchronous>, transform_indices = @transform_1, window_bounds = array<i64: 8, 128>}, {pipeline_mode = #tpu.pipeline_mode<synchronous>, transform_indices = @transform_2, window_bounds = array<i64: 8, 8, 128>}, {pipeline_mode = #tpu.pipeline_mode<synchronous>, transform_indices = @transform_3, window_bounds = array<i64: 128, 384>}, {pipeline_mode = #tpu.pipeline_mode<synchronous>, transform_indices = @transform_4, window_bounds = array<i64: 1, 384>}, {pipeline_mode = #tpu.pipeline_mode<synchronous>, transform_indices = @transform_5, window_bounds = array<i64: 256, 128>}, {pipeline_mode = #tpu.pipeline_mode<synchronous>, transform_indices = @transform_6, window_bounds = array<i64: 1, 128>}, {transform_indices = @transform_7, window_bounds = array<i64: 2, 8, 128>}, {transform_indices = @transform_8, window_bounds = array<i64: 2, 8, 128>}]} {
    %c0_i32 = arith.constant 0 : i32
    %0 = arith.cmpi eq, %arg0, %c0_i32 : i32
    %1 = arith.extui %0 : i1 to i32
    %c0_i32_0 = arith.constant 0 : i32
    %2 = arith.cmpi ne, %1, %c0_i32_0 : i32
    scf.if %2 {
      %c0_49 = arith.constant 0 : index
      %c0_50 = arith.constant 0 : index
      %138 = vector.load %arg2[%c0_49, %c0_50] : memref<8x128xf32, #tpu.memory_space<vmem>>, vector<8x128xf32>
      %c0_51 = arith.constant 0 : index
      %c0_52 = arith.constant 0 : index
      %139 = vector.load %arg10[%c0_51, %c0_52] : memref<8x128xf32, #tpu.memory_space<vmem>>, vector<8x128xf32>
      tpu.vector_store %arg10[%c0_51, %c0_52], %138 {strides = array<i32>} : memref<8x128xf32, #tpu.memory_space<vmem>>, vector<8x128xf32>,
    } else {
    }
    %c0 = arith.constant 0 : index
    %c0_1 = arith.constant 0 : index
    %c0_2 = arith.constant 0 : index
    %3 = vector.load %arg3[%c0, %c0_1, %c0_2] : memref<8x8x128xf32, #tpu.memory_space<vmem>>, vector<8x8x128xf32>
    %c0_3 = arith.constant 0 : index
    %c0_4 = arith.constant 0 : index
    %4 = vector.load %arg4[%c0_3, %c0_4] : memref<128x384xf32, #tpu.memory_space<vmem>>, vector<128x384xf32>
    %c0_5 = arith.constant 0 : index
    %c0_6 = arith.constant 0 : index
    %5 = vector.load %arg5[%c0_5, %c0_6] : memref<1x384xf32, #tpu.memory_space<vmem>>, vector<1x384xf32>
    %c0_7 = arith.constant 0 : index
    %c0_8 = arith.constant 0 : index
    %6 = vector.load %arg6[%c0_7, %c0_8] : memref<256x128xf32, #tpu.memory_space<vmem>>, vector<256x128xf32>
    %c0_9 = arith.constant 0 : index
    %c0_10 = arith.constant 0 : index
    %7 = vector.load %arg7[%c0_9, %c0_10] : memref<1x128xf32, #tpu.memory_space<vmem>>, vector<1x128xf32>
    %c0_i32_11 = arith.constant 0 : i32
    %c0_12 = arith.constant 0 : index
    %c0_13 = arith.constant 0 : index
    %8 = vector.load %arg10[%c0_12, %c0_13] : memref<8x128xf32, #tpu.memory_space<vmem>>, vector<8x128xf32>
    %9 = arith.index_cast %c0_i32_11 : i32 to index
    %c0_14 = arith.constant 0 : index
    %c0_15 = arith.constant 0 : index
    %10 = vector.load %arg1[%9, %c0_14, %c0_15] : memref<2x8x384xf32, #tpu.memory_space<vmem>>, vector<1x8x384xf32>
    %11 = vector.shape_cast %10 : vector<1x8x384xf32> to vector<8x384xf32>
    %cst = arith.constant dense<0.000000e+00> : vector<8x384xf32>
    %12 = tpu.matmul %8, %4, %cst {dimension_numbers = #tpu.dot_dimension_numbers<[1], [0], [0], [1], [0, 0, 1, 1], [], []>, precision = #tpu.contract_precision<fp32>} : vector<8x128xf32>, vector<128x384xf32>, vector<8x384xf32> -> vector<8x384xf32>
    %13 = vector.broadcast %5 : vector<1x384xf32> to vector<8x384xf32>
    %14 = arith.addf %12, %13 : vector<8x384xf32>
    %15 = vector.extract_strided_slice %11 {offsets = [0, 0], sizes = [8, 128], strides = [1, 1]} : vector<8x384xf32> to vector<8x128xf32>
    %16 = vector.extract_strided_slice %14 {offsets = [0, 0], sizes = [8, 128], strides = [1, 1]} : vector<8x384xf32> to vector<8x128xf32>
    %17 = arith.addf %15, %16 : vector<8x128xf32>
    %18 = arith.negf %17 : vector<8x128xf32>
    %19 = math.exp %18 : vector<8x128xf32>
    %cst_16 = arith.constant 1.000000e+00 : f32
    %20 = vector.broadcast %cst_16 : f32 to vector<8x128xf32>
    %21 = arith.addf %20, %19 : vector<8x128xf32>
    %22 = arith.divf %20, %21 : vector<8x128xf32>
    %23 = vector.extract_strided_slice %11 {offsets = [0, 128], sizes = [8, 128], strides = [1, 1]} : vector<8x384xf32> to vector<8x128xf32>
    %24 = vector.extract_strided_slice %14 {offsets = [0, 128], sizes = [8, 128], strides = [1, 1]} : vector<8x384xf32> to vector<8x128xf32>
    %25 = arith.addf %23, %24 : vector<8x128xf32>
    %26 = arith.negf %25 : vector<8x128xf32>
    %27 = math.exp %26 : vector<8x128xf32>
    %cst_17 = arith.constant 1.000000e+00 : f32
    %28 = vector.broadcast %cst_17 : f32 to vector<8x128xf32>
    %29 = arith.addf %28, %27 : vector<8x128xf32>
    %30 = arith.divf %28, %29 : vector<8x128xf32>
    %31 = vector.extract_strided_slice %11 {offsets = [0, 256], sizes = [8, 128], strides = [1, 1]} : vector<8x384xf32> to vector<8x128xf32>
    %32 = vector.extract_strided_slice %14 {offsets = [0, 256], sizes = [8, 128], strides = [1, 1]} : vector<8x384xf32> to vector<8x128xf32>
    %33 = arith.mulf %22, %32 : vector<8x128xf32>
    %34 = arith.addf %31, %33 : vector<8x128xf32>
    %35 = math.tanh %34 : vector<8x128xf32>
    %cst_18 = arith.constant 1.000000e+00 : f32
    %36 = vector.broadcast %cst_18 : f32 to vector<8x128xf32>
    %37 = arith.subf %36, %30 : vector<8x128xf32>
    %38 = arith.mulf %37, %35 : vector<8x128xf32>
    %39 = arith.mulf %30, %8 : vector<8x128xf32>
    %40 = arith.addf %38, %39 : vector<8x128xf32>
    %41 = vector.shape_cast %40 : vector<8x128xf32> to vector<8x1x128xf32>
    %42 = vector.broadcast %41 : vector<8x1x128xf32> to vector<8x8x128xf32>
    %43 = arith.mulf %42, %3 : vector<8x8x128xf32>
    %cst_19 = arith.constant dense<0.000000e+00> : vector<8x8xf32>
    %44 = vector.multi_reduction <add>, %43, %cst_19 [2] : vector<8x8x128xf32> to vector<8x8xf32>
    %cst_20 = arith.constant dense<0xFF800000> : vector<8xf32>
    %45 = vector.multi_reduction <maximumf>, %44, %cst_20 [1] : vector<8x8xf32> to vector<8xf32>
    %46 = vector.shape_cast %45 : vector<8xf32> to vector<8x1xf32>
    %47 = vector.broadcast %46 : vector<8x1xf32> to vector<8x8xf32>
    %48 = arith.subf %44, %47 : vector<8x8xf32>
    %49 = math.exp %48 : vector<8x8xf32>
    %cst_21 = arith.constant dense<0.000000e+00> : vector<8xf32>
    %50 = vector.multi_reduction <add>, %49, %cst_21 [1] : vector<8x8xf32> to vector<8xf32>
    %51 = vector.shape_cast %50 : vector<8xf32> to vector<8x1xf32>
    %52 = tpu.reciprocal %51 {approx = true} : vector<8x1xf32> -> vector<8x1xf32>
    %53 = vector.broadcast %52 : vector<8x1xf32> to vector<8x8xf32>
    %54 = arith.mulf %49, %53 : vector<8x8xf32>
    %55 = vector.shape_cast %54 : vector<8x8xf32> to vector<8x8x1xf32>
    %56 = vector.broadcast %55 : vector<8x8x1xf32> to vector<8x8x128xf32>
    %57 = arith.mulf %56, %3 : vector<8x8x128xf32>
    %cst_22 = arith.constant dense<0.000000e+00> : vector<8x128xf32>
    %58 = vector.multi_reduction <add>, %57, %cst_22 [1] : vector<8x8x128xf32> to vector<8x128xf32>
    %59 = tpu.concatenate %40, %58 in 1 : vector<8x128xf32>, vector<8x128xf32> -> vector<8x256xf32>
    %cst_23 = arith.constant dense<0.000000e+00> : vector<8x128xf32>
    %60 = tpu.matmul %59, %6, %cst_23 {dimension_numbers = #tpu.dot_dimension_numbers<[1], [0], [0], [1], [0, 0, 1, 1], [], []>, precision = #tpu.contract_precision<fp32>} : vector<8x256xf32>, vector<256x128xf32>, vector<8x128xf32> -> vector<8x128xf32>
    %61 = vector.broadcast %7 : vector<1x128xf32> to vector<8x128xf32>
    %62 = arith.addf %60, %61 : vector<8x128xf32>
    %63 = math.tanh %62 : vector<8x128xf32>
    %64 = arith.index_cast %c0_i32_11 : i32 to index
    %c0_24 = arith.constant 0 : index
    %c0_25 = arith.constant 0 : index
    %65 = vector.load %arg8[%64, %c0_24, %c0_25] : memref<2x8x128xf32, #tpu.memory_space<vmem>>, vector<1x8x128xf32>
    %66 = vector.shape_cast %65 : vector<1x8x128xf32> to vector<8x128xf32>
    %67 = vector.shape_cast %63 : vector<8x128xf32> to vector<1x8x128xf32>
    tpu.vector_store %arg8[%64, %c0_24, %c0_25], %67 {strides = array<i32>} : memref<2x8x128xf32, #tpu.memory_space<vmem>>, vector<1x8x128xf32>,
    %68 = arith.index_cast %c0_i32_11 : i32 to index
    %c0_26 = arith.constant 0 : index
    %c0_27 = arith.constant 0 : index
    %69 = vector.load %arg9[%68, %c0_26, %c0_27] : memref<2x8x128xf32, #tpu.memory_space<vmem>>, vector<1x8x128xf32>
    %70 = vector.shape_cast %69 : vector<1x8x128xf32> to vector<8x128xf32>
    %71 = vector.shape_cast %40 : vector<8x128xf32> to vector<1x8x128xf32>
    tpu.vector_store %arg9[%68, %c0_26, %c0_27], %71 {strides = array<i32>} : memref<2x8x128xf32, #tpu.memory_space<vmem>>, vector<1x8x128xf32>,
    %c0_28 = arith.constant 0 : index
    %c0_29 = arith.constant 0 : index
    %72 = vector.load %arg10[%c0_28, %c0_29] : memref<8x128xf32, #tpu.memory_space<vmem>>, vector<8x128xf32>
    tpu.vector_store %arg10[%c0_28, %c0_29], %40 {strides = array<i32>} : memref<8x128xf32, #tpu.memory_space<vmem>>, vector<8x128xf32>,
    %c1_i32 = arith.constant 1 : i32
    %c0_30 = arith.constant 0 : index
    %c0_31 = arith.constant 0 : index
    %73 = vector.load %arg10[%c0_30, %c0_31] : memref<8x128xf32, #tpu.memory_space<vmem>>, vector<8x128xf32>
    %74 = arith.index_cast %c1_i32 : i32 to index
    %c0_32 = arith.constant 0 : index
    %c0_33 = arith.constant 0 : index
    %75 = vector.load %arg1[%74, %c0_32, %c0_33] : memref<2x8x384xf32, #tpu.memory_space<vmem>>, vector<1x8x384xf32>
    %76 = vector.shape_cast %75 : vector<1x8x384xf32> to vector<8x384xf32>
    %cst_34 = arith.constant dense<0.000000e+00> : vector<8x384xf32>
    %77 = tpu.matmul %73, %4, %cst_34 {dimension_numbers = #tpu.dot_dimension_numbers<[1], [0], [0], [1], [0, 0, 1, 1], [], []>, precision = #tpu.contract_precision<fp32>} : vector<8x128xf32>, vector<128x384xf32>, vector<8x384xf32> -> vector<8x384xf32>
    %78 = vector.broadcast %5 : vector<1x384xf32> to vector<8x384xf32>
    %79 = arith.addf %77, %78 : vector<8x384xf32>
    %80 = vector.extract_strided_slice %76 {offsets = [0, 0], sizes = [8, 128], strides = [1, 1]} : vector<8x384xf32> to vector<8x128xf32>
    %81 = vector.extract_strided_slice %79 {offsets = [0, 0], sizes = [8, 128], strides = [1, 1]} : vector<8x384xf32> to vector<8x128xf32>
    %82 = arith.addf %80, %81 : vector<8x128xf32>
    %83 = arith.negf %82 : vector<8x128xf32>
    %84 = math.exp %83 : vector<8x128xf32>
    %cst_35 = arith.constant 1.000000e+00 : f32
    %85 = vector.broadcast %cst_35 : f32 to vector<8x128xf32>
    %86 = arith.addf %85, %84 : vector<8x128xf32>
    %87 = arith.divf %85, %86 : vector<8x128xf32>
    %88 = vector.extract_strided_slice %76 {offsets = [0, 128], sizes = [8, 128], strides = [1, 1]} : vector<8x384xf32> to vector<8x128xf32>
    %89 = vector.extract_strided_slice %79 {offsets = [0, 128], sizes = [8, 128], strides = [1, 1]} : vector<8x384xf32> to vector<8x128xf32>
    %90 = arith.addf %88, %89 : vector<8x128xf32>
    %91 = arith.negf %90 : vector<8x128xf32>
    %92 = math.exp %91 : vector<8x128xf32>
    %cst_36 = arith.constant 1.000000e+00 : f32
    %93 = vector.broadcast %cst_36 : f32 to vector<8x128xf32>
    %94 = arith.addf %93, %92 : vector<8x128xf32>
    %95 = arith.divf %93, %94 : vector<8x128xf32>
    %96 = vector.extract_strided_slice %76 {offsets = [0, 256], sizes = [8, 128], strides = [1, 1]} : vector<8x384xf32> to vector<8x128xf32>
    %97 = vector.extract_strided_slice %79 {offsets = [0, 256], sizes = [8, 128], strides = [1, 1]} : vector<8x384xf32> to vector<8x128xf32>
    %98 = arith.mulf %87, %97 : vector<8x128xf32>
    %99 = arith.addf %96, %98 : vector<8x128xf32>
    %100 = math.tanh %99 : vector<8x128xf32>
    %cst_37 = arith.constant 1.000000e+00 : f32
    %101 = vector.broadcast %cst_37 : f32 to vector<8x128xf32>
    %102 = arith.subf %101, %95 : vector<8x128xf32>
    %103 = arith.mulf %102, %100 : vector<8x128xf32>
    %104 = arith.mulf %95, %73 : vector<8x128xf32>
    %105 = arith.addf %103, %104 : vector<8x128xf32>
    %106 = vector.shape_cast %105 : vector<8x128xf32> to vector<8x1x128xf32>
    %107 = vector.broadcast %106 : vector<8x1x128xf32> to vector<8x8x128xf32>
    %108 = arith.mulf %107, %3 : vector<8x8x128xf32>
    %cst_38 = arith.constant dense<0.000000e+00> : vector<8x8xf32>
    %109 = vector.multi_reduction <add>, %108, %cst_38 [2] : vector<8x8x128xf32> to vector<8x8xf32>
    %cst_39 = arith.constant dense<0xFF800000> : vector<8xf32>
    %110 = vector.multi_reduction <maximumf>, %109, %cst_39 [1] : vector<8x8xf32> to vector<8xf32>
    %111 = vector.shape_cast %110 : vector<8xf32> to vector<8x1xf32>
    %112 = vector.broadcast %111 : vector<8x1xf32> to vector<8x8xf32>
    %113 = arith.subf %109, %112 : vector<8x8xf32>
    %114 = math.exp %113 : vector<8x8xf32>
    %cst_40 = arith.constant dense<0.000000e+00> : vector<8xf32>
    %115 = vector.multi_reduction <add>, %114, %cst_40 [1] : vector<8x8xf32> to vector<8xf32>
    %116 = vector.shape_cast %115 : vector<8xf32> to vector<8x1xf32>
    %117 = tpu.reciprocal %116 {approx = true} : vector<8x1xf32> -> vector<8x1xf32>
    %118 = vector.broadcast %117 : vector<8x1xf32> to vector<8x8xf32>
    %119 = arith.mulf %114, %118 : vector<8x8xf32>
    %120 = vector.shape_cast %119 : vector<8x8xf32> to vector<8x8x1xf32>
    %121 = vector.broadcast %120 : vector<8x8x1xf32> to vector<8x8x128xf32>
    %122 = arith.mulf %121, %3 : vector<8x8x128xf32>
    %cst_41 = arith.constant dense<0.000000e+00> : vector<8x128xf32>
    %123 = vector.multi_reduction <add>, %122, %cst_41 [1] : vector<8x8x128xf32> to vector<8x128xf32>
    %124 = tpu.concatenate %105, %123 in 1 : vector<8x128xf32>, vector<8x128xf32> -> vector<8x256xf32>
    %cst_42 = arith.constant dense<0.000000e+00> : vector<8x128xf32>
    %125 = tpu.matmul %124, %6, %cst_42 {dimension_numbers = #tpu.dot_dimension_numbers<[1], [0], [0], [1], [0, 0, 1, 1], [], []>, precision = #tpu.contract_precision<fp32>} : vector<8x256xf32>, vector<256x128xf32>, vector<8x128xf32> -> vector<8x128xf32>
    %126 = vector.broadcast %7 : vector<1x128xf32> to vector<8x128xf32>
    %127 = arith.addf %125, %126 : vector<8x128xf32>
    %128 = math.tanh %127 : vector<8x128xf32>
    %129 = arith.index_cast %c1_i32 : i32 to index
    %c0_43 = arith.constant 0 : index
    %c0_44 = arith.constant 0 : index
    %130 = vector.load %arg8[%129, %c0_43, %c0_44] : memref<2x8x128xf32, #tpu.memory_space<vmem>>, vector<1x8x128xf32>
    %131 = vector.shape_cast %130 : vector<1x8x128xf32> to vector<8x128xf32>
    %132 = vector.shape_cast %128 : vector<8x128xf32> to vector<1x8x128xf32>
    tpu.vector_store %arg8[%129, %c0_43, %c0_44], %132 {strides = array<i32>} : memref<2x8x128xf32, #tpu.memory_space<vmem>>, vector<1x8x128xf32>,
    %133 = arith.index_cast %c1_i32 : i32 to index
    %c0_45 = arith.constant 0 : index
    %c0_46 = arith.constant 0 : index
    %134 = vector.load %arg9[%133, %c0_45, %c0_46] : memref<2x8x128xf32, #tpu.memory_space<vmem>>, vector<1x8x128xf32>
    %135 = vector.shape_cast %134 : vector<1x8x128xf32> to vector<8x128xf32>
    %136 = vector.shape_cast %105 : vector<8x128xf32> to vector<1x8x128xf32>
    tpu.vector_store %arg9[%133, %c0_45, %c0_46], %136 {strides = array<i32>} : memref<2x8x128xf32, #tpu.memory_space<vmem>>, vector<1x8x128xf32>,
    %c0_47 = arith.constant 0 : index
    %c0_48 = arith.constant 0 : index
    %137 = vector.load %arg10[%c0_47, %c0_48] : memref<8x128xf32, #tpu.memory_space<vmem>>, vector<8x128xf32>
    tpu.vector_store %arg10[%c0_47, %c0_48], %105 {strides = array<i32>} : memref<8x128xf32, #tpu.memory_space<vmem>>, vector<8x128xf32>,
    %c2_i32 = arith.constant 2 : i32
    return
  }
  func.func @transform_0(%arg0: i32) -> (i32, i32, i32) {
    %c0_i32 = arith.constant 0 : i32
    %c0_i32_0 = arith.constant 0 : i32
    %c0_i32_1 = arith.constant 0 : i32
    return %arg0, %c0_i32, %c0_i32_0 : i32, i32, i32
  }
  func.func @transform_1(%arg0: i32) -> (i32, i32) {
    %c0_i32 = arith.constant 0 : i32
    %c0_i32_0 = arith.constant 0 : i32
    %c0_i32_1 = arith.constant 0 : i32
    return %c0_i32, %c0_i32_0 : i32, i32
  }
  func.func @transform_2(%arg0: i32) -> (i32, i32, i32) {
    %c0_i32 = arith.constant 0 : i32
    %c0_i32_0 = arith.constant 0 : i32
    %c0_i32_1 = arith.constant 0 : i32
    %c0_i32_2 = arith.constant 0 : i32
    return %c0_i32, %c0_i32_0, %c0_i32_1 : i32, i32, i32
  }
  func.func @transform_3(%arg0: i32) -> (i32, i32) {
    %c0_i32 = arith.constant 0 : i32
    %c0_i32_0 = arith.constant 0 : i32
    %c0_i32_1 = arith.constant 0 : i32
    return %c0_i32, %c0_i32_0 : i32, i32
  }
  func.func @transform_4(%arg0: i32) -> (i32, i32) {
    %c0_i32 = arith.constant 0 : i32
    %c0_i32_0 = arith.constant 0 : i32
    %c0_i32_1 = arith.constant 0 : i32
    return %c0_i32, %c0_i32_0 : i32, i32
  }
  func.func @transform_5(%arg0: i32) -> (i32, i32) {
    %c0_i32 = arith.constant 0 : i32
    %c0_i32_0 = arith.constant 0 : i32
    %c0_i32_1 = arith.constant 0 : i32
    return %c0_i32, %c0_i32_0 : i32, i32
  }
  func.func @transform_6(%arg0: i32) -> (i32, i32) {
    %c0_i32 = arith.constant 0 : i32
    %c0_i32_0 = arith.constant 0 : i32
    %c0_i32_1 = arith.constant 0 : i32
    return %c0_i32, %c0_i32_0 : i32, i32
  }
  func.func @transform_7(%arg0: i32) -> (i32, i32, i32) {
    %c0_i32 = arith.constant 0 : i32
    %c0_i32_0 = arith.constant 0 : i32
    %c0_i32_1 = arith.constant 0 : i32
    return %arg0, %c0_i32, %c0_i32_0 : i32, i32, i32
  }
  func.func @transform_8(%arg0: i32) -> (i32, i32, i32) {
    %c0_i32 = arith.constant 0 : i32
    %c0_i32_0 = arith.constant 0 : i32
    %c0_i32_1 = arith.constant 0 : i32
    return %arg0, %c0_i32, %c0_i32_0 : i32, i32, i32
  }
}

</mosaic_0001>

<bundles_post_ra>
// kernel: tpu_custom_call.1
= control target key start
LH: loop header
LB: loop body
LE: loop exit
PB: predicated region body
PF: predicated region fallthrough
CT: control target
= control target key end

     0   :  { %s11923_s0 = inlined_call_operand.hbm [shape: f32[6,8,384], index: 0, kind: input, shape index: {}]   ;;  %s11924_s1 = inlined_call_operand.hbm [shape: f32[8,128], index: 1, kind: input, shape index: {}]   ;;  %s11925_s2 = inlined_call_operand.hbm [shape: f32[8,8,128], index: 2, kind: input, shape index: {}]   ;;  %s11926_s3 = inlined_call_operand.hbm [shape: f32[128,384], index: 3, kind: input, shape index: {}]   ;;  %s11927_s4 = inlined_call_operand.vmem [shape: f32[1,384], index: 4, kind: input, shape index: {}]   ;;  %s11928_s5 = inlined_call_operand.hbm [shape: f32[256,128], index: 5, kind: input, shape index: {}]   ;;  %s11929_s6 = inlined_call_operand.vmem [shape: f32[1,128], index: 6, kind: input, shape index: {}]   ;;  %s11930_s7 = inlined_call_operand.hbm [shape: f32[6,8,128], index: 7, kind: output, shape index: {0}]   ;;  %s11931_s8 = inlined_call_operand.hbm [shape: f32[6,8,128], index: 8, kind: output, shape index: {1}]  }
   0x1   :  { %12324 = sst [smem:[#allocation186_spill]] %s11924_s1 }
   0x2   :  { %12325 = sst [smem:[#allocation187_spill]] %s11926_s3 }
   0x3   :  { %14 = vsyncpa [#allocation4], 0 }
   0x4   :  { %16 = vsyncpa [#allocation4 + $0x1], 0 }
   0x5   :  { %17 = vsyncpa [#allocation7], 0 }
   0x6   :  { %18 = vsyncpa [#allocation10], 0 }
   0x7   :  { %19 = vsyncpa [#allocation5], 0 }
   0x8   :  { %21 = vsyncpa [#allocation5 + $0x1], 0 }
   0x9   :  { %22 = vsyncpa [#allocation14], 0 }
   0xa   :  { %24 = vsyncpa [#allocation14 + $0x1], 0  ;;  %s9087_s27 = smov 0   ;;  %s9089_s28 = smov 0  }
   0xb   :  { %s9091_s29 = smov 0   ;;  %s9093_s30 = smov 0  }
   0xc LB: > { %s9108_s9 = sadd.s32 4294967295, %s9022_s30   ;;  %s6412_s10 = sadd.s32 4294967294, %s9022_s30   ;;  %s9022_s30 = sphi %s9093_s30, %s12951_s30   ;;  %s9018_s29 = sphi %s9091_s29, %s12950_s29   ;;  %s9014_s28 = sphi %s9089_s28, %s12949_s28   ;;  %s9010_s27 = sphi %s9087_s27, %s12948_s27  }
   0xd   : > { %p50_p0 = scmp.ne.s32.totalorder %s9014_s28, %s9010_s27  ;;  %p11932_p1 = scmp.eq.s32.totalorder %s9108_s9, 0 }
   0xe   : > { %p206_p3 = scmp.eq.s32.totalorder %s6412_s10, 2  ;;  %p6413_p5 = scmp.ge.s32.totalorder %s9022_s30, 1 }
   0xf   : > { %p9117_p4 = por %p11932_p1, %p50_p0  ;;  %p239_p7 = scmp.lt.s32.totalorder %s9022_s30, 4 }
  0x10   : > { %p9122_p6 = por %p206_p3, %p50_p0  ;;  %s9024_s14 = smov [#allocation6]  }
  0x11   : > { %s12326_s11 = scalar_select %p9117_p4, 1, 0 }
  0x12   : > { %s12327_s12 = scalar_select %p9122_p6, 1, 0 }
  0x13   : > { %p9128_p9 = pnand %p6413_p5, %p239_p7  ;;  %s252_s15 = sshll.u32 %s9024_s14, 4  ;;  %s253_s15 = int_to_ptr.vmem [resolvable:$true] %s252_s15 }
  0x14   : > { %s9025_s16 = smov [#allocation9]   ;;  %s9026_s19 = smov [#allocation8]  }
  0x15   : > { %s12328_s13 = scalar_select %p9128_p9, 1, 0 }
  0x16   : > { %p8621_p10 = pneg %p9128_p9  ;;  %s275_s17 = sshll.u32 %s9025_s16, 4  ;;  %s9140_s17 = int_to_ptr.vmem [resolvable:$true] %s275_s17 }
  0x17   : > { %s9142_s20 = sshll.u32 %s9026_s19, 4  ;;  %s12330_s1 = sld [smem:[#allocation186_spill]]  ;;  %s263_s20 = int_to_ptr.vmem [resolvable:$true] %s9142_s20 }
  0x18   : > { %p9136_p11 = pnand %p8621_p10, %p11932_p1 }
  0x1a   : > { %p9152_p13 = pneg %p9136_p11 }
  0x1d   : > { %s8774_s23 = scalar_lea.hbm %s12330_s1, 128 }
  0x1e   : > { %p8775_p12 = scmp.ne.s32.totalorder %s12330_s1, %s8774_s23  ;;  %p8781_p5 = scmp.lt.u32.totalorder %s8774_s23, %s12330_s1 }
  0x20   : > { %p8777_p0 = pnand %p9152_p13, %p8775_p12 }
  0x22   : > { %p8778_p3 = pneg %p8777_p0 }
  0x24   : > { %p8783_p7 = pnand %p8781_p5, %p8778_p3 }
  0x26   : > { %8786 = shalt.err (!%p8783_p7)
}
  0x27   : > { %s8787_s16 = scalar_lea.vmem %s253_s15, 128  ;;  %p8795_p2 = scmp.lt.s32.totalorder %s253_s15, %s253_s15 }
  0x28   : > { %p8788_p10 = scmp.ne.s32.totalorder %s253_s15, %s8787_s16  ;;  %p8796_p6 = scmp.lt.s32.totalorder %s8787_s16, %s8787_s16 }
  0x2a   : > { %p8790_p8 = pnand %p8788_p10, %p9152_p13  ;;  %p8797_p4 = por %p8796_p6, %p8795_p2 }
  0x2c   : > { %p8791_p1 = pneg %p8790_p8 }
  0x2e   : > { %p8798_p9 = pnand %p8797_p4, %p8791_p1 }
  0x30   : > { %8801 = shalt.err (!%p8798_p9)
}
  0x31   : > { %8624 = dma.hbm_to_vmem [thread:$0]  (!%p9136_p11), %s12330_s1, 128, %s253_s15, [#allocation7]  }
  0x32   : > { %s12332_s3 = sld [smem:[#allocation187_spill]] }
  0x38   : > { %s8802_s24 = scalar_lea.hbm %s12332_s3, 6144 }
  0x39   : > { %p8803_p8 = scmp.ne.s32.totalorder %s12332_s3, %s8802_s24  ;;  %p8809_p1 = scmp.lt.u32.totalorder %s8802_s24, %s12332_s3 }
  0x3b   : > { %p8805_p12 = pnand %p8803_p8, %p9152_p13 }
  0x3d   : > { %p8806_p2 = pneg %p8805_p12 }
  0x3f   : > { %p8811_p4 = pnand %p8809_p1, %p8806_p2 }
  0x41   : > { %8814 = shalt.err (!%p8811_p4)
}
  0x42   : > { %s8815_s15 = scalar_lea.vmem %s9140_s17, 6144  ;;  %p8823_p3 = scmp.lt.s32.totalorder %s9140_s17, %s9140_s17 }
  0x43   : > { %p8816_p6 = scmp.ne.s32.totalorder %s9140_s17, %s8815_s15  ;;  %p8824_p5 = scmp.lt.s32.totalorder %s8815_s15, %s8815_s15 }
  0x45   : > { %p8818_p9 = pnand %p8816_p6, %p9152_p13  ;;  %p8825_p7 = por %p8824_p5, %p8823_p3 }
  0x47   : > { %p8819_p0 = pneg %p8818_p9 }
  0x49   : > { %p8826_p10 = pnand %p8825_p7, %p8819_p0 }
  0x4b   : > { %8829 = shalt.err (!%p8826_p10)
}
  0x4c   : > { %s11935_s19 = smov 384   ;;  %s11936_s21 = smov 24  }
  0x4d   : > { %8630 = dma.hbm_to_vmem [thread:$0]  (!%p9136_p11), %s12332_s3, 6144, %s9140_s17, [#allocation10], %s11935_s19, %s11935_s19, %s11936_s21  }
  0x4e   : > { %s8830_s10 = scalar_lea.hbm %s11925_s2, 1024 }
  0x4f   : > { %p8831_p8 = scmp.ne.s32.totalorder %s11925_s2, %s8830_s10  ;;  %p8837_p1 = scmp.lt.u32.totalorder %s8830_s10, %s11925_s2 }
  0x51   : > { %p8833_p12 = pnand %p8831_p8, %p9152_p13 }
  0x53   : > { %p8834_p2 = pneg %p8833_p12 }
  0x55   : > { %p8839_p4 = pnand %p8837_p1, %p8834_p2 }
  0x57   : > { %8842 = shalt.err (!%p8839_p4)
}
  0x58   : > { %s8843_s22 = scalar_lea.vmem %s263_s20, 1024  ;;  %p8851_p3 = scmp.lt.s32.totalorder %s263_s20, %s263_s20 }
  0x59   : > { %p8844_p6 = scmp.ne.s32.totalorder %s263_s20, %s8843_s22  ;;  %p8852_p5 = scmp.lt.s32.totalorder %s8843_s22, %s8843_s22 }
  0x5b   : > { %p8846_p9 = pnand %p8844_p6, %p9152_p13  ;;  %p8853_p7 = por %p8852_p5, %p8851_p3 }
  0x5d   : > { %p8847_p0 = pneg %p8846_p9 }
  0x5f   : > { %p8854_p10 = pnand %p8853_p7, %p8847_p0 }
  0x61   : > { %8857 = shalt.err (!%p8854_p10)
}
  0x62   : > { %s9029_s17 = smov 128   ;;  %s9030_s23 = smov 8  }
  0x63   : > { %8627 = dma.hbm_to_vmem [thread:$0]  (!%p9136_p11), %s11925_s2, 1024, %s263_s20, [#allocation7], %s9029_s17, %s9029_s17, %s9030_s23  }
  0x64   : > { %s9031_s25 = smov [#allocation11]   ;;  %s8858_s15 = scalar_lea.hbm %s11928_s5, 4096 }
  0x65   : > { %s291_s10 = sshll.u32 %s9031_s25, 4  ;;  %p8859_p8 = scmp.ne.s32.totalorder %s11928_s5, %s8858_s15  ;;  %s292_s10 = int_to_ptr.vmem [resolvable:$true] %s291_s10 }
  0x66   : > { %p8865_p1 = scmp.lt.u32.totalorder %s8858_s15, %s11928_s5 }
  0x67   : > { %p8861_p12 = pnand %p8859_p8, %p9152_p13 }
  0x69   : > { %p8862_p2 = pneg %p8861_p12 }
  0x6b   : > { %p8867_p4 = pnand %p8865_p1, %p8862_p2 }
  0x6d   : > { %8870 = shalt.err (!%p8867_p4)
}
  0x6e   : > { %s8871_s20 = scalar_lea.vmem %s292_s10, 4096  ;;  %p8879_p3 = scmp.lt.s32.totalorder %s292_s10, %s292_s10 }
  0x6f   : > { %p8872_p6 = scmp.ne.s32.totalorder %s292_s10, %s8871_s20  ;;  %p8880_p5 = scmp.lt.s32.totalorder %s8871_s20, %s8871_s20 }
  0x71   : > { %p8874_p9 = pnand %p8872_p6, %p9152_p13  ;;  %p8881_p7 = por %p8880_p5, %p8879_p3 }
  0x73   : > { %p8875_p0 = pneg %p8874_p9 }
  0x75   : > { %p8882_p10 = pnand %p8881_p7, %p8875_p0 }
  0x77   : > { %8885 = shalt.err (!%p8882_p10)
}
  0x78   : > { %8633 = dma.hbm_to_vmem [thread:$0]  (!%p9136_p11), %s11928_s5, 4096, %s292_s10, [#allocation10], %s9029_s17, %s9029_s17, %s9030_s23  }
  0x79   : > { %s9232_s3 = sadd.s32 1, %s9022_s30   ;;  %s37_s26 = sadd.s32 1, %s9018_s29 }
  0x7a   : > { %s34_s18 = ssub.s32 %s9022_s30, %s9232_s3  ;;  %p44_p13 = scmp.ne.s32.totalorder %s9018_s29, %s9014_s28 }
  0x7b   : > { %p35_p8 = scmp.eq.s32.totalorder %s34_s18, 0  ;;  %p45_p12 = scmp.eq.s32.totalorder %s9022_s30, 0 }
  0x7c   : > { %p12333_p2 = scmp.eq.s32.totalorder %s9108_s9, 2  ;;  %p8649_p4 = scmp.lt.s32.totalorder %s9022_s30, 3 }
  0x7d   : > { %s9248_s24 = scalar_select %p35_p8, %s9018_s29, %s37_s26  }
  0x7e   : > { %p9242_p1 = por %p12333_p2, %p44_p13  ;;  %p46_p6 = por %p45_p12, %p44_p13 }
  0x7f   : > { %s308_s25 = sand.u32 1, %s9018_s29   ;;  %s8597_s17 = smul.u32 768, %s9022_s30 }
  0x80   : > { %s8596_s14 = smul.u32 48, %s308_s25  ;;  %p9252_p11 = pnand %p8649_p4, %p46_p6 }
  0x81   : > { %s9259_s15 = scalar_lea.hbm %s11923_s0, %s8597_s17  ;;  %s9263_s19 = scalar_lea.sflag [#allocation4], %s308_s25 }
  0x82   : > { %s312_s22 = scalar_lea.vmem [#allocation3], %s8596_s14  ;;  %s8886_s1 = scalar_lea.hbm %s9259_s15, 768 }
  0x83   : > { %s320_s20 = sshll.u32 %s312_s22, 4  ;;  %p8887_p9 = scmp.ne.s32.totalorder %s9259_s15, %s8886_s1  ;;  %s9261_s20 = int_to_ptr.vmem [resolvable:$true] %s320_s20 }
  0x84   : > { %p8888_p0 = pneg %p9252_p11  ;;  %s8891_s17 = scalar_lea.hbm %s11923_s0, 2304 }
  0x85   : > { %p8892_p7 = scmp.lt.u32.totalorder %s9259_s15, %s11923_s0  ;;  %p8893_p10 = scmp.lt.u32.totalorder %s8891_s17, %s8886_s1 }
  0x86   : > { %p8889_p3 = pnand %p8888_p0, %p8887_p9  ;;  %p8895_p8 = scmp.lt.u32.totalorder %s8886_s1, %s9259_s15 }
  0x87   : > { %p8894_p13 = por %p8893_p10, %p8892_p7 }
  0x88   : > { %p8890_p5 = pneg %p8889_p3 }
  0x89   : > { %p8896_p12 = por %p8895_p8, %p8894_p13 }
  0x8b   : > { %p8897_p2 = pnand %p8896_p12, %p8890_p5 }
  0x8d   : > { %8900 = shalt.err (!%p8897_p2)
}
  0x8e   : > { %s8901_s25 = scalar_lea.vmem %s9261_s20, 768  ;;  %s9032_s14 = smov [#allocation3]  }
  0x8f   : > { %p8902_p4 = scmp.ne.s32.totalorder %s9261_s20, %s8901_s25  ;;  %s8906_s22 = sshll.u32 %s9032_s14, 4  ;;  %s8907_s22 = int_to_ptr.vmem [resolvable:$false] %s8906_s22 }
  0x90   : > { %s8908_s26 = scalar_lea.vmem %s8907_s22, 1536  ;;  %p8909_p3 = scmp.lt.s32.totalorder %s9261_s20, %s8907_s22 }
  0x91   : > { %p8904_p6 = pnand %p8902_p4, %p8888_p0  ;;  %p8910_p7 = scmp.lt.s32.totalorder %s8908_s26, %s8901_s25 }
  0x93   : > { %p8905_p9 = pneg %p8904_p6  ;;  %p8911_p10 = por %p8910_p7, %p8909_p3 }
  0x95   : > { %p8912_p13 = pnand %p8911_p10, %p8905_p9 }
  0x97   : > { %8915 = shalt.err (!%p8912_p13)
}
  0x98   : > { %s12336_s1 = smov 24   ;;  %s12337_s18 = smov 384  }
  0x99   : > { %8637 = dma.hbm_to_vmem [thread:$0]  (!%p9252_p11), %s9259_s15, 768, %s9261_s20, %s9263_s19, %s12337_s18, %s12337_s18, %s12336_s1  }
  0x9a   : > { %p12338_p0 = scmp.ne.s32.totalorder %s12328_s13, 0 }
  0x9c   : > { %332 = sbr.rel (%p12338_p0) target bundleno = 3152 (0xc50), region = 48 }
  0xa3   : > { %s9297_s17 = sand.u32 1, %s9014_s28   ;;  %p12339_p5 = scmp.ne.s32.totalorder %s12326_s11, 0 }
  0xa4   : > { %s8598_s10 = smul.u32 48, %s9297_s17  ;;  %s335_s16 = scalar_lea.sflag [#allocation4], %s9297_s17 }
  0xa6   : > { %s9301_s25 = scalar_lea.vmem [#allocation3], %s8598_s10 }
  0xa7   : > { %8989 = dma.done.wait (%p12339_p5), %s335_s16, 768  }
  0xa8   : > { %8991 = vsyncadd (%p12339_p5), %s335_s16, 4294966528  ;;  %p12340_p11 = scmp.eq.s32.totalorder %s9108_s9, 0 }
  0xaa   : > { %8993 = dma.done.wait (%p12340_p11), [#allocation7], 1152   ;;  %p12341_p8 = pmov %p12340_p11 }
  0xac   : > { %8995 = vsyncadd (%p12341_p8), [#allocation7], 4294966144  ;;  %p12342_p12 = pmov %p12341_p8 }
  0xad   : > { %p12343_p2 = pmov %p12341_p8 }
  0xae   : > { %8997 = dma.done.wait (%p12342_p12), [#allocation10], 10240  }
  0xaf   : > { %8999 = vsyncadd (%p12343_p2), [#allocation10], 4294957056  ;;  %s6427_s13 = sshll.u32 %s9297_s17, 4  ;;  %p12344_p4 = scmp.ne.s32.totalorder %s9108_s9, 0 }
  0xb0   : > { %s9316_s23 = scalar_lea.vmem [#allocation12], %s6427_s13  ;;  %s9318_s15 = scalar_lea.vmem [#allocation13], %s6427_s13  ;;  %v399_v0 = vld [vmem:[#allocation6] sm:$0xff] (!%p12344_p4) }
  0xb1   : > { %398 = sbr.rel (%p12344_p4) target bundleno = 184 (0xb8), region = 72  ;;  %400 = vst [vmem:[#allocation2] sm:$0xff] (!%p12344_p4), %v399_v0 }
  0xb8 PF: > { %v9322_v1 = vld [vmem:[#allocation9 + $0x8] sm:$0xff]  ;;  %v9324_v2 = vld [vmem:[#allocation9 + $0x20] sm:$0xff]  ;;  %v9326_v3 = vld [vmem:[#allocation9 + $0x10] sm:$0xff]  ;;  %v11965_v4 = vmov 0.0|0.0   ;;  %vm9034_vm0 = vmmov 0   ;;  %v11937_v11 = vmov 0.0  }
  0xb9   : > { %7686 = vmatprep.subr.bf16.mxu1 %v11965_v4  ;;  %v11964_v5 = vand.u32 4294901760, %v9322_v1  ;;  %v11961_v6 = vand.u32 4294901760, %v9324_v2  ;;  %v9331_v7 = vld [vmem:[#allocation9 + $0x28] sm:$0xff]  ;;  %v11960_v8 = vand.u32 4294901760, %v9326_v3  ;;  %v9334_v9 = vld [vmem:[#allocation9] sm:$0xff]  ;;  %v9336_v10 = vld [vmem:[#allocation9 + $0x18] sm:$0xff]  ;;  %7106 = vmatprep.mubr.msk.f32.mxu1 %vm9034_vm0, %v11937_v11 }
  0xba   : > { %v11959_v12 = vand.u32 4294901760, %v9331_v7  ;;  %v11958_v13 = vand.u32 4294901760, %v9334_v9  ;;  %v11957_v14 = vand.u32 4294901760, %v9336_v10  ;;  %v9343_v15 = vld [vmem:[#allocation9 + $0x38] sm:$0xff]  ;;  %v9345_v16 = vld [vmem:[#allocation9 + $0x50] sm:$0xff]  ;;  %v9347_v17 = vld [vmem:[#allocation9 + $0x40] sm:$0xff]  ;;  %607 = vmatprep.mubr.f32.mxu0 %v11937_v11 }
  0xbb   : > { %v9354_v18 = vpack.c.bf16 %v11961_v6, %v11964_v5  ;;  %v11954_v19 = vand.u32 4294901760, %v9343_v15  ;;  %v11953_v20 = vand.u32 4294901760, %v9345_v16  ;;  %v9358_v21 = vld [vmem:[#allocation9 + $0x58] sm:$0xff]  ;;  %v11952_v22 = vand.u32 4294901760, %v9347_v17  ;;  %v9361_v23 = vld [vmem:[#allocation9 + $0x30] sm:$0xff]  ;;  %v9363_v24 = vld [vmem:[#allocation9 + $0x48] sm:$0xff] }
  0xbc   : > { %v9369_v25 = vpack.c.bf16 %v11959_v12, %v11960_v8  ;;  %v9375_v26 = vpack.c.bf16 %v11957_v14, %v11958_v13  ;;  %v11951_v27 = vand.u32 4294901760, %v9358_v21  ;;  %v11946_v28 = vand.u32 4294901760, %v9361_v23  ;;  %v9379_v29 = vld [vmem:[#allocation9 + $0x68] sm:$0xff]  ;;  %v9381_v30 = vld [vmem:[#allocation9 + $0x80] sm:$0xff]  ;;  %v9383_v31 = vld [vmem:[#allocation9 + $0x70] sm:$0xff]  ;;  %s6448_s22 = sshll.u32 %s9108_s9, 8 }
  0xbd   : > { %12345 = vst [vmem:[#allocation20_spill] sm:$0xff] %v9354_v18  ;;  %7495 = vmatprep.subr.bf16.mxu0 %v9354_v18  ;;  %v9390_v32 = vpack.c.bf16 %v11953_v20, %v11954_v19  ;;  %v11945_v33 = vand.u32 4294901760, %v9363_v24  ;;  %v11944_v34 = vand.u32 4294901760, %v9379_v29  ;;  %v11943_v35 = vand.u32 4294901760, %v9381_v30  ;;  %v9395_v36 = vld [vmem:[#allocation9 + $0x88] sm:$0xff]  ;;  %v9397_v37 = vld [vmem:[#allocation9 + $0x60] sm:$0xff]  ;;  %s11835_s18 = scalar_lea.hbm %s11931_s8, %s6448_s22 }
  0xbe   : > { %12346 = vst [vmem:[#allocation21_spill] sm:$0xff] %v9369_v25  ;;  %12347 = vst [vmem:[#allocation22_spill] sm:$0xff] %v9375_v26  ;;  %v9399_v38 = vld [vmem:[#allocation9 + $0x78] sm:$0xff]  ;;  %7688 = vmatpush3.bf16.msra.mxu1 %v9369_v25  ;;  %7497 = vmatpush1.bf16.msra.mxu0 %v9375_v26  ;;  %v9407_v39 = vpack.c.bf16 %v11951_v27, %v11952_v22  ;;  %v11942_v40 = vand.u32 4294901760, %v9383_v31  ;;  %v11939_v41 = vand.u32 4294901760, %v9395_v36  ;;  %v11941_v42 = vand.u32 4294901760, %v9397_v37 }
  0xbf   : > { %12348 = vst [vmem:[#allocation23_spill] sm:$0xff] %v9390_v32  ;;  %v9412_v43 = vld [vmem:[#allocation9 + $0x98] sm:$0xff]  ;;  %v9414_v44 = vld [vmem:[#allocation9 + $0xb0] sm:$0xff]  ;;  %v9416_v45 = vld [vmem:[#allocation9 + $0xa0] sm:$0xff]  ;;  %7689 = vmatprep.subr.bf16.mxu1 %v11965_v4  ;;  %7499 = vmatprep.subr.bf16.mxu0 %v9390_v32  ;;  %v9424_v46 = vpack.c.bf16 %v11945_v33, %v11946_v28  ;;  %v9430_v47 = vpack.c.bf16 %v11943_v35, %v11944_v34  ;;  %v11940_v48 = vand.u32 4294901760, %v9399_v38  ;;  %v12390_v5 = vand.u32 4294901760, %v9324_v2 }
  0xc0   : > { %12349 = vst [vmem:[#allocation24_spill] sm:$0xff] %v9407_v39  ;;  %v11950_v49 = vand.u32 4294901760, %v9412_v43  ;;  %v9434_v50 = vld [vmem:[#allocation9 + $0xb8] sm:$0xff]  ;;  %v9436_v51 = vld [vmem:[#allocation9 + $0x90] sm:$0xff]  ;;  %v9438_v52 = vld [vmem:[#allocation9 + $0xa8] sm:$0xff]  ;;  %v9444_v53 = vpack.c.bf16 %v11939_v41, %v11942_v40  ;;  %v11949_v54 = vand.u32 4294901760, %v9414_v44 }
  0xc1   : > { %12350 = vst [vmem:[#allocation25_spill] sm:$0xff] %v9424_v46  ;;  %12351 = vst [vmem:[#allocation26_spill] sm:$0xff] %v9430_v47  ;;  %v11948_v55 = vand.u32 4294901760, %v9416_v45  ;;  %v11947_v56 = vand.u32 4294901760, %v9434_v50  ;;  %v9449_v57 = vld [vmem:[#allocation9 + $0xc8] sm:$0xff]  ;;  %v9451_v58 = vld [vmem:[#allocation9 + $0xe0] sm:$0xff]  ;;  %v9459_v60 = vpack.c.bf16 %v11940_v48, %v11941_v42 }
  0xc2   : > { %12352 = vst [vmem:[#allocation27_spill] sm:$0xff] %v9444_v53  ;;  %v9453_v59 = vld [vmem:[#allocation9 + $0xd0] sm:$0xff]  ;;  %v11956_v61 = vand.u32 4294901760, %v9436_v51  ;;  %v11955_v62 = vand.u32 4294901760, %v9438_v52  ;;  %v11963_v63 = vand.u32 4294901760, %v9449_v57  ;;  %v9464_v0 = vld [vmem:[#allocation9 + $0xe8] sm:$0xff]  ;;  %7691 = vmatpush3.bf16.msra.mxu1 %v9407_v39  ;;  %7501 = vmatpush1.bf16.msra.mxu0 %v9424_v46  ;;  %v9476_v48 = vpack.c.bf16 %v11949_v54, %v11950_v49 }
  0xc3   : > { %12353 = vst [vmem:[#allocation28_spill] sm:$0xff] %v9459_v60  ;;  %v9466_v11 = vld [vmem:[#allocation9 + $0xc0] sm:$0xff]  ;;  %v9468_v41 = vld [vmem:[#allocation9 + $0xd8] sm:$0xff]  ;;  %v9482_v42 = vpack.c.bf16 %v11947_v56, %v11948_v55  ;;  %v11962_v40 = vand.u32 4294901760, %v9451_v58  ;;  %v11970_v35 = vand.u32 4294901760, %v9453_v59  ;;  %v9488_v33 = vld [vmem:[#allocation9 + $0x110] sm:$0xff]  ;;  %7692 = vmatprep.subr.bf16.mxu1 %v11965_v4  ;;  %7503 = vmatprep.subr.bf16.mxu0 %v9430_v47 }
  0xc4   : > { %12354 = vst [vmem:[#allocation29_spill] sm:$0xff] %v9476_v48  ;;  %v9486_v34 = vld [vmem:[#allocation9 + $0xf8] sm:$0xff]  ;;  %12356 = vst [vmem:[#allocation31_spill] sm:$0xff] %v9488_v33  ;;  %v9490_v28 = vld [vmem:[#allocation9 + $0x100] sm:$0xff]  ;;  %v9498_v56 = vpack.c.bf16 %v11955_v62, %v11956_v61  ;;  %v11967_v55 = vand.u32 4294901760, %v9464_v0  ;;  %v11969_v54 = vand.u32 4294901760, %v9466_v11 }
  0xc5   : > { %12355 = vst [vmem:[#allocation30_spill] sm:$0xff] %v9482_v42  ;;  %12357 = vst [vmem:[#allocation32_spill] sm:$0xff] %v9490_v28  ;;  %v11968_v49 = vand.u32 4294901760, %v9468_v41  ;;  %v9503_v27 = vld [vmem:[#allocation9 + $0x118] sm:$0xff]  ;;  %v9505_v22 = vld [vmem:[#allocation9 + $0xf0] sm:$0xff]  ;;  %v9513_v19 = vpack.c.bf16 %v11962_v40, %v11963_v63  ;;  %v11979_v62 = vand.u32 4294901760, %v9486_v34 }
  0xc6   : > { %12358 = vst [vmem:[#allocation33_spill] sm:$0xff] %v9498_v56  ;;  %12359 = vst [vmem:[#allocation34_spill] sm:$0xff] %v9503_v27  ;;  %v9507_v20 = vld [vmem:[#allocation9 + $0x108] sm:$0xff]  ;;  %v9520_v12 = vld [vmem:[#allocation9 + $0x140] sm:$0xff]  ;;  %v9528_v6 = vpack.c.bf16 %v11967_v55, %v11970_v35  ;;  %7694 = vmatpush3.bf16.msra.mxu1 %v9444_v53  ;;  %7505 = vmatpush1.bf16.msra.mxu0 %v9459_v60  ;;  %v12365_v55 = vand.u32 4294901760, %v9488_v33  ;;  %v12368_v53 = vmov 0.0|0.0  }
  0xc7   : > { %12360 = vst [vmem:[#allocation35_spill] sm:$0xff] %v9505_v22  ;;  %12361 = vst [vmem:[#allocation36_spill] sm:$0xff] %v9513_v19  ;;  %v9518_v13 = vld [vmem:[#allocation9 + $0x128] sm:$0xff]  ;;  %v9522_v8 = vld [vmem:[#allocation9 + $0x130] sm:$0xff]  ;;  %v9534_v40 = vpack.c.bf16 %v11968_v49, %v11969_v54  ;;  %7695 = vmatprep.subr.bf16.mxu1 %v12368_v53  ;;  %7507 = vmatprep.subr.bf16.mxu0 %v9476_v48  ;;  %v12369_v60 = vand.u32 4294901760, %v9490_v28  ;;  %v12373_v48 = vand.u32 4294901760, %v9505_v22 }
  0xc8   : > { %12362 = vst [vmem:[#allocation37_spill] sm:$0xff] %v9518_v13  ;;  %12363 = vst [vmem:[#allocation38_spill] sm:$0xff] %v9528_v6  ;;  %v9538_v14 = vld [vmem:[#allocation9 + $0x148] sm:$0xff]  ;;  %v9540_v4 = vld [vmem:[#allocation9 + $0x120] sm:$0xff]  ;;  %v9550_v49 = vpack.c.bf16 %v12365_v55, %v11979_v62  ;;  %v12370_v55 = vand.u32 4294901760, %v9503_v27  ;;  %v12374_v18 = vand.u32 4294901760, %v9507_v20 }
  0xc9   : > { %12364 = vst [vmem:[#allocation39_spill] sm:$0xff] %v9534_v40  ;;  %v9542_v61 = vld [vmem:[#allocation9 + $0x138] sm:$0xff]  ;;  %v9557_v47 = vld [vmem:[#allocation9 + $0x170] sm:$0xff]  ;;  %v9559_v46 = vld [vmem:[#allocation9 + $0x160] sm:$0xff]  ;;  %v12379_v28 = vand.u32 4294901760, %v9522_v8  ;;  %v12380_v33 = vand.u32 4294901760, %v9538_v14 }
  0xca   : > { %12366 = vst [vmem:[#allocation40_spill] sm:$0xff] %v9550_v49  ;;  %v9555_v63 = vld [vmem:[#allocation9 + $0x158] sm:$0xff]  ;;  %12367 = vst [vmem:[#allocation41_spill] sm:$0xff] %v9557_v47  ;;  %v9567_v62 = vpack.c.bf16 %v12370_v55, %v12369_v60  ;;  %v9574_v26 = vld [vmem:[#allocation9 + $0x150] sm:$0xff]  ;;  %v9582_v25 = vpack.c.bf16 %v12374_v18, %v12373_v48  ;;  %v12376_v60 = vand.u32 4294901760, %v9518_v13  ;;  %v12377_v55 = vand.u32 4294901760, %v9520_v12  ;;  %7697 = vmatpush3.bf16.msra.mxu1 %v9482_v42 }
  0xcb   : > { %v9572_v32 = vld [vmem:[#allocation9 + $0x178] sm:$0xff]  ;;  %12372 = vst [vmem:[#allocation43_spill] sm:$0xff] %v9574_v26  ;;  %v9576_v39 = vld [vmem:[#allocation9 + $0x168] sm:$0xff]  ;;  %v12004_v54 = vand.u32 4294901760, %v9542_v61  ;;  %v491_v27 = vld [vmem:[#allocation2] sm:$0xff]  ;;  %v9596_v22 = vpack.c.bf16 %v12380_v33, %v12379_v28  ;;  %v12011_v18 = vand.u32 4294901760, %v9557_v47  ;;  %7509 = vmatpush1.bf16.msra.mxu0 %v9498_v56  ;;  %7698 = vmatprep.subr.bf16.mxu1 %v12368_v53 }
  0xcc   : > { %12371 = vst [vmem:[#allocation42_spill] sm:$0xff] %v9567_v62  ;;  %12375 = vst [vmem:[#allocation44_spill] sm:$0xff] %v9582_v25  ;;  %v9588_v35 = vpack.c.bf16 %v12377_v55, %v12376_v60  ;;  %v12382_v60 = vand.u32 4294901760, %v9540_v4  ;;  %v12384_v33 = vand.u32 4294901760, %v9322_v1  ;;  %7511 = vmatprep.subr.bf16.mxu0 %v9513_v19  ;;  %v12385_v13 = vand.u32 4294901760, %v9555_v63  ;;  %s6269_s10 = sshll.u32 %s9318_s15, 4  ;;  %s11838_s10 = int_to_ptr.vmem [resolvable:$true] %s6269_s10 }
  0xcd   : > { %12381 = vst [vmem:[#allocation46_spill] sm:$0xff] %v9596_v22  ;;  %v12393_v19 = vand.u32 4294901760, %v9574_v26  ;;  %v12394_v42 = vand.u32 4294901760, %v9576_v39  ;;  %vm2184_vm1 = vcmask 1041409   ;;  %vm2186_vm2 = vcmask 1042434   ;;  %s6240_s16 = scalar_lea.sflag [#allocation14], %s9297_s17 }
  0xce   : > { %12378 = vst [vmem:[#allocation45_spill] sm:$0xff] %v9588_v35  ;;  %v9607_v55 = vpack.c.bf16 %v12004_v54, %v12382_v60  ;;  %v9614_v48 = vsub.f32 %v9322_v1, %v12384_v33  ;;  %v9622_v56 = vpack.c.bf16 %v12011_v18, %v12385_v13  ;;  %v12387_v60 = vand.u32 4294901760, %v9559_v46  ;;  %7700 = vmatpush3.bf16.msra.mxu1 %v9528_v6  ;;  %s9038_s13 = smov [#allocation13]  }
  0xcf   : > { %v12388_v54 = vand.u32 4294901760, %v9572_v32  ;;  %v9633_v1 = vsub.f32 %v9324_v2, %v12390_v5  ;;  %v9635_v33 = vand.u32 4294901760, %v491_v27  ;;  %v9641_v47 = vpack.c.bf16 %v12394_v42, %v12393_v19  ;;  %7513 = vmatpush1.bf16.msra.mxu0 %v9534_v40  ;;  %7701 = vmatprep.subr.bf16.mxu1 %v12368_v53  ;;  %s8920_s11 = sshll.u32 %s9038_s13, 4  ;;  %s8921_s11 = int_to_ptr.vmem [resolvable:$false] %s8920_s11 }
  0xd0   : > { %12383 = vst [vmem:[#allocation47_spill] sm:$0xff] %v9607_v55  ;;  %12386 = vst [vmem:[#allocation48_spill] sm:$0xff] %v9622_v56  ;;  %v12396_v18 = vand.u32 4294901760, %v9326_v3  ;;  %v12399_v19 = vand.u32 4294901760, %v9334_v9  ;;  %v12400_v13 = vand.u32 4294901760, %v9336_v10  ;;  %7515 = vmatprep.subr.bf16.mxu0 %v9550_v49  ;;  %vm2188_vm3 = vcmask 1043459   ;;  %p8923_p7 = scmp.lt.s32.totalorder %s11838_s10, %s8921_s11 }
  0xd1   : > { %v9628_v28 = vpack.c.bf16 %v12388_v54, %v12387_v60  ;;  %12391 = vst [vmem:[#allocation50_spill] sm:$0xff] %v9633_v1  ;;  %12392 = vst [vmem:[#allocation51_spill] sm:$0xff] %v9635_v33  ;;  %v12397_v60 = vand.u32 4294901760, %v9331_v7  ;;  %v12022_v5 = vand.u32 4294901760, %v9633_v1  ;;  %v9656_v26 = vsub.f32 %v491_v27, %v9635_v33  ;;  %s8922_s20 = scalar_lea.vmem %s8921_s11, 512 }
  0xd2   : > { %12395 = vst [vmem:[#allocation52_spill] sm:$0xff] %v9641_v47  ;;  %v9647_v54 = vsub.f32 %v9326_v3, %v12396_v18  ;;  %v9661_v42 = vsub.f32 %v9334_v9, %v12399_v19  ;;  %v9666_v3 = vsub.f32 %v9336_v10, %v12400_v13  ;;  %v12403_v9 = vand.u32 4294901760, %v9343_v15  ;;  %7703 = vmatpush3.bf16.msra.mxu1 %v9567_v62 }
  0xd3   : > { %12389 = vst [vmem:[#allocation49_spill] sm:$0xff] %v9628_v28  ;;  %v9652_v2 = vsub.f32 %v9331_v7, %v12397_v60  ;;  %12398 = vst [vmem:[#allocation53_spill] sm:$0xff] %v9656_v26  ;;  %v12402_v7 = vand.u32 4294901760, %v9614_v48  ;;  %v634_v10 = vsub.f32 %v9633_v1, %v12022_v5  ;;  %v9686_v13 = vand.u32 4294901760, %v9656_v26  ;;  %7517 = vmatpush1.bf16.msra.mxu0 %v9582_v25 }
  0xd4   : > { %12401 = vst [vmem:[#allocation54_spill] sm:$0xff] %v9666_v3  ;;  %v9678_v19 = vsub.f32 %v9343_v15, %v12403_v9  ;;  %v12029_v60 = vand.u32 4294901760, %v9666_v3  ;;  %v12406_v40 = vand.u32 4294901760, %v9647_v54  ;;  %7704 = vmatprep.subr.bf16.mxu1 %v12368_v53  ;;  %7519 = vmatprep.subr.bf16.mxu0 %v9588_v35  ;;  %vm2190_vm4 = vcmask 1044484  }
  0xd5   : > { %v622_v18 = vsub.f32 %v9614_v48, %v12402_v7  ;;  %12405 = vst [vmem:[#allocation56_spill] sm:$0xff] %v9686_v13  ;;  %v12030_v7 = vand.u32 4294901760, %v9661_v42  ;;  %v12407_v9 = vand.u32 4294901760, %v9652_v2  ;;  %v635_v33 = vand.u32 4294901760, %v634_v10 }
  0xd6   : > { %12404 = vst [vmem:[#allocation55_spill] sm:$0xff] %v9678_v19  ;;  %v1461_v15 = vsub.f32 %v9647_v54, %v12406_v40  ;;  %v12037_v6 = vand.u32 4294901760, %v9678_v19  ;;  %v611_v5 = vsub.f32 %v9656_v26, %v9686_v13  ;;  %v12408_v13 = vand.u32 4294901760, %v9345_v16  ;;  %7706 = vmatpush3.bf16.msra.mxu1 %v9596_v22 }
  0xd7   : > { %v623_v27 = vand.u32 4294901760, %v622_v18  ;;  %v1468_v49 = vsub.f32 %v9652_v2, %v12407_v9  ;;  %v628_v1 = vsub.f32 %v9661_v42, %v12030_v7  ;;  %v640_v18 = vsub.f32 %v9666_v3, %v12029_v60  ;;  %7521 = vmatpush1.bf16.msra.mxu0 %v9607_v55  ;;  %7707 = vmatprep.subr.bf16.mxu1 %v12368_v53 }
  0xd8   : > { %v1462_v40 = vand.u32 4294901760, %v1461_v15  ;;  %v646_v10 = vsub.f32 %v9678_v19, %v12037_v6  ;;  %v9713_v26 = vsub.f32 %v9345_v16, %v12408_v13  ;;  %v612_v7 = vand.u32 4294901760, %v611_v5  ;;  %7523 = vmatprep.subr.bf16.mxu0 %v9622_v56 }
  0xd9   : > { %v1469_v9 = vand.u32 4294901760, %v1468_v49  ;;  %v9717_v60 = vpack.c.bf16 %v635_v33, %v623_v27  ;;  %v629_v62 = vand.u32 4294901760, %v628_v1  ;;  %v641_v25 = vand.u32 4294901760, %v640_v18 }
  0xda   : > { %v647_v49 = vand.u32 4294901760, %v646_v10  ;;  %v12044_v3 = vand.u32 4294901760, %v9713_v26  ;;  %v12411_v6 = vand.u32 4294901760, %v9347_v17  ;;  %v12413_v13 = vand.u32 4294901760, %v9358_v21  ;;  %7709 = vmatpush3.bf16.msra.mxu1 %v9628_v28 }
  0xdb   : > { %12409 = vst [vmem:[#allocation57_spill] sm:$0xff] %v9717_v60  ;;  %v9719_v15 = vpack.c.bf16 %v1469_v9, %v1462_v40  ;;  %v9727_v16 = vpack.c.bf16 %v641_v25, %v629_v62  ;;  %v12414_v1 = vand.u32 4294901760, %v9361_v23  ;;  %v12415_v27 = vand.u32 4294901760, %v9363_v24  ;;  %7525 = vmatpush1.bf16.msra.mxu0 %v9641_v47  ;;  %7710 = vmatprep.subr.bf16.mxu1 %v12368_v53 }
  0xdc   : > { %v9725_v19 = vsub.f32 %v9347_v17, %v12411_v6  ;;  %v9732_v33 = vsub.f32 %v9358_v21, %v12413_v13  ;;  %v658_v6 = vsub.f32 %v9713_v26, %v12044_v3  ;;  %v12416_v21 = vand.u32 4294901760, %v9379_v29  ;;  %7527 = vmatprep.subr.bf16.mxu0 %v9717_v60 }
  0xdd   : > { %12410 = vst [vmem:[#allocation58_spill] sm:$0xff] %v9719_v15  ;;  %12412 = vst [vmem:[#allocation59_spill] sm:$0xff] %v9727_v16  ;;  %v9737_v5 = vsub.f32 %v9361_v23, %v12414_v1  ;;  %v9742_v18 = vsub.f32 %v9363_v24, %v12415_v27  ;;  %v12417_v25 = vand.u32 4294901760, %v9381_v30  ;;  %v12418_v10 = vand.u32 4294901760, %v9383_v31  ;;  %7107 = vmatmul.mubr.f32.vlgmr.msra.gmra.mrb[0].mxu1 %v612_v7 }
  0xde   : > { %v12040_v17 = vand.u32 4294901760, %v9725_v19  ;;  %v9753_v23 = vsub.f32 %v9379_v29, %v12416_v21  ;;  %v12041_v62 = vand.u32 4294901760, %v9732_v33  ;;  %v659_v13 = vand.u32 4294901760, %v658_v6  ;;  %613 = vmatmul.mubr.f32.vlgmr.msra.gmra.mrb[0].mxu0 %v612_v7  ;;  %7712 = vmatpush3.bf16.msra.mxu1 %v9719_v15  ;;  %v12452_v15 = vld [vmem:[#allocation34_spill] sm:$0xff] }
  0xdf   : > { %v9758_v24 = vsub.f32 %v9381_v30, %v12417_v25  ;;  %v12042_v40 = vand.u32 4294901760, %v9737_v5  ;;  %v12043_v9 = vand.u32 4294901760, %v9742_v18  ;;  %v9768_v29 = vsub.f32 %v9383_v31, %v12418_v10  ;;  %7529 = vmatpush1.bf16.msra.mxu0 %v9727_v16  ;;  %7713 = vmatprep.subr.bf16.mxu1 %v12368_v53 }
  0xe0   : > { %v1475_v30 = vsub.f32 %v9725_v19, %v12040_v17  ;;  %v12049_v1 = vand.u32 4294901760, %v9753_v23  ;;  %v1482_v21 = vsub.f32 %v9732_v33, %v12041_v62  ;;  %v9787_v10 = vpack.c.bf16 %v659_v13, %v647_v49 }
  0xe1   : > { %v12050_v27 = vand.u32 4294901760, %v9758_v24  ;;  %v652_v25 = vsub.f32 %v9737_v5, %v12042_v40  ;;  %v664_v31 = vsub.f32 %v9742_v18, %v12043_v9  ;;  %v12420_v47 = vand.u32 4294901760, %v9768_v29 }
  0xe2   : > { %12419 = vst [vmem:[#allocation60_spill] sm:$0xff] %v9787_v10  ;;  %v1476_v17 = vand.u32 4294901760, %v1475_v30  ;;  %v670_v62 = vsub.f32 %v9753_v23, %v12049_v1  ;;  %v1483_v9 = vand.u32 4294901760, %v1482_v21  ;;  %v12421_v56 = vand.u32 4294901760, %v9395_v36  ;;  %7531 = vmatprep.subr.bf16.mxu0 %v9787_v10 }
  0xe3   : > { %v682_v40 = vsub.f32 %v9758_v24, %v12050_v27  ;;  %v653_v3 = vand.u32 4294901760, %v652_v25  ;;  %v665_v6 = vand.u32 4294901760, %v664_v31  ;;  %v1489_v49 = vsub.f32 %v9768_v29, %v12420_v47 }
  0xe4   : > { %v671_v13 = vand.u32 4294901760, %v670_v62  ;;  %v9803_v1 = vsub.f32 %v9395_v36, %v12421_v56  ;;  %v12422_v27 = vand.u32 4294901760, %v9397_v37  ;;  %v9810_v21 = vpack.c.bf16 %v1483_v9, %v1476_v17 }
  0xe5   : > { %v683_v30 = vand.u32 4294901760, %v682_v40  ;;  %v9812_v25 = vpack.c.bf16 %v665_v6, %v653_v3  ;;  %v1490_v31 = vand.u32 4294901760, %v1489_v49  ;;  %v12425_v47 = vand.u32 4294901760, %v9399_v38 }
  0xe6   : > { %v9808_v55 = vsub.f32 %v9397_v37, %v12422_v27  ;;  %12423 = vst [vmem:[#allocation61_spill] sm:$0xff] %v9810_v21  ;;  %v12055_v37 = vand.u32 4294901760, %v9803_v1  ;;  %v12427_v7 = vand.u32 4294901760, %v9412_v43  ;;  %v12428_v17 = vand.u32 4294901760, %v9414_v44  ;;  %7715 = vmatpush3.bf16.msra.mxu1 %v9810_v21 }
  0xe7   : > { %12424 = vst [vmem:[#allocation62_spill] sm:$0xff] %v9812_v25  ;;  %v9817_v62 = vsub.f32 %v9399_v38, %v12425_v47  ;;  %v9821_v36 = vpack.c.bf16 %v683_v30, %v671_v13  ;;  %v12429_v9 = vand.u32 4294901760, %v9416_v45  ;;  %v12430_v6 = vand.u32 4294901760, %v9434_v50  ;;  %7533 = vmatpush1.bf16.msra.mxu0 %v9812_v25  ;;  %7716 = vmatprep.subr.bf16.mxu1 %v12368_v53 }
  0xe8   : > { %v12053_v56 = vand.u32 4294901760, %v9808_v55  ;;  %v9828_v3 = vsub.f32 %v9412_v43, %v12427_v7  ;;  %v9836_v40 = vsub.f32 %v9414_v44, %v12428_v17  ;;  %v1496_v49 = vsub.f32 %v9803_v1, %v12055_v37 }
  0xe9   : > { %12426 = vst [vmem:[#allocation63_spill] sm:$0xff] %v9821_v36  ;;  %v12054_v38 = vand.u32 4294901760, %v9817_v62  ;;  %v9841_v27 = vsub.f32 %v9416_v45, %v12429_v9  ;;  %v9846_v43 = vsub.f32 %v9434_v50, %v12430_v6  ;;  %v12431_v30 = vand.u32 4294901760, %v9436_v51  ;;  %7535 = vmatprep.subr.bf16.mxu0 %v9821_v36 }
  0xea   : > { %v676_v13 = vsub.f32 %v9808_v55, %v12053_v56  ;;  %v12056_v44 = vand.u32 4294901760, %v9828_v3  ;;  %v12432_v47 = vmov 0.0   ;;  %v12060_v7 = vand.u32 4294901760, %v9836_v40 }
  0xeb   : > { %v9858_v45 = vsub.f32 %v9436_v51, %v12431_v30  ;;  %7141 = vmatprep.mubr.msk.f32.mxu1 %vm9034_vm0, %v12432_v47  ;;  %843 = vmatprep.mubr.f32.mxu0 %v12432_v47  ;;  %v688_v50 = vsub.f32 %v9817_v62, %v12054_v38  ;;  %v12062_v17 = vand.u32 4294901760, %v9841_v27  ;;  %v12064_v9 = vand.u32 4294901760, %v9846_v43 }
  0xec   : > { %v1497_v51 = vand.u32 4294901760, %v1496_v49  ;;  %v677_v6 = vand.u32 4294901760, %v676_v13  ;;  %v694_v30 = vsub.f32 %v9828_v3, %v12056_v44  ;;  %v706_v37 = vsub.f32 %v9836_v40, %v12060_v7 }
  0xed   : > { %v689_v38 = vand.u32 4294901760, %v688_v50  ;;  %v1503_v49 = vsub.f32 %v9841_v27, %v12062_v17  ;;  %v1510_v13 = vsub.f32 %v9846_v43, %v12064_v9  ;;  %v12434_v25 = vand.u32 4294901760, %v9858_v45 }
  0xee   : > { %v9886_v44 = vpack.c.bf16 %v1497_v51, %v1490_v31  ;;  %v695_v56 = vand.u32 4294901760, %v694_v30  ;;  %v12435_v50 = vand.u32 4294901760, %v9438_v52  ;;  %v707_v16 = vand.u32 4294901760, %v706_v37 }
  0xef   : > { %v700_v36 = vsub.f32 %v9858_v45, %v12434_v25  ;;  %v9896_v7 = vpack.c.bf16 %v689_v38, %v677_v6  ;;  %v1504_v17 = vand.u32 4294901760, %v1503_v49  ;;  %v1511_v60 = vand.u32 4294901760, %v1510_v13 }
  0xf0   : > { %12433 = vst [vmem:[#allocation64_spill] sm:$0xff] %v9886_v44  ;;  %v9894_v10 = vsub.f32 %v9438_v52, %v12435_v50  ;;  %7718 = vmatpush3.bf16.msra.mxu1 %v9886_v44  ;;  %v12437_v51 = vand.u32 4294901760, %v9449_v57  ;;  %v12438_v25 = vand.u32 4294901760, %v9451_v58  ;;  %v9912_v52 = vpack.c.bf16 %v707_v16, %v695_v56 }
  0xf1   : > { %12436 = vst [vmem:[#allocation65_spill] sm:$0xff] %v9896_v7  ;;  %7537 = vmatpush1.bf16.msra.mxu0 %v9896_v7  ;;  %7719 = vmatprep.subr.bf16.mxu1 %v12368_v53  ;;  %v9914_v37 = vpack.c.bf16 %v1511_v60, %v1504_v17  ;;  %v701_v38 = vand.u32 4294901760, %v700_v36  ;;  %v12441_v6 = vand.u32 4294901760, %v9453_v59  ;;  %v12442_v50 = vand.u32 4294901760, %v9464_v0  ;;  %v12450_v7 = vld [vmem:[#allocation32_spill] sm:$0xff] }
  0xf2   : > { %v12067_v31 = vand.u32 4294901760, %v9894_v10  ;;  %v9903_v30 = vsub.f32 %v9449_v57, %v12437_v51  ;;  %v9908_v9 = vsub.f32 %v9451_v58, %v12438_v25  ;;  %12439 = vst [vmem:[#allocation66_spill] sm:$0xff] %v9912_v52  ;;  %7539 = vmatprep.subr.bf16.mxu0 %v9912_v52  ;;  %v12444_v56 = vand.u32 4294901760, %v9468_v41 }
  0xf3   : > { %12440 = vst [vmem:[#allocation67_spill] sm:$0xff] %v9914_v37  ;;  %v9919_v49 = vsub.f32 %v9453_v59, %v12441_v6  ;;  %v9929_v16 = vsub.f32 %v9464_v0, %v12442_v50  ;;  %v12443_v59 = vand.u32 4294901760, %v9466_v11  ;;  %v12445_v51 = vand.u32 4294901760, %v9486_v34 }
  0xf4   : > { %v712_v57 = vsub.f32 %v9894_v10, %v12067_v31  ;;  %v12065_v58 = vand.u32 4294901760, %v9903_v30  ;;  %v12066_v13 = vand.u32 4294901760, %v9908_v9  ;;  %v9941_v17 = vsub.f32 %v9468_v41, %v12444_v56  ;;  %7721 = vmatpush3.bf16.msra.mxu1 %v9914_v37 }
  0xf5   : > { %v12069_v60 = vand.u32 4294901760, %v9919_v49  ;;  %v9936_v36 = vsub.f32 %v9466_v11, %v12443_v59  ;;  %v9946_v25 = vsub.f32 %v9486_v34, %v12445_v51  ;;  %v12070_v50 = vand.u32 4294901760, %v9929_v16  ;;  %7722 = vmatprep.subr.bf16.mxu1 %v12368_v53 }
  0xf6   : > { %v713_v0 = vand.u32 4294901760, %v712_v57  ;;  %v718_v6 = vsub.f32 %v9903_v30, %v12065_v58  ;;  %v730_v11 = vsub.f32 %v9908_v9, %v12066_v13  ;;  %v12074_v57 = vand.u32 4294901760, %v9941_v17 }
  0xf7   : > { %v1517_v34 = vsub.f32 %v9919_v49, %v12069_v60  ;;  %v12072_v41 = vand.u32 4294901760, %v9936_v36  ;;  %v12078_v59 = vand.u32 4294901760, %v9946_v25  ;;  %v1524_v13 = vsub.f32 %v9929_v16, %v12070_v50 }
  0xf8   : > { %v9963_v56 = vpack.c.bf16 %v713_v0, %v701_v38  ;;  %v719_v51 = vand.u32 4294901760, %v718_v6  ;;  %v731_v58 = vand.u32 4294901760, %v730_v11  ;;  %v736_v60 = vsub.f32 %v9941_v17, %v12074_v57  ;;  %v12448_v11 = vld [vmem:[#allocation31_spill] sm:$0xff] }
  0xf9   : > { %v1518_v31 = vand.u32 4294901760, %v1517_v34  ;;  %v724_v52 = vsub.f32 %v9936_v36, %v12072_v41  ;;  %v742_v38 = vsub.f32 %v9946_v25, %v12078_v59  ;;  %v1525_v6 = vand.u32 4294901760, %v1524_v13 }
  0xfa   : > { %12446 = vst [vmem:[#allocation68_spill] sm:$0xff] %v9963_v56  ;;  %7541 = vmatpush1.bf16.msra.mxu0 %v9963_v56  ;;  %v9978_v0 = vpack.c.bf16 %v731_v58, %v719_v51  ;;  %v12449_v50 = vand.u32 4294901760, %v12448_v11  ;;  %v12451_v41 = vand.u32 4294901760, %v12450_v7  ;;  %v737_v44 = vand.u32 4294901760, %v736_v60  ;;  %v12455_v51 = vld [vmem:[#allocation35_spill] sm:$0xff] }
  0xfb   : > { %v725_v57 = vand.u32 4294901760, %v724_v52  ;;  %v743_v21 = vand.u32 4294901760, %v742_v38  ;;  %v12453_v59 = vand.u32 4294901760, %v12452_v15  ;;  %v9996_v58 = vpack.c.bf16 %v1525_v6, %v1518_v31  ;;  %v12459_v31 = vld [vmem:[#allocation37_spill] sm:$0xff] }
  0xfc   : > { %12447 = vst [vmem:[#allocation69_spill] sm:$0xff] %v9978_v0  ;;  %v9983_v34 = vsub.f32 %v12448_v11, %v12449_v50  ;;  %v9988_v37 = vsub.f32 %v12450_v7, %v12451_v41  ;;  %7543 = vmatprep.subr.bf16.mxu0 %v9978_v0  ;;  %v12456_v11 = vand.u32 4294901760, %v12455_v51  ;;  %vm2192_vm5 = vcmask 1045509  }
  0xfd   : > { %v9993_v56 = vsub.f32 %v12452_v15, %v12453_v59  ;;  %12454 = vst [vmem:[#allocation31_spill] sm:$0xff] %v9996_v58  ;;  %v10005_v52 = vpack.c.bf16 %v737_v44, %v725_v57  ;;  %v12458_v15 = vand.u32 4294901760, %v9507_v20  ;;  %v12460_v59 = vand.u32 4294901760, %v12459_v31  ;;  %7724 = vmatpush3.bf16.msra.mxu1 %v9996_v58 }
  0xfe   : > { %v12081_v13 = vand.u32 4294901760, %v9983_v34  ;;  %v12080_v50 = vand.u32 4294901760, %v9988_v37  ;;  %v10003_v7 = vsub.f32 %v12455_v51, %v12456_v11  ;;  %7725 = vmatprep.subr.bf16.mxu1 %v12368_v53  ;;  %vm2194_vm6 = vcmask 1046534  }
  0xff   : > { %12457 = vst [vmem:[#allocation32_spill] sm:$0xff] %v10005_v52  ;;  %v12084_v60 = vand.u32 4294901760, %v9993_v56  ;;  %v10011_v41 = vsub.f32 %v9507_v20, %v12458_v15  ;;  %v10016_v38 = vsub.f32 %v12459_v31, %v12460_v59  ;;  %v12461_v20 = vand.u32 4294901760, %v9520_v12  ;;  %7545 = vmatpush1.bf16.msra.mxu0 %v10005_v52 }
 0x100   : > { %v754_v6 = vsub.f32 %v9983_v34, %v12081_v13  ;;  %v1531_v44 = vsub.f32 %v9988_v37, %v12080_v50  ;;  %v12086_v57 = vand.u32 4294901760, %v10003_v7  ;;  %v12462_v59 = vand.u32 4294901760, %v9522_v8 }
 0x101   : > { %v10029_v51 = vsub.f32 %v9520_v12, %v12461_v20  ;;  %v1538_v11 = vsub.f32 %v9993_v56, %v12084_v60  ;;  %v12089_v15 = vand.u32 4294901760, %v10011_v41  ;;  %v12092_v31 = vand.u32 4294901760, %v10016_v38 }
 0x102   : > { %v10041_v50 = vsub.f32 %v9522_v8, %v12462_v59  ;;  %v755_v13 = vand.u32 4294901760, %v754_v6  ;;  %v1532_v12 = vand.u32 4294901760, %v1531_v44  ;;  %v748_v20 = vsub.f32 %v10003_v7, %v12086_v57 }
 0x103   : > { %v12093_v52 = vand.u32 4294901760, %v10029_v51  ;;  %v1539_v0 = vand.u32 4294901760, %v1538_v11  ;;  %v760_v60 = vsub.f32 %v10011_v41, %v12089_v15  ;;  %v766_v58 = vsub.f32 %v10016_v38, %v12092_v31 }
 0x104   : > { %v12094_v8 = vand.u32 4294901760, %v10041_v50  ;;  %v10054_v59 = vpack.c.bf16 %v755_v13, %v743_v21  ;;  %v749_v6 = vand.u32 4294901760, %v748_v20  ;;  %v12464_v57 = vand.u32 4294901760, %v9538_v14 }
 0x105   : > { %v778_v44 = vsub.f32 %v10029_v51, %v12093_v52  ;;  %v10064_v28 = vpack.c.bf16 %v1539_v0, %v1532_v12  ;;  %v761_v15 = vand.u32 4294901760, %v760_v60  ;;  %v767_v35 = vand.u32 4294901760, %v766_v58 }
 0x106   : > { %12463 = vst [vmem:[#allocation34_spill] sm:$0xff] %v10054_v59  ;;  %v10062_v11 = vsub.f32 %v9538_v14, %v12464_v57  ;;  %v1545_v31 = vsub.f32 %v10041_v50, %v12094_v8  ;;  %7547 = vmatprep.subr.bf16.mxu0 %v10054_v59  ;;  %v12466_v20 = vand.u32 4294901760, %v9540_v4  ;;  %v12467_v14 = vand.u32 4294901760, %v9542_v61 }
 0x107   : > { %12465 = vst [vmem:[#allocation35_spill] sm:$0xff] %v10064_v28  ;;  %v779_v21 = vand.u32 4294901760, %v778_v44  ;;  %7727 = vmatpush3.bf16.msra.mxu1 %v10064_v28  ;;  %v10082_v58 = vpack.c.bf16 %v761_v15, %v749_v6  ;;  %v12469_v57 = vand.u32 4294901760, %v9555_v63  ;;  %v12470_v44 = vld [vmem:[#allocation41_spill] sm:$0xff]  ;;  %v12475_v6 = vld [vmem:[#allocation43_spill] sm:$0xff]  ;;  %vm2196_vm7 = vcmask 1047559  }
 0x108   : > { %v12095_v13 = vand.u32 4294901760, %v10062_v11  ;;  %v10074_v52 = vsub.f32 %v9540_v4, %v12466_v20  ;;  %v10079_v0 = vsub.f32 %v9542_v61, %v12467_v14  ;;  %v1546_v60 = vand.u32 4294901760, %v1545_v31  ;;  %7728 = vmatprep.subr.bf16.mxu1 %v12368_v53 }
 0x109   : > { %12468 = vst [vmem:[#allocation37_spill] sm:$0xff] %v10082_v58  ;;  %v10087_v12 = vsub.f32 %v9555_v63, %v12469_v57  ;;  %v12471_v8 = vand.u32 4294901760, %v12470_v44  ;;  %v10095_v20 = vpack.c.bf16 %v779_v21, %v767_v35  ;;  %7549 = vmatpush1.bf16.msra.mxu0 %v10082_v58  ;;  %v12474_v35 = vand.u32 4294901760, %v9572_v32 }
 0x10a   : > { %v1552_v61 = vsub.f32 %v10062_v11, %v12095_v13  ;;  %v12097_v15 = vand.u32 4294901760, %v10074_v52  ;;  %v12099_v31 = vand.u32 4294901760, %v10079_v0  ;;  %v12476_v63 = vand.u32 4294901760, %v12475_v6 }
 0x10b   : > { %v10092_v4 = vsub.f32 %v12470_v44, %v12471_v8  ;;  %12472 = vst [vmem:[#allocation41_spill] sm:$0xff] %v10095_v20  ;;  %v12473_v8 = vand.u32 4294901760, %v9559_v46  ;;  %v10113_v21 = vsub.f32 %v9572_v32, %v12474_v35  ;;  %7551 = vmatprep.subr.bf16.mxu0 %v10095_v20  ;;  %vm2199_vm8 = vcmask 64512  }
 0x10c   : > { %v1553_v57 = vand.u32 4294901760, %v1552_v61  ;;  %v772_v44 = vsub.f32 %v10074_v52, %v12097_v15  ;;  %v784_v13 = vsub.f32 %v10079_v0, %v12099_v31 }
 0x10d   : > { %v10108_v14 = vsub.f32 %v9559_v46, %v12473_v8  ;;  %v10125_v46 = vsub.f32 %v12475_v6, %v12476_v63  ;;  %v12478_v8 = vand.u32 4294901760, %v10087_v12  ;;  %v12479_v35 = vand.u32 4294901760, %v10092_v4 }
 0x10e   : > { %v12105_v15 = vand.u32 4294901760, %v10113_v21  ;;  %v10135_v58 = vpack.c.bf16 %v1553_v57, %v1546_v60  ;;  %v773_v31 = vand.u32 4294901760, %v772_v44  ;;  %v785_v59 = vand.u32 4294901760, %v784_v13 }
 0x10f   : > { %12477 = vst [vmem:[#allocation43_spill] sm:$0xff] %v10125_v46  ;;  %v790_v32 = vsub.f32 %v10087_v12, %v12478_v8  ;;  %v802_v61 = vsub.f32 %v10092_v4, %v12479_v35  ;;  %v12106_v20 = vand.u32 4294901760, %v10108_v14  ;;  %v12104_v28 = vand.u32 4294901760, %v10125_v46 }
 0x110   : > { %12480 = vst [vmem:[#allocation70_spill] sm:$0xff] %v10135_v58  ;;  %v1566_v35 = vsub.f32 %v10113_v21, %v12105_v15  ;;  %7730 = vmatpush3.bf16.msra.mxu1 %v10135_v58  ;;  %v10145_v22 = vpack.c.bf16 %v785_v59, %v773_v31  ;;  %v12482_v60 = vand.u32 4294901760, %v9576_v39 }
 0x111   : > { %v791_v63 = vand.u32 4294901760, %v790_v32  ;;  %v803_v6 = vand.u32 4294901760, %v802_v61  ;;  %v1559_v8 = vsub.f32 %v10108_v14, %v12106_v20  ;;  %v796_v13 = vsub.f32 %v10125_v46, %v12104_v28  ;;  %7731 = vmatprep.subr.bf16.mxu1 %v12368_v53 }
 0x112   : > { %12481 = vst [vmem:[#allocation71_spill] sm:$0xff] %v10145_v22  ;;  %v10153_v57 = vsub.f32 %v9576_v39, %v12482_v60  ;;  %v1567_v61 = vand.u32 4294901760, %v1566_v35  ;;  %7553 = vmatpush1.bf16.msra.mxu0 %v10145_v22  ;;  %v10167_v39 = vpack.c.bf16 %v9652_v2, %v9647_v54  ;;  %v12489_v35 = vld [vmem:[#allocation54_spill] sm:$0xff]  ;;  %v10195_v22 = vpack.c.bf16 %v9758_v24, %v9753_v23 }
 0x113   : > { %v10156_v44 = vpack.c.bf16 %v803_v6, %v791_v63  ;;  %v1560_v32 = vand.u32 4294901760, %v1559_v8  ;;  %v797_v28 = vand.u32 4294901760, %v796_v13  ;;  %v12487_v6 = vld [vmem:[#allocation50_spill] sm:$0xff]  ;;  %v10176_v60 = vpack.c.bf16 %v12489_v35, %v9661_v42  ;;  %v12491_v13 = vld [vmem:[#allocation55_spill] sm:$0xff] }
 0x114   : > { %12483 = vst [vmem:[#allocation72_spill] sm:$0xff] %v10153_v57  ;;  %v807_v59 = vand.u32 4294901760, %v10153_v57  ;;  %12486 = vst [vmem:[#allocation75_spill] sm:$0xff] %v10167_v39  ;;  %v10172_v8 = vpack.c.bf16 %v12487_v6, %v9614_v48  ;;  %v12505_v46 = vand.u32 4294901760, %v9661_v42  ;;  %v12514_v42 = vand.u32 4294901760, %v9737_v5 }
 0x115   : > { %12484 = vst [vmem:[#allocation73_spill] sm:$0xff] %v10156_v44  ;;  %7555 = vmatprep.subr.bf16.mxu0 %v10156_v44  ;;  %v10161_v31 = vpack.c.bf16 %v1567_v61, %v1560_v32  ;;  %12490 = vst [vmem:[#allocation54_spill] sm:$0xff] %v10176_v60  ;;  %v10180_v32 = vpack.c.bf16 %v9713_v26, %v12491_v13  ;;  %v10184_v61 = vpack.c.bf16 %v9732_v33, %v9725_v19 }
 0x116   : > { %v808_v15 = vsub.f32 %v10153_v57, %v807_v59  ;;  %12488 = vst [vmem:[#allocation50_spill] sm:$0xff] %v10172_v8  ;;  %v10191_v44 = vpack.c.bf16 %v9742_v18, %v9737_v5  ;;  %12497 = vst [vmem:[#allocation79_spill] sm:$0xff] %v10195_v22  ;;  %v12502_v57 = vand.u32 4294901760, %v9647_v54  ;;  %v12511_v54 = vand.u32 4294901760, %v9725_v19 }
 0x117   : > { %12485 = vst [vmem:[#allocation74_spill] sm:$0xff] %v10161_v31  ;;  %7733 = vmatpush3.bf16.msra.mxu1 %v10161_v31  ;;  %12492 = vst [vmem:[#allocation55_spill] sm:$0xff] %v10180_v32  ;;  %v10199_v31 = vpack.c.bf16 %v9803_v1, %v9768_v29  ;;  %v12520_v19 = vand.u32 4294901760, %v9768_v29  ;;  %v12523_v5 = vand.u32 4294901760, %v9808_v55  ;;  %v12530_v29 = vand.u32 4294901760, %v9846_v43 }
 0x118   : > { %v809_v63 = vand.u32 4294901760, %v808_v15  ;;  %7734 = vmatprep.subr.bf16.mxu1 %v12368_v53  ;;  %12493 = vst [vmem:[#allocation76_spill] sm:$0xff] %v10184_v61  ;;  %v12495_v15 = vld [vmem:[#allocation51_spill] sm:$0xff]  ;;  %12496 = vst [vmem:[#allocation78_spill] sm:$0xff] %v10191_v44  ;;  %v12503_v44 = vand.u32 4294901760, %v9652_v2  ;;  %v12512_v2 = vand.u32 4294901760, %v9732_v33 }
 0x119   : > { %12498 = vst [vmem:[#allocation80_spill] sm:$0xff] %v10199_v31  ;;  %v12506_v31 = vand.u32 4294901760, %v12489_v35  ;;  %v12521_v33 = vand.u32 4294901760, %v9803_v1  ;;  %v12532_v1 = vand.u32 4294901760, %v9858_v45 }
 0x11a   : > { %v10186_v20 = vpack.c.bf16 %v809_v63, %v797_v28  ;;  %7142 = vmatmul.mubr.f32.vlgmr.msra.gmra.mrb[0].mxu1 %v12495_v15  ;;  %v12499_v28 = vand.u32 4294901760, %v9614_v48  ;;  %v12500_v63 = vand.u32 4294901760, %v12487_v6  ;;  %v10214_v22 = vpack.c.bf16 %v12503_v44, %v12502_v57 }
 0x11b   : > { %7736 = vmatpush3.bf16.msra.mxu1 %v10167_v39  ;;  %7176 = vmatprep.mubr.msk.f32.mxu1 %vm9034_vm0, %v12432_v47  ;;  %v10220_v39 = vpack.c.bf16 %v12506_v31, %v12505_v46  ;;  %v12508_v48 = vand.u32 4294901760, %v12491_v13  ;;  %v12509_v6 = vand.u32 4294901760, %v9713_v26  ;;  %v10234_v57 = vpack.c.bf16 %v12512_v2, %v12511_v54 }
 0x11c   : > { %12494 = vst [vmem:[#allocation77_spill] sm:$0xff] %v10186_v20  ;;  %v10208_v58 = vpack.c.bf16 %v12500_v63, %v12499_v28  ;;  %12504 = vst [vmem:[#allocation82_spill] sm:$0xff] %v10214_v22  ;;  %7557 = vmatpush1.bf16.msra.mxu0 %v10186_v20  ;;  %7737 = vmatprep.subr.bf16.mxu1 %v12368_v53  ;;  %v12515_v46 = vand.u32 4294901760, %v9742_v18  ;;  %v12517_v31 = vand.u32 4294901760, %v9753_v23  ;;  %v12518_v26 = vand.u32 4294901760, %v9758_v24 }
 0x11d   : > { %12507 = vst [vmem:[#allocation83_spill] sm:$0xff] %v10220_v39  ;;  %v10228_v28 = vpack.c.bf16 %v12509_v6, %v12508_v48  ;;  %12513 = vst [vmem:[#allocation85_spill] sm:$0xff] %v10234_v57  ;;  %7559 = vmatprep.subr.bf16.mxu0 %v10172_v8  ;;  %v10253_v13 = vpack.c.bf16 %v12521_v33, %v12520_v19  ;;  %v12524_v18 = vand.u32 4294901760, %v9817_v62  ;;  %v12526_v48 = vand.u32 4294901760, %v9828_v3 }
 0x11e   : > { %12501 = vst [vmem:[#allocation81_spill] sm:$0xff] %v10208_v58  ;;  %v10240_v44 = vpack.c.bf16 %v12515_v46, %v12514_v42  ;;  %v10247_v35 = vpack.c.bf16 %v12518_v26, %v12517_v31  ;;  %v12527_v23 = vand.u32 4294901760, %v9836_v40  ;;  %v12529_v24 = vand.u32 4294901760, %v9841_v27 }
 0x11f   : > { %12510 = vst [vmem:[#allocation84_spill] sm:$0xff] %v10228_v28  ;;  %12522 = vst [vmem:[#allocation88_spill] sm:$0xff] %v10253_v13  ;;  %v10259_v63 = vpack.c.bf16 %v12524_v18, %v12523_v5  ;;  %v12533_v2 = vand.u32 4294901760, %v9894_v10  ;;  %v12535_v46 = vand.u32 4294901760, %v9903_v30  ;;  %v12536_v31 = vand.u32 4294901760, %v9908_v9  ;;  %845 = vmatmul.mubr.f32.vlgmr.msra.gmra.mrb[0].mxu0 %v12495_v15  ;;  %7739 = vmatpush3.bf16.msra.mxu1 %v10184_v61 }
 0x120   : > { %12516 = vst [vmem:[#allocation86_spill] sm:$0xff] %v10240_v44  ;;  %12519 = vst [vmem:[#allocation87_spill] sm:$0xff] %v10247_v35  ;;  %v10265_v6 = vpack.c.bf16 %v12527_v23, %v12526_v48  ;;  %v10271_v54 = vpack.c.bf16 %v12530_v29, %v12529_v24  ;;  %v12538_v19 = vand.u32 4294901760, %v9919_v49  ;;  %v12539_v33 = vand.u32 4294901760, %v9929_v16  ;;  %7561 = vmatpush1.bf16.msra.mxu0 %v10176_v60 }
 0x121   : > { %12525 = vst [vmem:[#allocation89_spill] sm:$0xff] %v10259_v63  ;;  %v10277_v42 = vpack.c.bf16 %v12533_v2, %v12532_v1  ;;  %v10283_v26 = vpack.c.bf16 %v12536_v31, %v12535_v46  ;;  %v12541_v18 = vand.u32 4294901760, %v9936_v36  ;;  %v12542_v48 = vand.u32 4294901760, %v9941_v17  ;;  %7740 = vmatprep.subr.bf16.mxu1 %v12368_v53  ;;  %7563 = vmatprep.subr.bf16.mxu0 %v10180_v32  ;;  %v12568_v32 = vld [vmem:[#allocation43_spill] sm:$0xff] }
 0x122   : > { %12528 = vst [vmem:[#allocation90_spill] sm:$0xff] %v10265_v6  ;;  %12531 = vst [vmem:[#allocation91_spill] sm:$0xff] %v10271_v54  ;;  %v10289_v5 = vpack.c.bf16 %v12539_v33, %v12538_v19  ;;  %v12544_v24 = vand.u32 4294901760, %v9946_v25  ;;  %v12545_v29 = vand.u32 4294901760, %v9983_v34  ;;  %v12547_v2 = vand.u32 4294901760, %v9988_v37  ;;  %979 = vmatprep.mubr.f32.mxu0 %v12432_v47 }
 0x123   : > { %12534 = vst [vmem:[#allocation92_spill] sm:$0xff] %v10277_v42  ;;  %12537 = vst [vmem:[#allocation93_spill] sm:$0xff] %v10283_v26  ;;  %v10297_v23 = vpack.c.bf16 %v12542_v48, %v12541_v18  ;;  %v12548_v46 = vand.u32 4294901760, %v9993_v56  ;;  %v12550_v19 = vand.u32 4294901760, %v10003_v7  ;;  %v12551_v33 = vand.u32 4294901760, %v10011_v41 }
 0x124   : > { %12540 = vst [vmem:[#allocation94_spill] sm:$0xff] %v10289_v5  ;;  %v10303_v1 = vpack.c.bf16 %v12545_v29, %v12544_v24  ;;  %v12553_v48 = vand.u32 4294901760, %v10016_v38  ;;  %v12554_v24 = vand.u32 4294901760, %v10029_v51  ;;  %v12556_v8 = vand.u32 4294901760, %v10041_v50 }
 0x125   : > { %12543 = vst [vmem:[#allocation95_spill] sm:$0xff] %v10297_v23  ;;  %v10309_v31 = vpack.c.bf16 %v12548_v46, %v12547_v2  ;;  %v10317_v18 = vpack.c.bf16 %v12551_v33, %v12550_v19  ;;  %v12557_v2 = vand.u32 4294901760, %v10062_v11  ;;  %v12559_v60 = vand.u32 4294901760, %v10074_v52 }
 0x126   : > { %12546 = vst [vmem:[#allocation96_spill] sm:$0xff] %v10303_v1  ;;  %v10323_v29 = vpack.c.bf16 %v12554_v24, %v12553_v48  ;;  %v12560_v19 = vand.u32 4294901760, %v10079_v0  ;;  %v12562_v61 = vand.u32 4294901760, %v10087_v12  ;;  %v12563_v48 = vand.u32 4294901760, %v10092_v4 }
 0x127   : > { %12549 = vst [vmem:[#allocation97_spill] sm:$0xff] %v10309_v31  ;;  %12552 = vst [vmem:[#allocation98_spill] sm:$0xff] %v10317_v18  ;;  %v10329_v46 = vpack.c.bf16 %v12557_v2, %v12556_v8  ;;  %v12565_v20 = vand.u32 4294901760, %v10108_v14  ;;  %v12566_v8 = vand.u32 4294901760, %v10113_v21  ;;  %v12569_v15 = vand.u32 4294901760, %v12568_v32  ;;  %v12571_v18 = vld [vmem:[#allocation80_spill] sm:$0xff] }
 0x128   : > { %12555 = vst [vmem:[#allocation99_spill] sm:$0xff] %v10323_v29  ;;  %v10337_v33 = vpack.c.bf16 %v12560_v19, %v12559_v60  ;;  %v10343_v24 = vpack.c.bf16 %v12563_v48, %v12562_v61  ;;  %7742 = vmatpush3.bf16.msra.mxu1 %v12571_v18  ;;  %v10358_v60 = vpack.c.bf16 %v9846_v43, %v9841_v27  ;;  %v12573_v19 = vld [vmem:[#allocation78_spill] sm:$0xff] }
 0x129   : > { %12558 = vst [vmem:[#allocation100_spill] sm:$0xff] %v10329_v46  ;;  %v10349_v2 = vpack.c.bf16 %v12566_v8, %v12565_v20  ;;  %v10353_v29 = vpack.c.bf16 %v807_v59, %v12569_v15  ;;  %7565 = vmatpush1.bf16.msra.mxu0 %v12573_v19  ;;  %v10363_v61 = vpack.c.bf16 %v9817_v62, %v9808_v55  ;;  %v12575_v20 = vld [vmem:[#allocation79_spill] sm:$0xff]  ;;  %v12608_v15 = vld [vmem:[#allocation40_spill] sm:$0xff]  ;;  %v12609_v48 = vld [vmem:[#allocation46_spill] sm:$0xff] }
 0x12a   : > { %12561 = vst [vmem:[#allocation101_spill] sm:$0xff] %v10337_v33  ;;  %12564 = vst [vmem:[#allocation102_spill] sm:$0xff] %v10343_v24  ;;  %7743 = vmatprep.subr.bf16.mxu1 %v12368_v53  ;;  %7567 = vmatprep.subr.bf16.mxu0 %v12575_v20  ;;  %v10369_v59 = vpack.c.bf16 %v9836_v40, %v9828_v3  ;;  %v10374_v27 = vpack.c.bf16 %v9929_v16, %v9919_v49  ;;  %v12589_v16 = vld [vmem:[#allocation72_spill] sm:$0xff] }
 0x12b   : > { %12567 = vst [vmem:[#allocation103_spill] sm:$0xff] %v10349_v2  ;;  %12570 = vst [vmem:[#allocation43_spill] sm:$0xff] %v10353_v29  ;;  %v10379_v55 = vpack.c.bf16 %v9894_v10, %v9858_v45  ;;  %v10385_v62 = vpack.c.bf16 %v9908_v9, %v9903_v30  ;;  %v10390_v3 = vpack.c.bf16 %v9993_v56, %v9988_v37  ;;  %v12593_v56 = vld [vmem:[#allocation20_spill] sm:$0xff] }
 0x12c   : > { %12572 = vst [vmem:[#allocation104_spill] sm:$0xff] %v10358_v60  ;;  %12574 = vst [vmem:[#allocation105_spill] sm:$0xff] %v10363_v61  ;;  %7745 = vmatpush3.bf16.msra.mxu1 %v10358_v60  ;;  %v10395_v10 = vpack.c.bf16 %v9941_v17, %v9936_v36  ;;  %v10401_v40 = vpack.c.bf16 %v9983_v34, %v9946_v25  ;;  %v10406_v43 = vpack.c.bf16 %v10062_v11, %v10041_v50  ;;  %v12591_v17 = vld [vmem:[#allocation53_spill] sm:$0xff]  ;;  %v12594_v34 = vld [vmem:[#allocation24_spill] sm:$0xff] }
 0x12d   : > { %12576 = vst [vmem:[#allocation106_spill] sm:$0xff] %v10369_v59  ;;  %12577 = vst [vmem:[#allocation107_spill] sm:$0xff] %v10374_v27  ;;  %7569 = vmatpush1.bf16.msra.mxu0 %v10363_v61  ;;  %7746 = vmatprep.subr.bf16.mxu1 %v12368_v53  ;;  %v10411_v45 = vpack.c.bf16 %v10011_v41, %v10003_v7  ;;  %v10417_v9 = vpack.c.bf16 %v10029_v51, %v10016_v38  ;;  %v12592_v25 = vld [vmem:[#allocation21_spill] sm:$0xff]  ;;  %v12595_v50 = vld [vmem:[#allocation22_spill] sm:$0xff] }
 0x12e   : > { %12578 = vst [vmem:[#allocation108_spill] sm:$0xff] %v10379_v55  ;;  %7571 = vmatprep.subr.bf16.mxu0 %v10369_v59  ;;  %12579 = vst [vmem:[#allocation109_spill] sm:$0xff] %v10385_v62  ;;  %v10422_v30 = vpack.c.bf16 %v10113_v21, %v10108_v14  ;;  %v10427_v37 = vpack.c.bf16 %v10079_v0, %v10074_v52  ;;  %v10433_v49 = vpack.c.bf16 %v10092_v4, %v10087_v12  ;;  %v12596_v7 = vld [vmem:[#allocation23_spill] sm:$0xff]  ;;  %v12598_v41 = vld [vmem:[#allocation25_spill] sm:$0xff] }
 0x12f   : > { %12580 = vst [vmem:[#allocation110_spill] sm:$0xff] %v10390_v3  ;;  %12581 = vst [vmem:[#allocation111_spill] sm:$0xff] %v10395_v10  ;;  %v10439_v36 = vpack.c.bf16 %v12589_v16, %v12568_v32  ;;  %v12597_v52 = vld [vmem:[#allocation27_spill] sm:$0xff]  ;;  %v12599_v38 = vld [vmem:[#allocation26_spill] sm:$0xff] }
 0x130   : > { %7748 = vmatpush3.bf16.msra.mxu1 %v10374_v27  ;;  %12582 = vst [vmem:[#allocation112_spill] sm:$0xff] %v10401_v40  ;;  %12583 = vst [vmem:[#allocation113_spill] sm:$0xff] %v10406_v43  ;;  %v12600_v51 = vld [vmem:[#allocation30_spill] sm:$0xff]  ;;  %v12601_v11 = vld [vmem:[#allocation28_spill] sm:$0xff] }
 0x131   : > { %7573 = vmatpush1.bf16.msra.mxu0 %v10379_v55  ;;  %7749 = vmatprep.subr.bf16.mxu1 %v12368_v53  ;;  %12584 = vst [vmem:[#allocation114_spill] sm:$0xff] %v10411_v45  ;;  %12585 = vst [vmem:[#allocation115_spill] sm:$0xff] %v10417_v9  ;;  %v12602_v0 = vld [vmem:[#allocation29_spill] sm:$0xff]  ;;  %v12603_v12 = vld [vmem:[#allocation38_spill] sm:$0xff] }
 0x132   : > { %7575 = vmatprep.subr.bf16.mxu0 %v10385_v62  ;;  %12586 = vst [vmem:[#allocation116_spill] sm:$0xff] %v10422_v30  ;;  %12587 = vst [vmem:[#allocation117_spill] sm:$0xff] %v10427_v37  ;;  %v12604_v4 = vld [vmem:[#allocation33_spill] sm:$0xff]  ;;  %v12605_v14 = vld [vmem:[#allocation36_spill] sm:$0xff] }
 0x133   : > { %12588 = vst [vmem:[#allocation118_spill] sm:$0xff] %v10433_v49  ;;  %12590 = vst [vmem:[#allocation72_spill] sm:$0xff] %v10439_v36  ;;  %v12606_v21 = vld [vmem:[#allocation42_spill] sm:$0xff]  ;;  %v12607_v32 = vld [vmem:[#allocation39_spill] sm:$0xff] }
 0x134   : > { %7751 = vmatpush3.bf16.msra.mxu1 %v10390_v3  ;;  %v12610_v8 = vld [vmem:[#allocation44_spill] sm:$0xff]  ;;  %v12611_v16 = vld [vmem:[#allocation45_spill] sm:$0xff] }
 0x135   : > { %7577 = vmatpush1.bf16.msra.mxu0 %v10395_v10  ;;  %7752 = vmatprep.subr.bf16.mxu1 %v12368_v53 }
 0x136   : > { %7579 = vmatprep.subr.bf16.mxu0 %v10401_v40 }
 0x138   : > { %7754 = vmatpush3.bf16.msra.mxu1 %v10406_v43 }
 0x139   : > { %7581 = vmatpush1.bf16.msra.mxu0 %v10411_v45  ;;  %7755 = vmatprep.subr.bf16.mxu1 %v12368_v53 }
 0x13a   : > { %7583 = vmatprep.subr.bf16.mxu0 %v10417_v9  ;;  %v12616_v9 = vld [vmem:[#allocation52_spill] sm:$0xff] }
 0x13c   : > { %7757 = vmatpush3.bf16.msra.mxu1 %v10422_v30  ;;  %v10616_v30 = vld [vmem:[#allocation8 + $0x28] sm:$0xff] }
 0x13d   : > { %7585 = vmatpush1.bf16.msra.mxu0 %v10427_v37  ;;  %7758 = vmatprep.subr.bf16.mxu1 %v12368_v53  ;;  %v12615_v37 = vld [vmem:[#allocation56_spill] sm:$0xff]  ;;  %12627 = vst [vmem:[#allocation123_spill] sm:$0xff] %v10616_v30 }
 0x13e   : > { %7587 = vmatprep.subr.bf16.mxu0 %v10433_v49  ;;  %v12614_v49 = vld [vmem:[#allocation48_spill] sm:$0xff] }
 0x13f   : > { %7177 = vmatmul.mubr.f32.vlgmr.msra.gmra.mrb[0].mxu1 %v12591_v17 }
 0x140   : > { %7760 = vmatpush3.bf16.msra.mxu1 %v12592_v25  ;;  %7211 = vmatprep.mubr.msk.f32.mxu1 %vm9034_vm0, %v12432_v47 }
 0x141   : > { %7589 = vmatpush1.bf16.msra.mxu0 %v10439_v36  ;;  %7761 = vmatprep.subr.bf16.mxu1 %v12368_v53  ;;  %v12613_v36 = vld [vmem:[#allocation47_spill] sm:$0xff] }
 0x142   : > { %7591 = vmatprep.subr.bf16.mxu0 %v12593_v56 }
 0x144   : > { %982 = vmatmul.mubr.f32.vlgmr.msra.gmra.mrb[0].mxu0 %v12591_v17  ;;  %7763 = vmatpush3.bf16.msra.mxu1 %v12594_v34  ;;  %v12612_v17 = vld [vmem:[#allocation49_spill] sm:$0xff] }
 0x145   : > { %7593 = vmatpush1.bf16.msra.mxu0 %v12595_v50  ;;  %7764 = vmatprep.subr.bf16.mxu1 %v12368_v53 }
 0x146   : > { %7595 = vmatprep.subr.bf16.mxu0 %v12596_v7  ;;  %1084 = vmatprep.mubr.f32.mxu0 %v12432_v47 }
 0x148   : > { %7766 = vmatpush3.bf16.msra.mxu1 %v12597_v52 }
 0x149   : > { %7597 = vmatpush1.bf16.msra.mxu0 %v12598_v41  ;;  %7767 = vmatprep.subr.bf16.mxu1 %v12368_v53 }
 0x14a   : > { %7599 = vmatprep.subr.bf16.mxu0 %v12599_v38 }
 0x14c   : > { %7769 = vmatpush3.bf16.msra.mxu1 %v12600_v51 }
 0x14d   : > { %7601 = vmatpush1.bf16.msra.mxu0 %v12601_v11  ;;  %7770 = vmatprep.subr.bf16.mxu1 %v12368_v53 }
 0x14e   : > { %7603 = vmatprep.subr.bf16.mxu0 %v12602_v0 }
 0x150   : > { %7772 = vmatpush3.bf16.msra.mxu1 %v12603_v12 }
 0x151   : > { %7605 = vmatpush1.bf16.msra.mxu0 %v12604_v4  ;;  %7773 = vmatprep.subr.bf16.mxu1 %v12368_v53 }
 0x152   : > { %7607 = vmatprep.subr.bf16.mxu0 %v12605_v14 }
 0x154   : > { %7775 = vmatpush3.bf16.msra.mxu1 %v12606_v21 }
 0x155   : > { %7609 = vmatpush1.bf16.msra.mxu0 %v12607_v32  ;;  %7776 = vmatprep.subr.bf16.mxu1 %v12368_v53 }
 0x156   : > { %7611 = vmatprep.subr.bf16.mxu0 %v12608_v15 }
 0x158   : > { %7778 = vmatpush3.bf16.msra.mxu1 %v12609_v48 }
 0x159   : > { %7613 = vmatpush1.bf16.msra.mxu0 %v12610_v8  ;;  %7779 = vmatprep.subr.bf16.mxu1 %v12368_v53 }
 0x15a   : > { %7615 = vmatprep.subr.bf16.mxu0 %v12611_v16 }
 0x15c   : > { %7781 = vmatpush3.bf16.msra.mxu1 %v12612_v17 }
 0x15d   : > { %7617 = vmatpush1.bf16.msra.mxu0 %v12613_v36  ;;  %7782 = vmatprep.subr.bf16.mxu1 %v12368_v53 }
 0x15e   : > { %7619 = vmatprep.subr.bf16.mxu0 %v12614_v49 }
 0x15f   : > { %7212 = vmatmul.mubr.f32.vlgmr.msra.gmra.mrb[0].mxu1 %v12615_v37 }
 0x160   : > { %7784 = vmatpush3.bf16.msra.mxu1 %v10214_v22  ;;  %7246 = vmatprep.mubr.msk.f32.mxu1 %vm9034_vm0, %v12432_v47  ;;  %v10612_v22 = vld [vmem:[#allocation8 + $0x20] sm:$0xff] }
 0x161   : > { %7621 = vmatpush1.bf16.msra.mxu0 %v12616_v9  ;;  %7785 = vmatprep.subr.bf16.mxu1 %v12368_v53 }
 0x162   : > { %7623 = vmatprep.subr.bf16.mxu0 %v10208_v58 }
 0x164   : > { %1088 = vmatmul.mubr.f32.vlgmr.msra.gmra.mrb[0].mxu0 %v12615_v37  ;;  %7787 = vmatpush3.bf16.msra.mxu1 %v10234_v57  ;;  %v12617_v37 = vld [vmem:[#allocation98_spill] sm:$0xff] }
 0x165   : > { %7625 = vmatpush1.bf16.msra.mxu0 %v10220_v39  ;;  %7788 = vmatprep.subr.bf16.mxu1 %v12368_v53  ;;  %v8764_v57 = vld [vmem:[#allocation2] sm:$0xff] }
 0x166   : > { %7627 = vmatprep.subr.bf16.mxu0 %v10228_v28  ;;  %1254 = vmatprep.mubr.f32.mxu0 %v12432_v47 }
 0x168   : > { %7790 = vmatpush3.bf16.msra.mxu1 %v10253_v13 }
 0x169   : > { %7629 = vmatpush1.bf16.msra.mxu0 %v10240_v44  ;;  %7791 = vmatprep.subr.bf16.mxu1 %v12368_v53 }
 0x16a   : > { %7631 = vmatprep.subr.bf16.mxu0 %v10247_v35  ;;  %v493_v35 = vld [vmem:[%s9301_s25 + $0x8] sm:$0xff] }
 0x16c   : > { %7793 = vmatpush3.bf16.msra.mxu1 %v10271_v54 }
 0x16d   : > { %7633 = vmatpush1.bf16.msra.mxu0 %v10259_v63  ;;  %7794 = vmatprep.subr.bf16.mxu1 %v12368_v53 }
 0x16e   : > { %7635 = vmatprep.subr.bf16.mxu0 %v10265_v6  ;;  %v12618_v6 = vld [vmem:[#allocation99_spill] sm:$0xff] }
 0x170   : > { %7796 = vmatpush3.bf16.msra.mxu1 %v10289_v5 }
 0x171   : > { %7637 = vmatpush1.bf16.msra.mxu0 %v10277_v42  ;;  %7797 = vmatprep.subr.bf16.mxu1 %v12368_v53 }
 0x172   : > { %7639 = vmatprep.subr.bf16.mxu0 %v10283_v26 }
 0x174   : > { %7799 = vmatpush3.bf16.msra.mxu1 %v10309_v31 }
 0x175   : > { %7641 = vmatpush1.bf16.msra.mxu0 %v10297_v23  ;;  %7800 = vmatprep.subr.bf16.mxu1 %v12368_v53  ;;  %v12619_v23 = vld [vmem:[#allocation51_spill] sm:$0xff] }
 0x176   : > { %7643 = vmatprep.subr.bf16.mxu0 %v10303_v1 }
 0x178   : > { %7802 = vmatpush3.bf16.msra.mxu1 %v10329_v46 }
 0x179   : > { %7645 = vmatpush1.bf16.msra.mxu0 %v12617_v37  ;;  %7803 = vmatprep.subr.bf16.mxu1 %v12368_v53 }
 0x17a   : > { %7647 = vmatprep.subr.bf16.mxu0 %v12618_v6  ;;  %v457_v6 = vld [vmem:[%s11927_s4] sm:$0x7] }
 0x17c   : > { %7805 = vmatpush3.bf16.msra.mxu1 %v10349_v2 }
 0x17d   : > { %7649 = vmatpush1.bf16.msra.mxu0 %v10337_v33  ;;  %7806 = vmatprep.subr.bf16.mxu1 %v12368_v53 }
 0x17e   : > { %7651 = vmatprep.subr.bf16.mxu0 %v10343_v24 }
 0x17f   : > { %7247 = vmatmul.mubr.f32.vlgmr.msra.gmra.mrb[0].mxu1 %v12619_v23 }
 0x180   : > { %7808 = vmatpush3.bf16.msra.mxu1 %v12592_v25  ;;  %7281 = vmatprep.mubr.msk.f32.mxu1 %vm9034_vm0, %v12432_v47 }
 0x181   : > { %7653 = vmatpush1.bf16.msra.mxu0 %v10353_v29  ;;  %7809 = vmatprep.subr.bf16.mxu1 %v12368_v53  ;;  %v12138_v29 = vlaneseq }
 0x182   : > { %7655 = vmatprep.subr.bf16.mxu0 %v12593_v56 }
 0x183   : > { %v10557_v24 = vshrl.u32 %v12138_v29, 7  ;;  %v492_v29 = vld [vmem:[%s9301_s25] sm:$0xff] }
 0x184   : > { %1256 = vmatmul.mubr.f32.vlgmr.msra.gmra.mrb[0].mxu0 %v12619_v23  ;;  %7811 = vmatpush3.bf16.msra.mxu1 %v12594_v34 }
 0x185   : > { %7657 = vmatpush1.bf16.msra.mxu0 %v12595_v50  ;;  %7812 = vmatprep.subr.bf16.mxu1 %v12368_v53  ;;  %v10560_v33 = vsub.s32 0, %v10557_v24  ;;  %v10566_v2 = vsub.s32 1, %v10557_v24  ;;  %v10579_v39 = vsub.s32 2, %v10557_v24  ;;  %v10659_v61 = vsub.s32 5, %v10557_v24 }
 0x186   : > { %7659 = vmatprep.subr.bf16.mxu0 %v12596_v7  ;;  %1358 = vmatprep.mubr.f32.mxu0 %v12432_v47  ;;  %v10663_v18 = vsub.s32 6, %v10557_v24 }
 0x187   : > { %12620 = vst [vmem:[#allocation53_spill] sm:$0xff] %v10560_v33  ;;  %12621 = vst [vmem:[#allocation56_spill] sm:$0xff] %v10566_v2  ;;  %v10569_v46 = vrot.slane %v457_v6, %v10560_v33 }
 0x188   : > { %7814 = vmatpush3.bf16.msra.mxu1 %v12597_v52  ;;  %12624 = vst [vmem:[#allocation120_spill] sm:$0xff] %v10579_v39  ;;  %12634 = vst [vmem:[#allocation129_spill] sm:$0xff] %v10659_v61 }
 0x189   : > { %7661 = vmatpush1.bf16.msra.mxu0 %v12598_v41  ;;  %7815 = vmatprep.subr.bf16.mxu1 %v12368_v53  ;;  %12622 = vst [vmem:[#allocation51_spill] sm:$0xff] %v10569_v46  ;;  %12635 = vst [vmem:[#allocation130_spill] sm:$0xff] %v10663_v18  ;;  %v484_v41 = vld [vmem:[#allocation11 + $0xd0] sm:$0xff] }
 0x18a   : > { %7663 = vmatprep.subr.bf16.mxu0 %v12599_v38 }
 0x18c   : > { %7817 = vmatpush3.bf16.msra.mxu1 %v12600_v51 }
 0x18d   : > { %7665 = vmatpush1.bf16.msra.mxu0 %v12601_v11  ;;  %7818 = vmatprep.subr.bf16.mxu1 %v12368_v53 }
 0x18e   : > { %7667 = vmatprep.subr.bf16.mxu0 %v12602_v0  ;;  %v10882_v0 = vld [vmem:[#allocation11 + $0xc0] sm:$0xff] }
 0x190   : > { %7820 = vmatpush3.bf16.msra.mxu1 %v12603_v12 }
 0x191   : > { %7669 = vmatpush1.bf16.msra.mxu0 %v12604_v4  ;;  %7821 = vmatprep.subr.bf16.mxu1 %v12368_v53 }
 0x192   : > { %7671 = vmatprep.subr.bf16.mxu0 %v12605_v14 }
 0x194   : > { %7823 = vmatpush3.bf16.msra.mxu1 %v12606_v21 }
 0x195   : > { %7673 = vmatpush1.bf16.msra.mxu0 %v12607_v32  ;;  %7824 = vmatprep.subr.bf16.mxu1 %v12368_v53 }
 0x196   : > { %7675 = vmatprep.subr.bf16.mxu0 %v12608_v15  ;;  %v10809_v15 = vld [vmem:[#allocation11 + $0xb0] sm:$0xff] }
 0x198   : > { %7826 = vmatpush3.bf16.msra.mxu1 %v12609_v48  ;;  %v10818_v48 = vld [vmem:[#allocation11 + $0xb8] sm:$0xff] }
 0x199   : > { %7677 = vmatpush1.bf16.msra.mxu0 %v12610_v8  ;;  %7827 = vmatprep.subr.bf16.mxu1 %v12368_v53  ;;  %v10787_v8 = vld [vmem:[#allocation11 + $0x20] sm:$0xff] }
 0x19a   : > { %7679 = vmatprep.subr.bf16.mxu0 %v12611_v16 }
 0x19c   : > { %7829 = vmatpush3.bf16.msra.mxu1 %v12612_v17 }
 0x19d   : > { %7681 = vmatpush1.bf16.msra.mxu0 %v12613_v36 }
 0x19e   : > { %7683 = vmatprep.subr.bf16.mxu0 %v12614_v49 }
 0x19f   : > { %7282 = vmatmul.mubr.f32.vlgmr.msra.gmra.mrb[0].mxu1 %v12619_v23 }
 0x1a1   : > { %7685 = vmatpush1.bf16.msra.mxu0 %v12616_v9 }
 0x1a4   : > { %1360 = vmatmul.mubr.f32.vlgmr.msra.gmra.mrb[0].mxu0 %v12619_v23  ;;  %v10572_v23 = vrot.slane %v457_v6, %v10566_v2 }
 0x1a6   : > { %12623 = vst [vmem:[#allocation119_spill] sm:$0xff] %v10572_v23 }
 0x272   : > { %v2003_v37 = vpop.f32.mrb[0].mxu1 }
 0x273   : > { %v7283_v1 = vpop.f32.mrb[1].mxu1 }
 0x277   : > { %v1361_v26 = vpop.f32.mrb[0].mxu0 }
 0x278   : > { %v8550_v31 = vadd.f32 %v1361_v26, %v10569_v46  ;;  %v1363_v42 = vpop.f32.mrb[1].mxu0  ;;  %v10582_v26 = vrot.slane %v457_v6, %v10579_v39 }
 0x279   : > { %v8551_v5 = vadd.f32 %v1363_v42, %v10572_v23 }
 0x27a   : > { %v2007_v63 = vadd.f32 %v8550_v31, %v492_v29  ;;  %12625 = vst [vmem:[#allocation121_spill] sm:$0xff] %v10582_v26  ;;  %v8552_v42 = vadd.f32 %v2003_v37, %v10582_v26  ;;  %v494_v29 = vld [vmem:[%s9301_s25 + $0x10] sm:$0xff] }
 0x27b   : > { %v2014_v44 = vadd.f32 %v8551_v5, %v493_v35  ;;  %v9036_v35 = vmov 1966171168   ;;  %v10608_v26 = vld [vmem:[#allocation8 + $0x18] sm:$0xff] }
 0x27c   : > { %v6430_v54 = vmul.f32 -1.442695, %v2007_v63 }
 0x27d   : > { %v6431_v1 = vmul.f32 -1.442695, %v2014_v44 }
 0x27e   : > { %8704 = vpow2.f32 %v6430_v54 }
 0x27f   : > { %8706 = vpow2.f32 %v6431_v1 }
 0x288   : > { %v8705_v28 = vpop.eup %8704 }
 0x289   : > { %v2011_v13 = vadd.f32 1.0, %v8705_v28  ;;  %v8707_v58 = vpop.eup %8706  ;;  %v2031_v28 = vunpack.c.l.s4 %v9036_v35 }
 0x28a   : > { %v2018_v46 = vadd.f32 1.0, %v8707_v58 }
 0x28b   : > { %8708 = vrcp.f32 %v2011_v13  ;;  %v2032_v54 = vunpack.c.0.s8 %v2031_v28 }
 0x28c   : > { %8710 = vrcp.f32 %v2018_v46 }
 0x28d   : > { %v10587_v58 = vsub.s32 %v2032_v54, %v10557_v24 }
 0x28f   : > { %12626 = vst [vmem:[#allocation122_spill] sm:$0xff] %v10587_v58 }
 0x295   : > { %v8709_v31 = vpop.eup %8708 }
 0x296   : > { %v2021_v63 = vmul.f32 %v8709_v31, %v8552_v42  ;;  %v8711_v13 = vpop.eup %8710 }
 0x297   : > { %v2024_v5 = vsub.f32 1.0, %v8711_v13  ;;  %v2026_v6 = vmul.f32 %v8764_v57, %v8711_v13  ;;  %v10597_v13 = vld [vmem:[#allocation8 + $0x10] sm:$0xff] }
 0x298   : > { %v2022_v44 = vadd.f32 %v2021_v63, %v494_v29 }
 0x29a   : > { %8712 = vtanh.f32 %v2022_v44  ;;  %v10593_v44 = vld [vmem:[#allocation8] sm:$0xff] }
 0x2a4   : > { %v8713_v1 = vpop.eup %8712 }
 0x2a5   : > { %v2025_v23 = vmul.f32 %v8713_v1, %v2024_v5 }
 0x2a7   : > { %v2027_v37 = vadd.f32 %v2026_v6, %v2025_v23 }
 0x2a9   : > { %3376 = vst [vmem:[#allocation2] sm:$0xff] %v2027_v37  ;;  %3375 = vst [vmem:[%s9318_s15] sm:$0xff] %v2027_v37  ;;  %v2036_v42 = vrot.slane %v2027_v37, %v10587_v58  ;;  %v2029_v46 = vcombine.high %v2027_v37, %v2027_v37 }
 0x2ab   : > { %v2052_v31 = vrot.slane %v2036_v42, %v10587_v58  ;;  %v2044_v29 = vcombine.high %v2036_v42, %v2036_v42  ;;  %v2043_v63 = vrot.slane %v2029_v46, %v10587_v58  ;;  %v10603_v42 = vld [vmem:[#allocation8 + $0x8] sm:$0xff] }
 0x2ad   : > { %v2081_v35 = vrot.slane %v2052_v31, %v10560_v33  ;;  %v2074_v28 = vcombine.high %v2052_v31, %v2052_v31  ;;  %v2066_v57 = vrot.slane %v2044_v29, %v10587_v58  ;;  %v2059_v23 = vrot.slane %v2043_v63, %v10587_v58 }
 0x2ae   : > { %v2045_v54 = vcombine.high %v2043_v63, %v2043_v63 }
 0x2af   : > { %v2118_v5 = vmul.f32 %v2081_v35, %v10593_v44  ;;  %v2089_v1 = vrot.slane %v2074_v28, %v10560_v33  ;;  %v2085_v6 = vrot.slane %v2066_v57, %v10560_v33  ;;  %v2076_v37 = vcombine.high %v2066_v57, %v2066_v57 }
 0x2b0   : > { %v2073_v29 = vrot.slane %v2045_v54, %v10587_v58  ;;  %v2097_v35 = vrot.slane %v2059_v23, %v10560_v33  ;;  %v2075_v28 = vcombine.high %v2059_v23, %v2059_v23 }
 0x2b1   : > { %2126 = vadd.xlane.f32.xlu0 %v2118_v5  ;;  %v2120_v46 = vmul.f32 %v2089_v1, %v10597_v13  ;;  %v2093_v31 = vrot.slane %v2076_v37, %v10560_v33  ;;  %v2119_v63 = vmul.f32 %v2085_v6, %v10603_v42 }
 0x2b2   : > { %v2101_v5 = vrot.slane %v2073_v29, %v10560_v33  ;;  %v2077_v1 = vcombine.high %v2073_v29, %v2073_v29  ;;  %v2122_v54 = vmul.f32 %v2097_v35, %v10612_v22  ;;  %v2105_v37 = vrot.slane %v2075_v28, %v10560_v33 }
 0x2b3   : > { %2130 = vadd.xlane.f32.xlu1 %v2120_v46  ;;  %v2121_v57 = vmul.f32 %v2093_v31, %v10608_v26  ;;  %v10620_v46 = vld [vmem:[#allocation8 + $0x30] sm:$0xff] }
 0x2b4   : > { %12628 = vst [vmem:[#allocation124_spill] sm:$0xff] %v10620_v46  ;;  %v2123_v23 = vmul.f32 %v2101_v5, %v10616_v30  ;;  %v2109_v6 = vrot.slane %v2077_v1, %v10560_v33  ;;  %v2124_v31 = vmul.f32 %v2105_v37, %v10620_v46 }
 0x2b5   : > { %2128 = vadd.xlane.f32.xlu0 %v2119_v63  ;;  %v10624_v63 = vld [vmem:[#allocation8 + $0x38] sm:$0xff] }
 0x2b6   : > { %12629 = vst [vmem:[#allocation125_spill] sm:$0xff] %v10624_v63  ;;  %v2125_v29 = vmul.f32 %v2109_v6, %v10624_v63 }
 0x2b7   : > { %2132 = vadd.xlane.f32.xlu1 %v2121_v57  ;;  %v12630_v57 = vlaneseq }
 0x2b9   : > { %2134 = vadd.xlane.f32.xlu0 %v2122_v54  ;;  %v2151_v35 = vand.u32 127, %v12630_v57 }
 0x2bb   : > { %2136 = vadd.xlane.f32.xlu1 %v2123_v23  ;;  %v10630_v28 = vsub.s32 %v2151_v35, %v10557_v24 }
 0x2bd   : > { %2138 = vadd.xlane.f32.xlu0 %v2124_v31  ;;  %12631 = vst [vmem:[#allocation126_spill] sm:$0xff] %v10630_v28 }
 0x2bf   : > { %2140 = vadd.xlane.f32.xlu1 %v2125_v29 }
 0x33e   : > { %v2127_v58 = vpop.xlane.xlu0 %2126 }
 0x33f   : > { %v2155_v1 = vrot.slane %v2127_v58, %v10630_v28 }
 0x340   : > { %v2131_v54 = vpop.xlane.xlu1 %2130 }
 0x341   : > { %v2163_v37 = vrot.slane %v2131_v54, %v10630_v28 }
 0x342   : > { %v2129_v5 = vpop.xlane.xlu0 %2128 }
 0x343   : > { %v2159_v45 = vrot.slane %v2129_v5, %v10630_v28 }
 0x344   : > { %v2133_v23 = vpop.xlane.xlu1 %2132 }
 0x345   : > { %v2185_v6 = vsel %vm2184_vm1, %v2159_v45, %v2155_v1  ;;  %v2167_v31 = vrot.slane %v2133_v23, %v10630_v28 }
 0x346   : > { %v2187_v29 = vsel %vm2186_vm2, %v2163_v37, %v2185_v6  ;;  %v2135_v57 = vpop.xlane.xlu0 %2134 }
 0x347   : > { %v2189_v35 = vsel %vm2188_vm3, %v2167_v31, %v2187_v29  ;;  %v2171_v40 = vrot.slane %v2135_v57, %v10630_v28 }
 0x348   : > { %v2137_v43 = vpop.xlane.xlu1 %2136 }
 0x349   : > { %v2191_v10 = vsel %vm2190_vm4, %v2171_v40, %v2189_v35  ;;  %v2175_v62 = vrot.slane %v2137_v43, %v10630_v28  ;;  %v9037_v40 = vmov 0   ;;  %v10649_v35 = vsub.s32 3, %v10557_v24 }
 0x34a   : > { %v2139_v3 = vpop.xlane.xlu0 %2138  ;;  %8703 = vset.pattern.permute.xlu0 %v9037_v40  ;;  %8702 = vset.pattern.permute.xlu1 %v9037_v40 }
 0x34b   : > { %v2179_v45 = vrot.slane %v2139_v3, %v10630_v28  ;;  %v2193_v1 = vsel %vm2192_vm5, %v2175_v62, %v2191_v10  ;;  %12632 = vst [vmem:[#allocation127_spill] sm:$0xff] %v10649_v35 }
 0x34c   : > { %v2141_v55 = vpop.xlane.xlu1 %2140 }
 0x34d   : > { %v2183_v37 = vrot.slane %v2141_v55, %v10630_v28  ;;  %v2195_v6 = vsel %vm2194_vm6, %v2179_v45, %v2193_v1  ;;  %v10655_v45 = vsub.s32 4, %v10557_v24 }
 0x34f   : > { %v2197_v31 = vsel %vm2196_vm7, %v2183_v37, %v2195_v6  ;;  %12633 = vst [vmem:[#allocation128_spill] sm:$0xff] %v10655_v45 }
 0x350   : > { %v2200_v29 = vsel %vm2199_vm8, %v2197_v31, -inf }
 0x351   : > { %2201 = vmax.xlane.f32.xlu0 %v2200_v29 }
 0x3de   : > { %v2202_v59 = vpop.xlane.xlu0 %2201 }
 0x3df   : > { %v2207_v62 = vrot.slane %v2202_v59, %v10560_v33  ;;  %v2211_v10 = vrot.slane %v2202_v59, %v10566_v2  ;;  %v2215_v27 = vrot.slane %v2202_v59, %v10579_v39  ;;  %v2219_v1 = vrot.slane %v2202_v59, %v10649_v35 }
 0x3e0   : > { %v2223_v20 = vrot.slane %v2202_v59, %v10655_v45  ;;  %v2227_v9 = vrot.slane %v2202_v59, %v10659_v61 }
 0x3e1   : > { %v2244_v37 = vsub.f32 %v2127_v58, %v2207_v62  ;;  %v2245_v6 = vsub.f32 %v2129_v5, %v2211_v10  ;;  %v2246_v31 = vsub.f32 %v2131_v54, %v2215_v27  ;;  %v2247_v60 = vsub.f32 %v2133_v23, %v2219_v1 }
 0x3e2   : > { %v2248_v49 = vsub.f32 %v2135_v57, %v2223_v20  ;;  %v10667_v27 = vsub.s32 7, %v10557_v24  ;;  %v2231_v54 = vrot.slane %v2202_v59, %v10663_v18  ;;  %v2249_v5 = vsub.f32 %v2137_v43, %v2227_v9 }
 0x3e3   : > { %v2252_v29 = vmul.f32 1.442695, %v2244_v37  ;;  %v2254_v40 = vmul.f32 1.442695, %v2245_v6  ;;  %v2256_v19 = vmul.f32 1.442695, %v2246_v31 }
 0x3e4   : > { %v2258_v58 = vmul.f32 1.442695, %v2247_v60  ;;  %12636 = vst [vmem:[#allocation131_spill] sm:$0xff] %v10667_v27  ;;  %v2260_v62 = vmul.f32 1.442695, %v2248_v49  ;;  %v2235_v1 = vrot.slane %v2202_v59, %v10667_v27  ;;  %v2250_v37 = vsub.f32 %v2139_v3, %v2231_v54 }
 0x3e5   : > { %8714 = vpow2.f32 %v2252_v29  ;;  %v2262_v6 = vmul.f32 1.442695, %v2249_v5 }
 0x3e6   : > { %8716 = vpow2.f32 %v2254_v40  ;;  %v2251_v60 = vsub.f32 %v2141_v55, %v2235_v1  ;;  %v2264_v24 = vmul.f32 1.442695, %v2250_v37 }
 0x3e7   : > { %8718 = vpow2.f32 %v2256_v19 }
 0x3e8   : > { %8720 = vpow2.f32 %v2258_v58  ;;  %v2266_v43 = vmul.f32 1.442695, %v2251_v60 }
 0x3e9   : > { %8722 = vpow2.f32 %v2260_v62 }
 0x3ea   : > { %8724 = vpow2.f32 %v2262_v6 }
 0x3eb   : > { %8726 = vpow2.f32 %v2264_v24 }
 0x3ec   : > { %8728 = vpow2.f32 %v2266_v43 }
 0x3ef   : > { %v8715_v23 = vpop.eup %8714 }
 0x3f0   : > { %v8717_v10 = vpop.eup %8716  ;;  %2277 = vperm.xlu1 %8702, %v8715_v23  }
 0x3f1   : > { %2280 = vperm.xlu0 %8703, %v8717_v10   ;;  %v8719_v20 = vpop.eup %8718 }
 0x3f2   : > { %v8721_v19 = vpop.eup %8720 }
 0x3f3   : > { %v8723_v9 = vpop.eup %8722 }
 0x3f4   : > { %2283 = vperm.xlu1 %8702, %v8719_v20   ;;  %v8725_v49 = vpop.eup %8724 }
 0x3f5   : > { %v8727_v57 = vpop.eup %8726 }
 0x3f6   : > { %v8729_v59 = vpop.eup %8728 }
 0x3f8   : > { %2286 = vperm.xlu1 %8702, %v8721_v19  }
 0x3fc   : > { %2289 = vperm.xlu1 %8702, %v8723_v9  }
 0x400   : > { %2292 = vperm.xlu1 %8702, %v8725_v49  }
 0x404   : > { %2295 = vperm.xlu1 %8702, %v8727_v57  }
 0x408   : > { %2298 = vperm.xlu1 %8702, %v8729_v59  }
 0x46f   : > { %v2278_v3 = vpop.permute.xlu1 %2277 }
 0x470   : > { %v2281_v55 = vpop.permute.xlu0 %2280  ;;  %v2303_v5 = vrot.slane %v2278_v3, %v10630_v28 }
 0x471   : > { %v2307_v54 = vrot.slane %v2281_v55, %v10630_v28 }
 0x473   : > { %v2284_v31 = vpop.permute.xlu1 %2283  ;;  %v2332_v60 = vsel %vm2184_vm1, %v2307_v54, %v2303_v5 }
 0x474   : > { %v2311_v62 = vrot.slane %v2284_v31, %v10630_v28 }
 0x476   : > { %v2333_v43 = vsel %vm2186_vm2, %v2311_v62, %v2332_v60 }
 0x477   : > { %v2287_v29 = vpop.permute.xlu1 %2286 }
 0x478   : > { %v2315_v1 = vrot.slane %v2287_v29, %v10630_v28 }
 0x47a   : > { %v2334_v16 = vsel %vm2188_vm3, %v2315_v1, %v2333_v43 }
 0x47b   : > { %v2290_v40 = vpop.permute.xlu1 %2289 }
 0x47c   : > { %v2319_v37 = vrot.slane %v2290_v40, %v10630_v28 }
 0x47e   : > { %v2335_v55 = vsel %vm2190_vm4, %v2319_v37, %v2334_v16 }
 0x47f   : > { %v2293_v58 = vpop.permute.xlu1 %2292 }
 0x480   : > { %v2323_v24 = vrot.slane %v2293_v58, %v10630_v28 }
 0x482   : > { %v2336_v31 = vsel %vm2192_vm5, %v2323_v24, %v2335_v55 }
 0x483   : > { %v2296_v6 = vpop.permute.xlu1 %2295 }
 0x484   : > { %v2327_v36 = vrot.slane %v2296_v6, %v10630_v28 }
 0x486   : > { %v2337_v40 = vsel %vm2194_vm6, %v2327_v36, %v2336_v31 }
 0x487   : > { %v2299_v3 = vpop.permute.xlu1 %2298 }
 0x488   : > { %v2331_v29 = vrot.slane %v2299_v3, %v10630_v28  ;;  %v10695_v3 = vld [vmem:[#allocation11 + $0x80] sm:$0xff] }
 0x48a   : > { %v2338_v17 = vsel %vm2196_vm7, %v2331_v29, %v2337_v40  ;;  %v10701_v29 = vld [vmem:[#allocation11] sm:$0xff] }
 0x48b   : > { %v2340_v54 = vsel %vm2199_vm8, %v2338_v17, 0.0 }
 0x48c   : > { %2341 = vadd.xlane.f32.xlu1 %v2340_v54  ;;  %v12176_v54 = vand.u32 4294901760, %v10701_v29 }
 0x519   : > { %v2342_v58 = vpop.xlane.xlu1 %2341 }
 0x51a   : > { %8730 = vrcp.f32 %v2342_v58 }
 0x524   : > { %v8731_v5 = vpop.eup %8730 }
 0x525   : > { %v2348_v62 = vrot.slane %v8731_v5, %v10560_v33  ;;  %v2352_v16 = vrot.slane %v8731_v5, %v10566_v2  ;;  %v2356_v6 = vrot.slane %v8731_v5, %v10579_v39  ;;  %v2360_v36 = vrot.slane %v8731_v5, %v10649_v35 }
 0x526   : > { %v2364_v24 = vrot.slane %v8731_v5, %v10655_v45  ;;  %v2368_v17 = vrot.slane %v8731_v5, %v10659_v61  ;;  %v2372_v43 = vrot.slane %v8731_v5, %v10663_v18  ;;  %v2376_v55 = vrot.slane %v8731_v5, %v10667_v27 }
 0x527   : > { %v2385_v1 = vmul.f32 %v8715_v23, %v2348_v62  ;;  %v2386_v37 = vmul.f32 %v8717_v10, %v2352_v16  ;;  %v2387_v60 = vmul.f32 %v8719_v20, %v2356_v6  ;;  %v10697_v23 = vld [vmem:[#allocation11 + $0x88] sm:$0xff]  ;;  %v12178_v10 = vand.u32 4294901760, %v10695_v3 }
 0x528   : > { %v12177_v31 = vand.u32 4294901760, %v10697_v23  ;;  %v10703_v20 = vld [vmem:[#allocation11 + $0x8] sm:$0xff]  ;;  %v2388_v40 = vmul.f32 %v8721_v19, %v2360_v36  ;;  %v2389_v62 = vmul.f32 %v8723_v9, %v2364_v24  ;;  %v2390_v5 = vmul.f32 %v8725_v49, %v2368_v17  ;;  %v10731_v49 = vld [vmem:[#allocation11 + $0x90] sm:$0xff]  ;;  %v10733_v36 = vld [vmem:[#allocation11 + $0x98] sm:$0xff] }
 0x529   : > { %2395 = vperm.xlu0 %8703, %v2385_v1   ;;  %v12175_v58 = vand.u32 4294901760, %v10703_v20  ;;  %v10710_v1 = vsub.f32 %v10695_v3, %v12178_v10  ;;  %v10719_v6 = vmul.f32 %v8729_v59, %v2376_v55  ;;  %v10724_v19 = vsub.f32 %v10701_v29, %v12176_v54  ;;  %v10739_v17 = vld [vmem:[#allocation11 + $0x10] sm:$0xff] }
 0x52a   : > { %v10715_v16 = vsub.f32 %v10697_v23, %v12177_v31  ;;  %v12637_v55 = vand.u32 4294901760, %v10733_v36  ;;  %v12655_v21 = vand.u32 4294901760, %v10697_v23  ;;  %v12671_v52 = vand.u32 4294901760, %v10739_v17 }
 0x52b   : > { %v10729_v9 = vsub.f32 %v10703_v20, %v12175_v58 }
 0x52c   : > { %v12182_v59 = vand.u32 4294901760, %v10715_v16  ;;  %v10761_v58 = vsub.f32 %v10733_v36, %v12637_v55  ;;  %v10779_v55 = vld [vmem:[#allocation11 + $0xa0] sm:$0xff] }
 0x52d   : > { %2400 = vperm.xlu0 %8703, %v2386_v37   ;;  %v10717_v37 = vmul.f32 %v8727_v57, %v2372_v43  ;;  %v12179_v57 = vand.u32 4294901760, %v10710_v1  ;;  %v10741_v43 = vld [vmem:[#allocation11 + $0x18] sm:$0xff] }
 0x52e   : > { %v2746_v10 = vsub.f32 %v10715_v16, %v12182_v59  ;;  %v12640_v59 = vand.u32 4294901760, %v10739_v17  ;;  %v12203_v39 = vand.u32 4294901760, %v10761_v58 }
 0x52f   : > { %v2739_v31 = vsub.f32 %v10710_v1, %v12179_v57  ;;  %v12639_v57 = vand.u32 4294901760, %v10729_v9 }
 0x530   : > { %v10772_v61 = vsub.f32 %v10739_v17, %v12640_v59  ;;  %v2747_v45 = vand.u32 4294901760, %v2746_v10 }
 0x531   : > { %2405 = vperm.xlu0 %8703, %v2387_v60   ;;  %v12185_v60 = vand.u32 4294901760, %v10731_v49  ;;  %v2634_v27 = vsub.f32 %v10729_v9, %v12639_v57  ;;  %v2740_v35 = vand.u32 4294901760, %v2739_v31  ;;  %v10783_v57 = vld [vmem:[#allocation11 + $0xa8] sm:$0xff]  ;;  %v2760_v31 = vsub.f32 %v10761_v58, %v12203_v39 }
 0x532   : > { %v12204_v59 = vand.u32 4294901760, %v10772_v61  ;;  %v12646_v32 = vand.u32 4294901760, %v10783_v57 }
 0x533   : > { %v10756_v24 = vsub.f32 %v10731_v49, %v12185_v60  ;;  %v12641_v60 = vand.u32 4294901760, %v10741_v43  ;;  %v2635_v28 = vand.u32 4294901760, %v2634_v27 }
 0x534   : > { %v2641_v33 = vsub.f32 %v10772_v61, %v12204_v59  ;;  %v12210_v59 = vand.u32 4294901760, %v10787_v8 }
 0x535   : > { %2410 = vperm.xlu0 %8703, %v2388_v40   ;;  %v12638_v40 = vand.u32 4294901760, %v10724_v19  ;;  %v10777_v18 = vsub.f32 %v10741_v43, %v12641_v60  ;;  %v10789_v60 = vpack.c.bf16 %v2747_v45, %v2740_v35 }
 0x536   : > { %v10835_v14 = vsub.f32 %v10787_v8, %v12210_v59 }
 0x537   : > { %v2627_v54 = vsub.f32 %v10724_v19, %v12638_v40  ;;  %v12201_v40 = vand.u32 4294901760, %v10756_v24  ;;  %12642 = vst [vmem:[#allocation132_spill] sm:$0xff] %v10789_v60  ;;  %v12644_v35 = vand.u32 4294901760, %v10777_v18  ;;  %7863 = vmatprep.subr.bf16.mxu1 %v10789_v60 }
 0x538   : > { %12648 = vst [vmem:[#allocation135_spill] sm:$0xff] %v10835_v14  ;;  %v12657_v4 = vand.u32 4294901760, %v10835_v14 }
 0x539   : > { %2415 = vperm.xlu0 %8703, %v2389_v62   ;;  %v2628_v2 = vand.u32 4294901760, %v2627_v54  ;;  %v2753_v10 = vsub.f32 %v10756_v24, %v12201_v40  ;;  %v10798_v54 = vld [vmem:[#allocation11 + $0x28] sm:$0xff]  ;;  %v2648_v45 = vsub.f32 %v10777_v18, %v12644_v35  ;;  %v2761_v62 = vand.u32 4294901760, %v2760_v31  ;;  %v10827_v31 = vld [vmem:[#allocation11 + $0x30] sm:$0xff] }
 0x53a   : > { %v2642_v35 = vand.u32 4294901760, %v2641_v33  ;;  %v12214_v33 = vand.u32 4294901760, %v10809_v15 }
 0x53b   : > { %v10800_v27 = vpack.c.bf16 %v2635_v28, %v2628_v2  ;;  %v2754_v39 = vand.u32 4294901760, %v2753_v10  ;;  %v12645_v2 = vand.u32 4294901760, %v10779_v55  ;;  %v2649_v40 = vand.u32 4294901760, %v2648_v45  ;;  %v10838_v45 = vld [vmem:[#allocation11 + $0x38] sm:$0xff] }
 0x53c   : > { %v12211_v10 = vand.u32 4294901760, %v10798_v54 }
 0x53d   : > { %12643 = vst [vmem:[#allocation133_spill] sm:$0xff] %v10800_v27  ;;  %2420 = vperm.xlu0 %8703, %v2390_v5   ;;  %v10815_v28 = vsub.f32 %v10779_v55, %v12645_v2  ;;  %7865 = vmatpush3.bf16.msra.mxu1 %v10800_v27  ;;  %v10824_v5 = vsub.f32 %v10783_v57, %v12646_v32 }
 0x53e   : > { %v10829_v60 = vpack.c.bf16 %v2761_v62, %v2754_v39  ;;  %v10840_v27 = vpack.c.bf16 %v2649_v40, %v2642_v35  ;;  %v10846_v39 = vsub.f32 %v10798_v54, %v12211_v10  ;;  %v10858_v35 = vsub.f32 %v10809_v15, %v12214_v33 }
 0x53f   : > { %v12213_v2 = vand.u32 4294901760, %v10815_v28  ;;  %v12218_v32 = vand.u32 4294901760, %v10824_v5  ;;  %v12654_v33 = vand.u32 4294901760, %v10695_v3  ;;  %v12659_v40 = vand.u32 4294901760, %v10703_v20 }
 0x540   : > { %12647 = vst [vmem:[#allocation134_spill] sm:$0xff] %v10829_v60  ;;  %12649 = vst [vmem:[#allocation136_spill] sm:$0xff] %v10840_v27  ;;  %7867 = vmatprep.subr.bf16.mxu1 %v10829_v60  ;;  %v12652_v60 = vand.u32 4294901760, %v10818_v48  ;;  %v12222_v62 = vand.u32 4294901760, %v10858_v35  ;;  %v12661_v3 = vand.u32 4294901760, %v10846_v39 }
 0x541   : > { %12650 = vst [vmem:[#allocation137_spill] sm:$0xff] %v10846_v39  ;;  %2425 = vperm.xlu0 %8703, %v10717_v37   ;;  %v2767_v59 = vsub.f32 %v10815_v28, %v12213_v2  ;;  %12651 = vst [vmem:[#allocation138_spill] sm:$0xff] %v10858_v35  ;;  %7869 = vmatpush3.bf16.msra.mxu1 %v10840_v27  ;;  %v2774_v37 = vsub.f32 %v10824_v5, %v12218_v32 }
 0x542   : > { %v10869_v2 = vsub.f32 %v10818_v48, %v12652_v60  ;;  %v10876_v10 = vpack.c.bf16 %v12655_v21, %v12654_v33  ;;  %v2655_v32 = vsub.f32 %v10835_v14, %v12657_v4  ;;  %v12658_v60 = vand.u32 4294901760, %v10701_v29 }
 0x543   : > { %v2768_v27 = vand.u32 4294901760, %v2767_v59  ;;  %v2775_v12 = vand.u32 4294901760, %v2774_v37  ;;  %v2662_v21 = vsub.f32 %v10846_v39, %v12661_v3  ;;  %v2781_v59 = vsub.f32 %v10858_v35, %v12222_v62  ;;  %v10909_v37 = vld [vmem:[#allocation11 + $0xc8] sm:$0xff] }
 0x544   : > { %12653 = vst [vmem:[#allocation139_spill] sm:$0xff] %v10869_v2  ;;  %12656 = vst [vmem:[#allocation140_spill] sm:$0xff] %v10876_v10  ;;  %v10888_v11 = vpack.c.bf16 %v12659_v40, %v12658_v60  ;;  %v12226_v23 = vand.u32 4294901760, %v10869_v2  ;;  %7831 = vmatprep.subr.bf16.mxu0 %v10876_v10  ;;  %v2656_v4 = vand.u32 4294901760, %v2655_v32  ;;  %v12662_v29 = vand.u32 4294901760, %v10827_v31 }
 0x545   : > { %2430 = vperm.xlu0 %8703, %v10719_v6   ;;  %v12664_v33 = vand.u32 4294901760, %v10838_v45  ;;  %v10911_v6 = vpack.c.bf16 %v2775_v12, %v2768_v27  ;;  %v2663_v32 = vand.u32 4294901760, %v2662_v21  ;;  %v2584_v3 = vand.u32 4294901760, %v10882_v0  ;;  %v10928_v21 = vld [vmem:[#allocation11 + $0x48] sm:$0xff] }
 0x546   : > { %12660 = vst [vmem:[#allocation141_spill] sm:$0xff] %v10888_v11  ;;  %v10902_v20 = vsub.f32 %v10827_v31, %v12662_v29  ;;  %7833 = vmatpush3.bf16.msra.mxu0 %v10888_v11  ;;  %v2788_v60 = vsub.f32 %v10869_v2, %v12226_v23  ;;  %v10918_v29 = vld [vmem:[#allocation11 + $0x40] sm:$0xff]  ;;  %v12667_v62 = vand.u32 4294901760, %v10731_v49  ;;  %v2782_v51 = vand.u32 4294901760, %v2781_v59 }
 0x547   : > { %v10907_v40 = vsub.f32 %v10838_v45, %v12664_v33  ;;  %12666 = vst [vmem:[#allocation144_spill] sm:$0xff] %v10911_v6  ;;  %v12668_v33 = vand.u32 4294901760, %v10733_v36  ;;  %7871 = vmatprep.subr.bf16.mxu1 %v10911_v6  ;;  %v10931_v23 = vpack.c.bf16 %v2663_v32, %v2656_v4  ;;  %v12672_v49 = vand.u32 4294901760, %v10741_v43 }
 0x548   : > { %12663 = vst [vmem:[#allocation142_spill] sm:$0xff] %v10902_v20  ;;  %v12230_v12 = vand.u32 4294901760, %v10902_v20  ;;  %v2789_v7 = vand.u32 4294901760, %v2788_v60  ;;  %v10948_v32 = vsub.f32 %v10882_v0, %v2584_v3  ;;  %v2536_v17 = vand.u32 4294901760, %v10918_v29 }
 0x549   : > { %12665 = vst [vmem:[#allocation143_spill] sm:$0xff] %v10907_v40  ;;  %v10924_v38 = vpack.c.bf16 %v12668_v33, %v12667_v62  ;;  %v12229_v27 = vand.u32 4294901760, %v10907_v40  ;;  %12670 = vst [vmem:[#allocation146_spill] sm:$0xff] %v10931_v23  ;;  %v10937_v36 = vpack.c.bf16 %v12672_v49, %v12671_v52  ;;  %v2587_v62 = vand.u32 4294901760, %v10909_v37  ;;  %7873 = vmatpush3.bf16.msra.mxu1 %v10931_v23  ;;  %v485_v33 = vld [vmem:[#allocation11 + $0xd8] sm:$0xff] }
 0x54a   : > { %v2669_v59 = vsub.f32 %v10902_v20, %v12230_v12  ;;  %v10952_v52 = vpack.c.bf16 %v2789_v7, %v2782_v51  ;;  %v2539_v60 = vand.u32 4294901760, %v10928_v21  ;;  %v2590_v49 = vand.u32 4294901760, %v484_v41 }
 0x54b   : > { %12669 = vst [vmem:[#allocation145_spill] sm:$0xff] %v10924_v38  ;;  %12673 = vst [vmem:[#allocation147_spill] sm:$0xff] %v10937_v36  ;;  %7835 = vmatprep.subr.bf16.mxu0 %v10924_v38  ;;  %v2676_v4 = vsub.f32 %v10907_v40, %v12229_v27  ;;  %v10956_v43 = vsub.f32 %v10909_v37, %v2587_v62  ;;  %v12675_v27 = vand.u32 4294901760, %v10779_v55  ;;  %v12676_v0 = vand.u32 4294901760, %v10783_v57 }
 0x54c   : > { %12674 = vst [vmem:[#allocation148_spill] sm:$0xff] %v10952_v52  ;;  %7837 = vmatpush3.bf16.msra.mxu0 %v10937_v36  ;;  %v2670_v6 = vand.u32 4294901760, %v2669_v59  ;;  %v12235_v7 = vand.u32 4294901760, %v10948_v32  ;;  %7875 = vmatprep.subr.bf16.mxu1 %v10952_v52  ;;  %v12678_v37 = vand.u32 4294901760, %v10787_v8  ;;  %v12679_v23 = vand.u32 4294901760, %v10798_v54  ;;  %v10982_v59 = vld [vmem:[#allocation11 + $0x58] sm:$0xff] }
 0x54d   : > { %v10963_v12 = vpack.c.bf16 %v12676_v0, %v12675_v27  ;;  %v2677_v50 = vand.u32 4294901760, %v2676_v4  ;;  %v10975_v55 = vsub.f32 %v10918_v29, %v2536_v17  ;;  %v10978_v57 = vsub.f32 %v10928_v21, %v2539_v60  ;;  %v10980_v27 = vld [vmem:[#allocation11 + $0x50] sm:$0xff] }
 0x54e   : > { %v10972_v56 = vpack.c.bf16 %v12679_v23, %v12678_v37  ;;  %v12681_v4 = vand.u32 4294901760, %v10809_v15  ;;  %v12682_v0 = vand.u32 4294901760, %v10818_v48  ;;  %v2795_v54 = vsub.f32 %v10948_v32, %v12235_v7 }
 0x54f   : > { %12677 = vst [vmem:[#allocation149_spill] sm:$0xff] %v10963_v12  ;;  %v10990_v8 = vpack.c.bf16 %v2677_v50, %v2670_v6  ;;  %7839 = vmatprep.subr.bf16.mxu0 %v10963_v12  ;;  %v2593_v23 = vand.u32 4294901760, %v485_v33  ;;  %v12685_v29 = vand.u32 4294901760, %v10956_v43  ;;  %v12239_v15 = vand.u32 4294901760, %v10975_v55  ;;  %v473_v12 = vld [vmem:[#allocation11 + $0x78] sm:$0xff] }
 0x550   : > { %12680 = vst [vmem:[#allocation150_spill] sm:$0xff] %v10972_v56  ;;  %v10988_v51 = vpack.c.bf16 %v12682_v0, %v12681_v4  ;;  %7841 = vmatpush3.bf16.msra.mxu0 %v10972_v56  ;;  %v12242_v48 = vand.u32 4294901760, %v10978_v57  ;;  %v11002_v37 = vsub.f32 %v484_v41, %v2590_v49  ;;  %v2796_v50 = vand.u32 4294901760, %v2795_v54  ;;  %v486_v54 = vld [vmem:[#allocation11 + $0xe0] sm:$0xff] }
 0x551   : > { %12684 = vst [vmem:[#allocation152_spill] sm:$0xff] %v10990_v8  ;;  %v2802_v21 = vsub.f32 %v10956_v43, %v12685_v29  ;;  %7877 = vmatpush3.bf16.msra.mxu1 %v10990_v8  ;;  %v11006_v6 = vsub.f32 %v485_v33, %v2593_v23  ;;  %v2683_v7 = vsub.f32 %v10975_v55, %v12239_v15  ;;  %v12688_v0 = vand.u32 4294901760, %v10827_v31  ;;  %v487_v15 = vld [vmem:[#allocation11 + $0xe8] sm:$0xff] }
 0x552   : > { %12683 = vst [vmem:[#allocation151_spill] sm:$0xff] %v10988_v51  ;;  %7843 = vmatprep.subr.bf16.mxu0 %v10988_v51  ;;  %v2690_v41 = vsub.f32 %v10978_v57, %v12242_v48  ;;  %v12244_v8 = vand.u32 4294901760, %v11002_v37  ;;  %v11017_v52 = vpack.c.bf16 %v2587_v62, %v2584_v3  ;;  %v11019_v33 = vpack.c.bf16 %v2593_v23, %v2590_v49 }
 0x553   : > { %v2803_v29 = vand.u32 4294901760, %v2802_v21  ;;  %v12243_v4 = vand.u32 4294901760, %v11006_v6  ;;  %v12689_v21 = vand.u32 4294901760, %v10838_v45  ;;  %v2684_v25 = vand.u32 4294901760, %v2683_v7 }
 0x554   : > { %12686 = vst [vmem:[#allocation153_spill] sm:$0xff] %v11017_v52  ;;  %12687 = vst [vmem:[#allocation154_spill] sm:$0xff] %v11019_v33  ;;  %v2691_v48 = vand.u32 4294901760, %v2690_v41  ;;  %v2809_v3 = vsub.f32 %v11002_v37, %v12244_v8  ;;  %v12692_v31 = vand.u32 4294901760, %v10980_v27  ;;  %v12693_v49 = vand.u32 4294901760, %v10982_v59 }
 0x555   : > { %v11026_v34 = vpack.c.bf16 %v12689_v21, %v12688_v0  ;;  %v11028_v47 = vpack.c.bf16 %v2803_v29, %v2796_v50  ;;  %v2816_v62 = vsub.f32 %v11006_v6, %v12243_v4  ;;  %v2596_v23 = vand.u32 4294901760, %v486_v54  ;;  %v470_v50 = vld [vmem:[#allocation11 + $0x60] sm:$0xff]  ;;  %v471_v0 = vld [vmem:[#allocation11 + $0x68] sm:$0xff] }
 0x556   : > { %v11040_v45 = vsub.f32 %v10980_v27, %v12692_v31  ;;  %v11045_v7 = vsub.f32 %v10982_v59, %v12693_v49  ;;  %v11048_v29 = vpack.c.bf16 %v2691_v48, %v2684_v25  ;;  %v2810_v41 = vand.u32 4294901760, %v2809_v3  ;;  %v489_v3 = vld [vmem:[#allocation11 + $0xf8] sm:$0xff] }
 0x557   : > { %12690 = vst [vmem:[#allocation155_spill] sm:$0xff] %v11026_v34  ;;  %12691 = vst [vmem:[#allocation156_spill] sm:$0xff] %v11028_v47  ;;  %7845 = vmatpush3.bf16.msra.mxu0 %v11026_v34  ;;  %7879 = vmatprep.subr.bf16.mxu1 %v11028_v47  ;;  %v2599_v21 = vand.u32 4294901760, %v487_v15  ;;  %v11051_v4 = vpack.c.bf16 %v2539_v60, %v2536_v17  ;;  %v2817_v31 = vand.u32 4294901760, %v2816_v62  ;;  %v488_v34 = vld [vmem:[#allocation11 + $0xf0] sm:$0xff]  ;;  %v2548_v25 = vand.u32 4294901760, %v470_v50 }
 0x558   : > { %12694 = vst [vmem:[#allocation157_spill] sm:$0xff] %v11048_v29  ;;  %7847 = vmatprep.subr.bf16.mxu0 %v11017_v52  ;;  %v12252_v8 = vand.u32 4294901760, %v11040_v45  ;;  %v12253_v53 = vand.u32 4294901760, %v11045_v7  ;;  %v11055_v49 = vsub.f32 %v486_v54, %v2596_v23  ;;  %7881 = vmatpush3.bf16.msra.mxu1 %v11048_v29  ;;  %v2551_v48 = vand.u32 4294901760, %v471_v0 }
 0x559   : > { %12695 = vst [vmem:[#allocation158_spill] sm:$0xff] %v11051_v4  ;;  %v11058_v51 = vsub.f32 %v487_v15, %v2599_v21  ;;  %v11060_v47 = vpack.c.bf16 %v2817_v31, %v2810_v41  ;;  %v11071_v62 = vsub.f32 %v470_v50, %v2548_v25  ;;  %v2602_v41 = vand.u32 4294901760, %v488_v34 }
 0x55a   : > { %v2697_v17 = vsub.f32 %v11040_v45, %v12252_v8  ;;  %v2704_v60 = vsub.f32 %v11045_v7, %v12253_v53  ;;  %v12267_v54 = vand.u32 4294901760, %v11055_v49  ;;  %v11073_v29 = vsub.f32 %v471_v0, %v2551_v48 }
 0x55b   : > { %12696 = vst [vmem:[#allocation159_spill] sm:$0xff] %v11060_v47  ;;  %7849 = vmatpush3.bf16.msra.mxu0 %v11051_v4  ;;  %v12268_v15 = vand.u32 4294901760, %v11058_v51  ;;  %7883 = vmatprep.subr.bf16.mxu1 %v11060_v47  ;;  %v2605_v52 = vand.u32 4294901760, %v489_v3  ;;  %v12271_v50 = vand.u32 4294901760, %v11071_v62  ;;  %v11085_v56 = vsub.f32 %v488_v34, %v2602_v41 }
 0x55c   : > { %7851 = vmatprep.subr.bf16.mxu0 %v11019_v33  ;;  %v2698_v31 = vand.u32 4294901760, %v2697_v17  ;;  %v2705_v8 = vand.u32 4294901760, %v2704_v60  ;;  %v2823_v53 = vsub.f32 %v11055_v49, %v12267_v54  ;;  %v12274_v0 = vand.u32 4294901760, %v11073_v29  ;;  %v472_v33 = vld [vmem:[#allocation11 + $0x70] sm:$0xff] }
 0x55d   : > { %v2830_v4 = vsub.f32 %v11058_v51, %v12268_v15  ;;  %v11089_v17 = vpack.c.bf16 %v2599_v21, %v2596_v23  ;;  %v11091_v36 = vsub.f32 %v489_v3, %v2605_v52  ;;  %v2711_v15 = vsub.f32 %v11071_v62, %v12271_v50 }
 0x55e   : > { %v11087_v47 = vpack.c.bf16 %v2705_v8, %v2698_v31  ;;  %v2824_v60 = vand.u32 4294901760, %v2823_v53  ;;  %v2718_v38 = vsub.f32 %v11073_v29, %v12274_v0  ;;  %v2836_v34 = vand.u32 4294901760, %v11085_v56 }
 0x55f   : > { %12698 = vst [vmem:[#allocation161_spill] sm:$0xff] %v11089_v17  ;;  %v2831_v54 = vand.u32 4294901760, %v2830_v4  ;;  %v2843_v8 = vand.u32 4294901760, %v11091_v36  ;;  %v12699_v23 = vand.u32 4294901760, %v10980_v27  ;;  %v12700_v53 = vand.u32 4294901760, %v10982_v59 }
 0x560   : > { %12697 = vst [vmem:[#allocation160_spill] sm:$0xff] %v11087_v47  ;;  %7885 = vmatpush3.bf16.msra.mxu1 %v11087_v47  ;;  %v2554_v4 = vand.u32 4294901760, %v472_v33  ;;  %v2557_v3 = vand.u32 4294901760, %v473_v12  ;;  %v2712_v50 = vand.u32 4294901760, %v2711_v15  ;;  %v2719_v11 = vand.u32 4294901760, %v2718_v38 }
 0x561   : > { %v11106_v21 = vpack.c.bf16 %v12700_v53, %v12699_v23  ;;  %v11108_v31 = vpack.c.bf16 %v2831_v54, %v2824_v60  ;;  %v2837_v0 = vsub.f32 %v11085_v56, %v2836_v34  ;;  %v2844_v63 = vsub.f32 %v11091_v36, %v2843_v8 }
 0x562   : > { %v2723_v47 = vsub.f32 %v472_v33, %v2554_v4  ;;  %v2730_v46 = vsub.f32 %v473_v12, %v2557_v3  ;;  %v11113_v30 = vpack.c.bf16 %v2551_v48, %v2548_v25  ;;  %v11116_v27 = vpack.c.bf16 %v2719_v11, %v2712_v50 }
 0x563   : > { %12701 = vst [vmem:[#allocation162_spill] sm:$0xff] %v11108_v31  ;;  %7853 = vmatpush3.bf16.msra.mxu0 %v11106_v21  ;;  %7887 = vmatprep.subr.bf16.mxu1 %v11108_v31  ;;  %v11118_v59 = vpack.c.bf16 %v2605_v52, %v2602_v41  ;;  %v2838_v54 = vand.u32 4294901760, %v2837_v0  ;;  %v2845_v38 = vand.u32 4294901760, %v2844_v63  ;;  %v11123_v23 = vpack.c.bf16 %v10729_v9, %v10724_v19 }
 0x564   : > { %12702 = vst [vmem:[#allocation163_spill] sm:$0xff] %v11113_v30  ;;  %12703 = vst [vmem:[#allocation164_spill] sm:$0xff] %v11116_v27  ;;  %7855 = vmatprep.subr.bf16.mxu0 %v11089_v17  ;;  %v2724_v15 = vand.u32 4294901760, %v2723_v47  ;;  %v2731_v60 = vand.u32 4294901760, %v2730_v46  ;;  %7889 = vmatpush3.bf16.msra.mxu1 %v11116_v27  ;;  %v11128_v12 = vpack.c.bf16 %v10761_v58, %v10756_v24  ;;  %v12717_v27 = vand.u32 4294901760, %v10948_v32 }
 0x565   : > { %12704 = vst [vmem:[#allocation165_spill] sm:$0xff] %v11118_v59  ;;  %v11132_v11 = vpack.c.bf16 %v10777_v18, %v10772_v61  ;;  %v11134_v52 = vpack.c.bf16 %v2845_v38, %v2838_v54  ;;  %v11137_v25 = vpack.c.bf16 %v2557_v3, %v2554_v4  ;;  %v11142_v48 = vpack.c.bf16 %v10715_v16, %v10710_v1 }
 0x566   : > { %v2725_v33 = vsub.f32 %v2723_v47, %v2724_v15  ;;  %v2732_v63 = vsub.f32 %v2730_v46, %v2731_v60  ;;  %v11146_v41 = vpack.c.bf16 %v10824_v5, %v10815_v28  ;;  %v11151_v53 = vpack.c.bf16 %v10846_v39, %v10835_v14 }
 0x567   : > { %12705 = vst [vmem:[#allocation166_spill] sm:$0xff] %v11134_v52  ;;  %7857 = vmatpush3.bf16.msra.mxu0 %v11113_v30  ;;  %12706 = vst [vmem:[#allocation167_spill] sm:$0xff] %v11137_v25  ;;  %7891 = vmatprep.subr.bf16.mxu1 %v11134_v52  ;;  %v11159_v3 = vpack.c.bf16 %v10869_v2, %v10858_v35  ;;  %v11164_v54 = vpack.c.bf16 %v10907_v40, %v10902_v20  ;;  %v12718_v31 = vand.u32 4294901760, %v10956_v43 }
 0x568   : > { %7859 = vmatprep.subr.bf16.mxu0 %v11118_v59  ;;  %12707 = vst [vmem:[#allocation168_spill] sm:$0xff] %v11142_v48  ;;  %v2726_v50 = vand.u32 4294901760, %v2725_v33  ;;  %v2733_v0 = vand.u32 4294901760, %v2732_v63  ;;  %v11169_v38 = vpack.c.bf16 %v10956_v43, %v10948_v32  ;;  %v11173_v33 = vpack.c.bf16 %v10978_v57, %v10975_v55 }
 0x569   : > { %v11177_v63 = vpack.c.bf16 %v11006_v6, %v11002_v37  ;;  %v11195_v52 = vpack.c.bf16 %v2730_v46, %v2723_v47  ;;  %v11201_v40 = vpack.c.bf16 %v12718_v31, %v12717_v27  ;;  %v12720_v20 = vand.u32 4294901760, %v10975_v55 }
 0x56a   : > { %v11153_v4 = vpack.c.bf16 %v2733_v0, %v2726_v50  ;;  %12709 = vst [vmem:[#allocation170_spill] sm:$0xff] %v11169_v38  ;;  %12710 = vst [vmem:[#allocation171_spill] sm:$0xff] %v11173_v33  ;;  %v11181_v50 = vpack.c.bf16 %v11045_v7, %v11040_v45  ;;  %v11185_v0 = vpack.c.bf16 %v11058_v51, %v11055_v49  ;;  %v12721_v2 = vand.u32 4294901760, %v10978_v57 }
 0x56b   : > { %7861 = vmatpush3.bf16.msra.mxu0 %v11137_v25  ;;  %12711 = vst [vmem:[#allocation172_spill] sm:$0xff] %v11177_v63  ;;  %12716 = vst [vmem:[#allocation177_spill] sm:$0xff] %v11195_v52  ;;  %v12723_v39 = vand.u32 4294901760, %v11002_v37  ;;  %v12724_v14 = vand.u32 4294901760, %v11006_v6  ;;  %v12726_v47 = vand.u32 4294901760, %v11040_v45  ;;  %v12727_v46 = vand.u32 4294901760, %v11045_v7 }
 0x56c   : > { %12708 = vst [vmem:[#allocation169_spill] sm:$0xff] %v11153_v4  ;;  %7895 = vmatprep.subr.bf16.mxu0 %v11142_v48  ;;  %7893 = vmatpush3.bf16.msra.mxu1 %v11153_v4  ;;  %12712 = vst [vmem:[#allocation173_spill] sm:$0xff] %v11181_v50  ;;  %v11189_v48 = vpack.c.bf16 %v11073_v29, %v11071_v62  ;;  %v11193_v4 = vpack.c.bf16 %v11091_v36, %v11085_v56  ;;  %v12729_v32 = vand.u32 4294901760, %v11055_v49 }
 0x56d   : > { %7927 = vmatprep.subr.bf16.mxu1 %v10876_v10  ;;  %12713 = vst [vmem:[#allocation174_spill] sm:$0xff] %v11185_v0  ;;  %12719 = vst [vmem:[#allocation178_spill] sm:$0xff] %v11201_v40  ;;  %v11207_v35 = vpack.c.bf16 %v12721_v2, %v12720_v20  ;;  %v11213_v56 = vpack.c.bf16 %v12724_v14, %v12723_v39  ;;  %v11219_v36 = vpack.c.bf16 %v12727_v46, %v12726_v47 }
 0x56e   : > { %12714 = vst [vmem:[#allocation175_spill] sm:$0xff] %v11189_v48  ;;  %12715 = vst [vmem:[#allocation176_spill] sm:$0xff] %v11193_v4  ;;  %v12730_v43 = vand.u32 4294901760, %v11058_v51  ;;  %v12732_v2 = vand.u32 4294901760, %v11071_v62  ;;  %v12733_v20 = vand.u32 4294901760, %v11073_v29  ;;  %v11233_v14 = vpack.c.bf16 %v2843_v8, %v2836_v34 }
 0x56f   : > { %12722 = vst [vmem:[#allocation179_spill] sm:$0xff] %v11207_v35  ;;  %12725 = vst [vmem:[#allocation180_spill] sm:$0xff] %v11213_v56  ;;  %v11235_v39 = vpack.c.bf16 %v2731_v60, %v2724_v15 }
 0x570   : > { %12728 = vst [vmem:[#allocation181_spill] sm:$0xff] %v11219_v36  ;;  %v11225_v55 = vpack.c.bf16 %v12730_v43, %v12729_v32  ;;  %v11231_v57 = vpack.c.bf16 %v12733_v20, %v12732_v2  ;;  %12735 = vst [vmem:[#allocation184_spill] sm:$0xff] %v11233_v14 }
 0x571   : > { %12736 = vst [vmem:[#allocation185_spill] sm:$0xff] %v11235_v39 }
 0x572   : > { %12731 = vst [vmem:[#allocation182_spill] sm:$0xff] %v11225_v55  ;;  %12734 = vst [vmem:[#allocation183_spill] sm:$0xff] %v11231_v57 }
 0x5a8   : > { %v2396_v37 = vpop.permute.xlu0 %2395 }
 0x5a9   : > { %v2433_v51 = vmul.f32 %v2396_v37, %v10593_v44 }
 0x5ab   : > { %v2441_v47 = vrot.slane %v2433_v51, 4 }
 0x5ac   : > { %v2401_v6 = vpop.permute.xlu0 %2400 }
 0x5ad   : > { %v2434_v7 = vmul.f32 %v2401_v6, %v10603_v42  ;;  %v2442_v32 = vadd.f32 %v2441_v47, %v2433_v51  ;;  %v12737_v6 = vld [vmem:[#allocation123_spill] sm:$0xff] }
 0x5af   : > { %v2447_v27 = vrot.slane %v2434_v7, 4 }
 0x5b0   : > { %v2406_v45 = vpop.permute.xlu0 %2405 }
 0x5b1   : > { %v2435_v49 = vmul.f32 %v2406_v45, %v10597_v13  ;;  %v2448_v8 = vadd.f32 %v2447_v27, %v2434_v7  ;;  %v2443_v45 = vrot.slane %v2442_v32, 2  ;;  %v12738_v7 = vld [vmem:[#allocation124_spill] sm:$0xff] }
 0x5b3   : > { %v2453_v29 = vrot.slane %v2435_v49, 4  ;;  %v2449_v20 = vrot.slane %v2448_v8, 2 }
 0x5b4   : > { %v2411_v31 = vpop.permute.xlu0 %2410 }
 0x5b5   : > { %v2436_v62 = vmul.f32 %v2411_v31, %v10608_v26  ;;  %v2454_v60 = vadd.f32 %v2453_v29, %v2435_v49  ;;  %v2450_v57 = vadd.f32 %v2449_v20, %v2448_v8  ;;  %v2444_v49 = vadd.f32 %v2443_v45, %v2442_v32 }
 0x5b7   : > { %v2459_v46 = vrot.slane %v2436_v62, 4  ;;  %v2455_v37 = vrot.slane %v2454_v60, 2  ;;  %v2445_v56 = vrot.slane %v2444_v49, 1 }
 0x5b8   : > { %v2416_v34 = vpop.permute.xlu0 %2415 }
 0x5b9   : > { %v2437_v15 = vmul.f32 %v2416_v34, %v10612_v22  ;;  %v2460_v43 = vadd.f32 %v2459_v46, %v2436_v62  ;;  %v2456_v22 = vadd.f32 %v2455_v37, %v2454_v60  ;;  %v2451_v34 = vrot.slane %v2450_v57, 1 }
 0x5bb   : > { %v2465_v2 = vrot.slane %v2437_v15, 4  ;;  %v2461_v39 = vrot.slane %v2460_v43, 2  ;;  %v2457_v36 = vrot.slane %v2456_v22, 1 }
 0x5bc   : > { %v2421_v42 = vpop.permute.xlu0 %2420 }
 0x5bd   : > { %v2466_v13 = vadd.f32 %v2465_v2, %v2437_v15  ;;  %v2438_v44 = vmul.f32 %v2421_v42, %v12737_v6  ;;  %v2462_v51 = vadd.f32 %v2461_v39, %v2460_v43  ;;  %v12739_v42 = vld [vmem:[#allocation125_spill] sm:$0xff]  ;;  %v2458_v39 = vadd.f32 %v2457_v36, %v2456_v22 }
 0x5be   : > { %v2446_v43 = vadd.f32 %v2445_v56, %v2444_v49 }
 0x5bf   : > { %v2471_v26 = vrot.slane %v2438_v44, 4  ;;  %v2467_v31 = vrot.slane %v2466_v13, 2  ;;  %v2463_v35 = vrot.slane %v2462_v51, 1 }
 0x5c0   : > { %v2426_v14 = vpop.permute.xlu0 %2425 }
 0x5c1   : > { %v2472_v55 = vadd.f32 %v2471_v26, %v2438_v44  ;;  %v2439_v27 = vmul.f32 %v2426_v14, %v12738_v7  ;;  %v2468_v47 = vadd.f32 %v2467_v31, %v2466_v13  ;;  %v2452_v44 = vadd.f32 %v2451_v34, %v2450_v57 }
 0x5c2   : > { %v2464_v37 = vadd.f32 %v2463_v35, %v2462_v51 }
 0x5c3   : > { %v2473_v62 = vrot.slane %v2472_v55, 2  ;;  %v2477_v29 = vrot.slane %v2439_v27, 4  ;;  %v2469_v20 = vrot.slane %v2468_v47, 1 }
 0x5c4   : > { %v2431_v46 = vpop.permute.xlu0 %2430 }
 0x5c5   : > { %v2474_v15 = vadd.f32 %v2473_v62, %v2472_v55  ;;  %v2478_v2 = vadd.f32 %v2477_v29, %v2439_v27  ;;  %v2440_v6 = vmul.f32 %v2431_v46, %v12739_v42  ;;  %v2470_v26 = vadd.f32 %v2469_v20, %v2468_v47  ;;  %v8765_v27 = vld [vmem:[#allocation2] sm:$0xff] }
 0x5c6   : > { %v2497_v55 = vsel %vm2184_vm1, %v2452_v44, %v2446_v43  ;;  %v11246_v62 = vand.u32 4294901760, %v8765_v27  ;;  %v12742_v44 = vld [vmem:[#allocation147_spill] sm:$0xff] }
 0x5c7   : > { %v2479_v40 = vrot.slane %v2478_v2, 2  ;;  %v2483_v8 = vrot.slane %v2440_v6, 4  ;;  %v2475_v14 = vrot.slane %v2474_v15, 1  ;;  %v2498_v29 = vsel %vm2186_vm2, %v2458_v39, %v2497_v55  ;;  %v12744_v39 = vld [vmem:[#allocation150_spill] sm:$0xff]  ;;  %v12745_v43 = vld [vmem:[#allocation151_spill] sm:$0xff] }
 0x5c8   : > { %v2499_v57 = vsel %vm2188_vm3, %v2464_v37, %v2498_v29  ;;  %v2614_v22 = vsub.f32 %v8765_v27, %v11246_v62  ;;  %v12746_v37 = vld [vmem:[#allocation155_spill] sm:$0xff]  ;;  %v12750_v55 = vand.u32 4294901760, %v10710_v1  ;;  %v12753_v27 = vand.u32 4294901760, %v10724_v19 }
 0x5c9   : > { %v2480_v60 = vadd.f32 %v2479_v40, %v2478_v2  ;;  %v2484_v32 = vadd.f32 %v2483_v8, %v2440_v6  ;;  %v2476_v31 = vadd.f32 %v2475_v14, %v2474_v15  ;;  %v2500_v36 = vsel %vm2190_vm4, %v2470_v26, %v2499_v57  ;;  %v12740_v2 = vld [vmem:[#allocation141_spill] sm:$0xff]  ;;  %v12749_v26 = vld [vmem:[#allocation154_spill] sm:$0xff] }
 0x5ca   : > { %v2615_v34 = vand.u32 4294901760, %v2614_v22  ;;  %v12741_v6 = vld [vmem:[#allocation145_spill] sm:$0xff]  ;;  %v12754_v29 = vand.u32 4294901760, %v10729_v9  ;;  %v12756_v1 = vand.u32 4294901760, %v10756_v24  ;;  %v12759_v19 = vand.u32 4294901760, %v10772_v61 }
 0x5cb   : > { %v2481_v13 = vrot.slane %v2480_v60, 1  ;;  %v2485_v45 = vrot.slane %v2484_v32, 2  ;;  %v2501_v35 = vsel %vm2192_vm5, %v2476_v31, %v2500_v36  ;;  %v12751_v31 = vand.u32 4294901760, %v10715_v16 }
 0x5cc   : > { %v2616_v8 = vsub.f32 %v2614_v22, %v2615_v34  ;;  %v12757_v16 = vand.u32 4294901760, %v10761_v58  ;;  %v12760_v9 = vand.u32 4294901760, %v10777_v18  ;;  %v12762_v24 = vand.u32 4294901760, %v10815_v28 }
 0x5cd   : > { %v2486_v7 = vadd.f32 %v2485_v45, %v2484_v32  ;;  %v2482_v46 = vadd.f32 %v2481_v13, %v2480_v60  ;;  %v12743_v60 = vld [vmem:[#allocation149_spill] sm:$0xff]  ;;  %v12748_v45 = vld [vmem:[#allocation158_spill] sm:$0xff]  ;;  %v12763_v58 = vand.u32 4294901760, %v10824_v5 }
 0x5ce   : > { %v2617_v32 = vand.u32 4294901760, %v2616_v8  ;;  %v12747_v13 = vld [vmem:[#allocation153_spill] sm:$0xff]  ;;  %v11308_v57 = vpack.c.bf16 %v12757_v16, %v12756_v1  ;;  %v12786_v1 = vld [vmem:[#allocation183_spill] sm:$0xff] }
 0x5cf   : > { %v2487_v40 = vrot.slane %v2486_v7, 1  ;;  %v2502_v49 = vsel %vm2194_vm6, %v2482_v46, %v2501_v35  ;;  %v11300_v46 = vpack.c.bf16 %v12754_v29, %v12753_v27  ;;  %v11323_v36 = vpack.c.bf16 %v12763_v58, %v12762_v24  ;;  %v12765_v35 = vld [vmem:[#allocation135_spill] sm:$0xff]  ;;  %v12784_v27 = vld [vmem:[#allocation182_spill] sm:$0xff]  ;;  %v12787_v16 = vld [vmem:[#allocation21_spill] sm:$0xff] }
 0x5d0   : > { %12758 = vst [vmem:[#allocation125_spill] sm:$0xff] %v11308_v57  ;;  %v12766_v61 = vand.u32 4294901760, %v12765_v35  ;;  %v12785_v29 = vmov 0.0|0.0   ;;  %v12790_v24 = vld [vmem:[#allocation185_spill] sm:$0xff]  ;;  %v12791_v58 = vld [vmem:[#allocation24_spill] sm:$0xff] }
 0x5d1   : > { %v2488_v56 = vadd.f32 %v2487_v40, %v2486_v7  ;;  %v11291_v7 = vpack.c.bf16 %v12751_v31, %v12750_v55  ;;  %12755 = vst [vmem:[#allocation124_spill] sm:$0xff] %v11300_v46  ;;  %v11315_v40 = vpack.c.bf16 %v12760_v9, %v12759_v19  ;;  %12764 = vst [vmem:[#allocation145_spill] sm:$0xff] %v11323_v36  ;;  %v12782_v55 = vld [vmem:[#allocation180_spill] sm:$0xff]  ;;  %v12783_v31 = vld [vmem:[#allocation181_spill] sm:$0xff]  ;;  %v12789_v9 = vmov 0.0  }
 0x5d2   : > { %v12788_v19 = vld [vmem:[#allocation184_spill] sm:$0xff] }
 0x5d3   : > { %v2503_v51 = vsel %vm2196_vm7, %v2488_v56, %v2502_v49  ;;  %12752 = vst [vmem:[#allocation123_spill] sm:$0xff] %v11291_v7  ;;  %12761 = vst [vmem:[#allocation141_spill] sm:$0xff] %v11315_v40  ;;  %v12767_v56 = vld [vmem:[#allocation137_spill] sm:$0xff]  ;;  %v12770_v49 = vld [vmem:[#allocation138_spill] sm:$0xff] }
 0x5d4   : > { %v2607_v47 = vand.u32 4294901760, %v2503_v51  ;;  %v12768_v18 = vand.u32 4294901760, %v12767_v56  ;;  %v12771_v28 = vand.u32 4294901760, %v12770_v49  ;;  %v12792_v35 = vld [vmem:[#allocation20_spill] sm:$0xff]  ;;  %v12794_v56 = vld [vmem:[#allocation27_spill] sm:$0xff]  ;;  %v11381_v49 = vld [vmem:[#allocation2] sm:$0xff] }
 0x5d6   : > { %2848 = vmatprep.mubr.f32.mxu1 %v2607_v47  ;;  %v2608_v15 = vsub.f32 %v2503_v51, %v2607_v47  ;;  %v12772_v51 = vld [vmem:[#allocation139_spill] sm:$0xff] }
 0x5d7   : > { %2850 = vmatmul.mubr.f32.vlgmr.msra.gmra.mrb[2].mxu1 %v11246_v62  ;;  %v12773_v5 = vand.u32 4294901760, %v12772_v51  ;;  %v12797_v51 = vld [vmem:[#allocation30_spill] sm:$0xff] }
 0x5d8   : > { %7929 = vmatpush3.bf16.msra.mxu1 %v12740_v2  ;;  %v2609_v42 = vand.u32 4294901760, %v2608_v15 }
 0x5d9   : > { %7931 = vmatprep.subr.bf16.mxu1 %v12741_v6 }
 0x5da   : > { %3092 = vmatprep.mubr.f32.mxu1 %v2609_v42  ;;  %v2610_v20 = vsub.f32 %v2608_v15, %v2609_v42  ;;  %v12777_v42 = vld [vmem:[#allocation143_spill] sm:$0xff] }
 0x5db   : > { %v12778_v8 = vand.u32 4294901760, %v12777_v42  ;;  %v12801_v42 = vld [vmem:[#allocation29_spill] sm:$0xff] }
 0x5dc   : > { %7933 = vmatpush3.bf16.msra.mxu1 %v12742_v44  ;;  %v2611_v14 = vand.u32 4294901760, %v2610_v20 }
 0x5dd   : > { %7935 = vmatprep.subr.bf16.mxu1 %v12743_v60 }
 0x5de   : > { %2612 = vmatprep.mubr.f32.mxu0 %v2611_v14  ;;  %v12780_v14 = vld [vmem:[#allocation178_spill] sm:$0xff] }
 0x5df   : > { %2618 = vmatmul.mubr.f32.vlgmr.msra.gmra.mrb[2].mxu0 %v2617_v32  ;;  %v12781_v32 = vld [vmem:[#allocation179_spill] sm:$0xff] }
 0x5e0   : > { %7897 = vmatpush3.bf16.msra.mxu0 %v11123_v23  ;;  %7937 = vmatpush3.bf16.msra.mxu1 %v12744_v39 }
 0x5e1   : > { %2985 = vmatprep.mubr.f32.mxu0 %v2608_v15  ;;  %7899 = vmatprep.subr.bf16.mxu0 %v11128_v12 }
 0x5e2   : > { %7939 = vmatprep.subr.bf16.mxu1 %v12745_v43 }
 0x5e4   : > { %7901 = vmatpush3.bf16.msra.mxu0 %v11132_v11  ;;  %7941 = vmatpush3.bf16.msra.mxu1 %v12746_v37 }
 0x5e5   : > { %7903 = vmatprep.subr.bf16.mxu0 %v11146_v41  ;;  %7943 = vmatprep.subr.bf16.mxu1 %v12747_v13 }
 0x5e8   : > { %7905 = vmatpush3.bf16.msra.mxu0 %v11151_v53  ;;  %7945 = vmatpush3.bf16.msra.mxu1 %v12748_v45 }
 0x5e9   : > { %7907 = vmatprep.subr.bf16.mxu0 %v11159_v3  ;;  %7947 = vmatprep.subr.bf16.mxu1 %v12749_v26 }
 0x5ec   : > { %7909 = vmatpush3.bf16.msra.mxu0 %v11164_v54  ;;  %7949 = vmatpush3.bf16.msra.mxu1 %v11106_v21 }
 0x5ed   : > { %7911 = vmatprep.subr.bf16.mxu0 %v11169_v38  ;;  %7951 = vmatprep.subr.bf16.mxu1 %v11089_v17 }
 0x5f0   : > { %7913 = vmatpush3.bf16.msra.mxu0 %v11173_v33  ;;  %7953 = vmatpush3.bf16.msra.mxu1 %v11113_v30  ;;  %v12885_v33 = vld [vmem:[#allocation102_spill] sm:$0xff] }
 0x5f1   : > { %7915 = vmatprep.subr.bf16.mxu0 %v11177_v63  ;;  %7955 = vmatprep.subr.bf16.mxu1 %v11118_v59  ;;  %v12828_v63 = vld [vmem:[#allocation69_spill] sm:$0xff] }
 0x5f4   : > { %7917 = vmatpush3.bf16.msra.mxu0 %v11181_v50  ;;  %7957 = vmatpush3.bf16.msra.mxu1 %v11137_v25  ;;  %v12821_v50 = vld [vmem:[#allocation67_spill] sm:$0xff] }
 0x5f5   : > { %7919 = vmatprep.subr.bf16.mxu0 %v11185_v0  ;;  %7991 = vmatprep.subr.bf16.mxu1 %v10876_v10  ;;  %v12820_v0 = vld [vmem:[#allocation62_spill] sm:$0xff] }
 0x5f7   : > { %3096 = vmatmul.mubr.f32.vlgmr.msra.gmra.mrb[4].mxu1 %v2615_v34  ;;  %v12775_v34 = vld [vmem:[#allocation142_spill] sm:$0xff] }
 0x5f8   : > { %7921 = vmatpush3.bf16.msra.mxu0 %v11189_v48  ;;  %7993 = vmatpush3.bf16.msra.mxu1 %v12740_v2  ;;  %v12776_v15 = vand.u32 4294901760, %v12775_v34  ;;  %v12799_v34 = vld [vmem:[#allocation28_spill] sm:$0xff] }
 0x5f9   : > { %3366 = vmatprep.mubr.f32.mxu1 %v2607_v47  ;;  %7923 = vmatprep.subr.bf16.mxu0 %v11193_v4  ;;  %v12816_v4 = vld [vmem:[#allocation57_spill] sm:$0xff]  ;;  %v12819_v48 = vld [vmem:[#allocation60_spill] sm:$0xff] }
 0x5fa   : > { %7995 = vmatprep.subr.bf16.mxu1 %v12741_v6  ;;  %v11347_v20 = vpack.c.bf16 %v12778_v8, %v12776_v15  ;;  %v12800_v15 = vld [vmem:[#allocation38_spill] sm:$0xff] }
 0x5fc   : > { %7925 = vmatpush3.bf16.msra.mxu0 %v11195_v52  ;;  %7997 = vmatpush3.bf16.msra.mxu1 %v12742_v44  ;;  %12779 = vst [vmem:[#allocation150_spill] sm:$0xff] %v11347_v20  ;;  %v12815_v52 = vld [vmem:[#allocation61_spill] sm:$0xff] }
 0x5fd   : > { %7959 = vmatprep.subr.bf16.mxu0 %v11291_v7  ;;  %7999 = vmatprep.subr.bf16.mxu1 %v12743_v60  ;;  %v12814_v7 = vld [vmem:[#allocation52_spill] sm:$0xff] }
 0x5ff   : > { %2988 = vmatmul.mubr.f32.vlgmr.msra.gmra.mrb[4].mxu0 %v2614_v22  ;;  %v11331_v22 = vpack.c.bf16 %v12768_v18, %v12766_v61  ;;  %v12793_v61 = vld [vmem:[#allocation22_spill] sm:$0xff]  ;;  %v12795_v18 = vld [vmem:[#allocation23_spill] sm:$0xff] }
 0x600   : > { %7961 = vmatpush3.bf16.msra.mxu0 %v11300_v46  ;;  %3262 = vmatprep.mubr.f32.mxu0 %v2607_v47  ;;  %v11339_v47 = vpack.c.bf16 %v12773_v5, %v12771_v28  ;;  %v12796_v28 = vld [vmem:[#allocation25_spill] sm:$0xff]  ;;  %v12798_v5 = vld [vmem:[#allocation26_spill] sm:$0xff]  ;;  %v12813_v46 = vld [vmem:[#allocation48_spill] sm:$0xff] }
 0x601   : > { %8001 = vmatpush3.bf16.msra.mxu1 %v12744_v39  ;;  %7963 = vmatprep.subr.bf16.mxu0 %v11308_v57  ;;  %12769 = vst [vmem:[#allocation147_spill] sm:$0xff] %v11331_v22  ;;  %v12812_v57 = vld [vmem:[#allocation58_spill] sm:$0xff] }
 0x602   : > { %8003 = vmatprep.subr.bf16.mxu1 %v12745_v43  ;;  %12774 = vst [vmem:[#allocation149_spill] sm:$0xff] %v11339_v47 }
 0x604   : > { %7965 = vmatpush3.bf16.msra.mxu0 %v11315_v40  ;;  %v12811_v40 = vld [vmem:[#allocation47_spill] sm:$0xff] }
 0x605   : > { %8005 = vmatpush3.bf16.msra.mxu1 %v12746_v37  ;;  %7967 = vmatprep.subr.bf16.mxu0 %v11323_v36 }
 0x606   : > { %8007 = vmatprep.subr.bf16.mxu1 %v12747_v13 }
 0x608   : > { %7969 = vmatpush3.bf16.msra.mxu0 %v11331_v22  ;;  %v12810_v22 = vld [vmem:[#allocation45_spill] sm:$0xff] }
 0x609   : > { %8009 = vmatpush3.bf16.msra.mxu1 %v12748_v45  ;;  %7971 = vmatprep.subr.bf16.mxu0 %v11339_v47  ;;  %v12809_v47 = vld [vmem:[#allocation49_spill] sm:$0xff] }
 0x60a   : > { %8011 = vmatprep.subr.bf16.mxu1 %v12749_v26 }
 0x60c   : > { %7973 = vmatpush3.bf16.msra.mxu0 %v11347_v20  ;;  %v12808_v20 = vld [vmem:[#allocation44_spill] sm:$0xff] }
 0x60d   : > { %8013 = vmatpush3.bf16.msra.mxu1 %v11106_v21  ;;  %7975 = vmatprep.subr.bf16.mxu0 %v12780_v14 }
 0x60e   : > { %8015 = vmatprep.subr.bf16.mxu1 %v11089_v17 }
 0x610   : > { %7977 = vmatpush3.bf16.msra.mxu0 %v12781_v32  ;;  %v12807_v32 = vld [vmem:[#allocation40_spill] sm:$0xff] }
 0x611   : > { %8017 = vmatpush3.bf16.msra.mxu1 %v11113_v30  ;;  %7979 = vmatprep.subr.bf16.mxu0 %v12782_v55  ;;  %v12806_v55 = vld [vmem:[#allocation46_spill] sm:$0xff] }
 0x612   : > { %8019 = vmatprep.subr.bf16.mxu1 %v11118_v59 }
 0x614   : > { %7981 = vmatpush3.bf16.msra.mxu0 %v12783_v31  ;;  %v12805_v31 = vld [vmem:[#allocation39_spill] sm:$0xff] }
 0x615   : > { %8021 = vmatpush3.bf16.msra.mxu1 %v11137_v25  ;;  %7983 = vmatprep.subr.bf16.mxu0 %v12784_v27 }
 0x616   : > { %8214 = vmatprep.subr.bf16.mxu1 %v12785_v29 }
 0x618   : > { %3368 = vmatmul.mubr.f32.vlgmr.msra.gmra.mrb[6].mxu1 %v11246_v62  ;;  %7985 = vmatpush3.bf16.msra.mxu0 %v12786_v1  ;;  %v12804_v1 = vld [vmem:[#allocation36_spill] sm:$0xff] }
 0x619   : > { %8216 = vmatpush3.bf16.msra.mxu1 %v12787_v16  ;;  %7987 = vmatprep.subr.bf16.mxu0 %v12788_v19  ;;  %v12803_v19 = vld [vmem:[#allocation42_spill] sm:$0xff] }
 0x61a   : > { %8217 = vmatprep.subr.bf16.mxu1 %v12785_v29  ;;  %7316 = vmatprep.mubr.msk.f32.mxu1 %vm9034_vm0, %v12789_v9 }
 0x61c   : > { %7989 = vmatpush3.bf16.msra.mxu0 %v12790_v24  ;;  %v12802_v24 = vld [vmem:[#allocation33_spill] sm:$0xff] }
 0x61d   : > { %8219 = vmatpush3.bf16.msra.mxu1 %v12791_v58  ;;  %8023 = vmatprep.subr.bf16.mxu0 %v12792_v35 }
 0x61e   : > { %8220 = vmatprep.subr.bf16.mxu1 %v12785_v29 }
 0x61f   : > { %3264 = vmatmul.mubr.f32.vlgmr.msra.gmra.mrb[6].mxu0 %v11246_v62  ;;  %v11388_v62 = vand.u32 4294901760, %v11381_v49 }
 0x620   : > { %8025 = vmatpush1.bf16.msra.mxu0 %v12793_v61  ;;  %3478 = vmatprep.mubr.f32.mxu0 %v12789_v9 }
 0x621   : > { %8222 = vmatpush3.bf16.msra.mxu1 %v12794_v56  ;;  %8027 = vmatprep.subr.bf16.mxu0 %v12795_v18  ;;  %v11396_v8 = vsub.f32 %v11381_v49, %v11388_v62 }
 0x622   : > { %8223 = vmatprep.subr.bf16.mxu1 %v12785_v29 }
 0x623   : > { %v11403_v27 = vand.u32 4294901760, %v11396_v8 }
 0x624   : > { %8029 = vmatpush1.bf16.msra.mxu0 %v12796_v28 }
 0x625   : > { %8225 = vmatpush3.bf16.msra.mxu1 %v12797_v51  ;;  %8031 = vmatprep.subr.bf16.mxu0 %v12798_v5  ;;  %v3482_v14 = vsub.f32 %v11396_v8, %v11403_v27 }
 0x626   : > { %8226 = vmatprep.subr.bf16.mxu1 %v12785_v29 }
 0x627   : > { %v3483_v36 = vand.u32 4294901760, %v3482_v14  ;;  %v12817_v14 = vld [vmem:[#allocation59_spill] sm:$0xff] }
 0x628   : > { %8033 = vmatpush1.bf16.msra.mxu0 %v12799_v34 }
 0x629   : > { %8228 = vmatpush3.bf16.msra.mxu1 %v12800_v15  ;;  %8035 = vmatprep.subr.bf16.mxu0 %v12801_v42 }
 0x62a   : > { %8229 = vmatprep.subr.bf16.mxu1 %v12785_v29 }
 0x62c   : > { %8037 = vmatpush1.bf16.msra.mxu0 %v12802_v24 }
 0x62d   : > { %8231 = vmatpush3.bf16.msra.mxu1 %v12803_v19  ;;  %8039 = vmatprep.subr.bf16.mxu0 %v12804_v1 }
 0x62e   : > { %8232 = vmatprep.subr.bf16.mxu1 %v12785_v29 }
 0x630   : > { %8041 = vmatpush1.bf16.msra.mxu0 %v12805_v31 }
 0x631   : > { %8234 = vmatpush3.bf16.msra.mxu1 %v12806_v55  ;;  %8043 = vmatprep.subr.bf16.mxu0 %v12807_v32 }
 0x632   : > { %8235 = vmatprep.subr.bf16.mxu1 %v12785_v29 }
 0x634   : > { %8045 = vmatpush1.bf16.msra.mxu0 %v12808_v20 }
 0x635   : > { %8237 = vmatpush3.bf16.msra.mxu1 %v12809_v47  ;;  %8047 = vmatprep.subr.bf16.mxu0 %v12810_v22 }
 0x636   : > { %8238 = vmatprep.subr.bf16.mxu1 %v12785_v29 }
 0x638   : > { %7317 = vmatmul.mubr.f32.vlgmr.msra.gmra.mrb[8].mxu1 %v3483_v36  ;;  %8049 = vmatpush1.bf16.msra.mxu0 %v12811_v40 }
 0x639   : > { %8240 = vmatpush3.bf16.msra.mxu1 %v12812_v57  ;;  %8051 = vmatprep.subr.bf16.mxu0 %v12813_v46  ;;  %v12818_v57 = vld [vmem:[#allocation64_spill] sm:$0xff] }
 0x63a   : > { %8241 = vmatprep.subr.bf16.mxu1 %v12785_v29  ;;  %7351 = vmatprep.mubr.msk.f32.mxu1 %vm9034_vm0, %v12789_v9 }
 0x63c   : > { %8053 = vmatpush1.bf16.msra.mxu0 %v12814_v7 }
 0x63d   : > { %8243 = vmatpush3.bf16.msra.mxu1 %v12815_v52  ;;  %8055 = vmatprep.subr.bf16.mxu0 %v12816_v4  ;;  %v12822_v52 = vld [vmem:[#allocation63_spill] sm:$0xff]  ;;  %v12823_v4 = vld [vmem:[#allocation65_spill] sm:$0xff] }
 0x63e   : > { %8244 = vmatprep.subr.bf16.mxu1 %v12785_v29 }
 0x63f   : > { %3484 = vmatmul.mubr.f32.vlgmr.msra.gmra.mrb[8].mxu0 %v3483_v36  ;;  %v12824_v36 = vld [vmem:[#allocation31_spill] sm:$0xff] }
 0x640   : > { %8057 = vmatpush1.bf16.msra.mxu0 %v12817_v14  ;;  %3714 = vmatprep.mubr.f32.mxu0 %v12789_v9  ;;  %v12825_v14 = vld [vmem:[#allocation66_spill] sm:$0xff] }
 0x641   : > { %8246 = vmatpush3.bf16.msra.mxu1 %v12818_v57  ;;  %8059 = vmatprep.subr.bf16.mxu0 %v12819_v48  ;;  %v12826_v57 = vld [vmem:[#allocation68_spill] sm:$0xff]  ;;  %v12827_v48 = vld [vmem:[#allocation35_spill] sm:$0xff] }
 0x642   : > { %8247 = vmatprep.subr.bf16.mxu1 %v12785_v29 }
 0x644   : > { %8061 = vmatpush1.bf16.msra.mxu0 %v12820_v0  ;;  %v12830_v0 = vld [vmem:[#allocation70_spill] sm:$0xff] }
 0x645   : > { %8249 = vmatpush3.bf16.msra.mxu1 %v12821_v50  ;;  %8063 = vmatprep.subr.bf16.mxu0 %v12822_v52  ;;  %v12829_v50 = vld [vmem:[#allocation32_spill] sm:$0xff]  ;;  %v12831_v52 = vld [vmem:[#allocation34_spill] sm:$0xff] }
 0x646   : > { %8250 = vmatprep.subr.bf16.mxu1 %v12785_v29 }
 0x648   : > { %8065 = vmatpush1.bf16.msra.mxu0 %v12823_v4  ;;  %v12832_v4 = vld [vmem:[#allocation37_spill] sm:$0xff] }
 0x649   : > { %8252 = vmatpush3.bf16.msra.mxu1 %v12824_v36  ;;  %8067 = vmatprep.subr.bf16.mxu0 %v12825_v14  ;;  %v12833_v36 = vld [vmem:[#allocation74_spill] sm:$0xff]  ;;  %v12834_v14 = vld [vmem:[#allocation41_spill] sm:$0xff] }
 0x64a   : > { %8253 = vmatprep.subr.bf16.mxu1 %v12785_v29 }
 0x64c   : > { %8069 = vmatpush1.bf16.msra.mxu0 %v12826_v57  ;;  %v12836_v57 = vld [vmem:[#allocation75_spill] sm:$0xff] }
 0x64d   : > { %8255 = vmatpush3.bf16.msra.mxu1 %v12827_v48  ;;  %8071 = vmatprep.subr.bf16.mxu0 %v12828_v63  ;;  %v12835_v63 = vld [vmem:[#allocation71_spill] sm:$0xff]  ;;  %v12837_v48 = vld [vmem:[#allocation73_spill] sm:$0xff] }
 0x64e   : > { %8256 = vmatprep.subr.bf16.mxu1 %v12785_v29 }
 0x650   : > { %8073 = vmatpush1.bf16.msra.mxu0 %v12829_v50  ;;  %v12838_v50 = vld [vmem:[#allocation77_spill] sm:$0xff] }
 0x651   : > { %8258 = vmatpush3.bf16.msra.mxu1 %v12830_v0  ;;  %8075 = vmatprep.subr.bf16.mxu0 %v12831_v52  ;;  %v12839_v0 = vld [vmem:[#allocation76_spill] sm:$0xff]  ;;  %v12840_v52 = vld [vmem:[#allocation50_spill] sm:$0xff] }
 0x652   : > { %8259 = vmatprep.subr.bf16.mxu1 %v12785_v29 }
 0x654   : > { %8077 = vmatpush1.bf16.msra.mxu0 %v12832_v4  ;;  %v12841_v4 = vld [vmem:[#allocation54_spill] sm:$0xff] }
 0x655   : > { %8261 = vmatpush3.bf16.msra.mxu1 %v12833_v36  ;;  %8079 = vmatprep.subr.bf16.mxu0 %v12834_v14  ;;  %v12842_v36 = vld [vmem:[#allocation80_spill] sm:$0xff]  ;;  %v12843_v14 = vld [vmem:[#allocation55_spill] sm:$0xff] }
 0x656   : > { %8262 = vmatprep.subr.bf16.mxu1 %v12785_v29 }
 0x658   : > { %7352 = vmatmul.mubr.f32.vlgmr.msra.gmra.mrb[8].mxu1 %v11388_v62  ;;  %8081 = vmatpush1.bf16.msra.mxu0 %v12835_v63  ;;  %v12844_v63 = vld [vmem:[#allocation78_spill] sm:$0xff] }
 0x659   : > { %8264 = vmatpush3.bf16.msra.mxu1 %v12836_v57  ;;  %8083 = vmatprep.subr.bf16.mxu0 %v12837_v48  ;;  %v12845_v57 = vld [vmem:[#allocation104_spill] sm:$0xff]  ;;  %v12846_v48 = vld [vmem:[#allocation79_spill] sm:$0xff] }
 0x65a   : > { %8265 = vmatprep.subr.bf16.mxu1 %v12785_v29  ;;  %7386 = vmatprep.mubr.msk.f32.mxu1 %vm9034_vm0, %v12789_v9 }
 0x65c   : > { %8085 = vmatpush1.bf16.msra.mxu0 %v12838_v50  ;;  %v12847_v50 = vld [vmem:[#allocation105_spill] sm:$0xff] }
 0x65d   : > { %8267 = vmatpush3.bf16.msra.mxu1 %v12839_v0  ;;  %8087 = vmatprep.subr.bf16.mxu0 %v12840_v52  ;;  %v12848_v0 = vld [vmem:[#allocation107_spill] sm:$0xff]  ;;  %v12849_v52 = vld [vmem:[#allocation106_spill] sm:$0xff] }
 0x65e   : > { %8268 = vmatprep.subr.bf16.mxu1 %v12785_v29 }
 0x65f   : > { %3716 = vmatmul.mubr.f32.vlgmr.msra.gmra.mrb[8].mxu0 %v11388_v62 }
 0x660   : > { %8089 = vmatpush1.bf16.msra.mxu0 %v12841_v4  ;;  %3850 = vmatprep.mubr.f32.mxu0 %v12789_v9  ;;  %v12850_v4 = vld [vmem:[#allocation108_spill] sm:$0xff] }
 0x661   : > { %8270 = vmatpush3.bf16.msra.mxu1 %v12842_v36  ;;  %8091 = vmatprep.subr.bf16.mxu0 %v12843_v14  ;;  %v12851_v36 = vld [vmem:[#allocation110_spill] sm:$0xff]  ;;  %v12852_v14 = vld [vmem:[#allocation109_spill] sm:$0xff] }
 0x662   : > { %8271 = vmatprep.subr.bf16.mxu1 %v12785_v29 }
 0x664   : > { %8093 = vmatpush1.bf16.msra.mxu0 %v12844_v63  ;;  %v12853_v63 = vld [vmem:[#allocation111_spill] sm:$0xff] }
 0x665   : > { %8273 = vmatpush3.bf16.msra.mxu1 %v12845_v57  ;;  %8095 = vmatprep.subr.bf16.mxu0 %v12846_v48  ;;  %v12854_v57 = vld [vmem:[#allocation113_spill] sm:$0xff]  ;;  %v12855_v48 = vld [vmem:[#allocation112_spill] sm:$0xff] }
 0x666   : > { %8274 = vmatprep.subr.bf16.mxu1 %v12785_v29 }
 0x668   : > { %8097 = vmatpush1.bf16.msra.mxu0 %v12847_v50  ;;  %v12856_v50 = vld [vmem:[#allocation114_spill] sm:$0xff] }
 0x669   : > { %8276 = vmatpush3.bf16.msra.mxu1 %v12848_v0  ;;  %8099 = vmatprep.subr.bf16.mxu0 %v12849_v52  ;;  %v12857_v0 = vld [vmem:[#allocation116_spill] sm:$0xff]  ;;  %v12858_v52 = vld [vmem:[#allocation115_spill] sm:$0xff] }
 0x66a   : > { %8277 = vmatprep.subr.bf16.mxu1 %v12785_v29 }
 0x66c   : > { %8101 = vmatpush1.bf16.msra.mxu0 %v12850_v4  ;;  %v12859_v4 = vld [vmem:[#allocation117_spill] sm:$0xff] }
 0x66d   : > { %8279 = vmatpush3.bf16.msra.mxu1 %v12851_v36  ;;  %8103 = vmatprep.subr.bf16.mxu0 %v12852_v14  ;;  %v12860_v36 = vld [vmem:[#allocation118_spill] sm:$0xff]  ;;  %v12861_v14 = vld [vmem:[#allocation72_spill] sm:$0xff] }
 0x66e   : > { %8280 = vmatprep.subr.bf16.mxu1 %v12785_v29 }
 0x670   : > { %8105 = vmatpush1.bf16.msra.mxu0 %v12853_v63  ;;  %v12863_v63 = vld [vmem:[#allocation85_spill] sm:$0xff] }
 0x671   : > { %8282 = vmatpush3.bf16.msra.mxu1 %v12854_v57  ;;  %8107 = vmatprep.subr.bf16.mxu0 %v12855_v48  ;;  %v12864_v57 = vld [vmem:[#allocation81_spill] sm:$0xff]  ;;  %v12865_v48 = vld [vmem:[#allocation83_spill] sm:$0xff] }
 0x672   : > { %8283 = vmatprep.subr.bf16.mxu1 %v12785_v29 }
 0x674   : > { %8109 = vmatpush1.bf16.msra.mxu0 %v12856_v50  ;;  %v12866_v50 = vld [vmem:[#allocation88_spill] sm:$0xff] }
 0x675   : > { %8285 = vmatpush3.bf16.msra.mxu1 %v12857_v0  ;;  %8111 = vmatprep.subr.bf16.mxu0 %v12858_v52  ;;  %v12867_v0 = vld [vmem:[#allocation84_spill] sm:$0xff]  ;;  %v12868_v52 = vld [vmem:[#allocation86_spill] sm:$0xff] }
 0x676   : > { %8286 = vmatprep.subr.bf16.mxu1 %v12785_v29 }
 0x678   : > { %7387 = vmatmul.mubr.f32.vlgmr.msra.gmra.mrb[8].mxu1 %v11396_v8  ;;  %8113 = vmatpush1.bf16.msra.mxu0 %v12859_v4  ;;  %v12869_v4 = vld [vmem:[#allocation91_spill] sm:$0xff] }
 0x679   : > { %8288 = vmatpush3.bf16.msra.mxu1 %v12787_v16  ;;  %8115 = vmatprep.subr.bf16.mxu0 %v12860_v36  ;;  %v12870_v36 = vld [vmem:[#allocation87_spill] sm:$0xff] }
 0x67a   : > { %8289 = vmatprep.subr.bf16.mxu1 %v12785_v29  ;;  %7421 = vmatprep.mubr.msk.f32.mxu1 %vm9034_vm0, %v12789_v9 }
 0x67c   : > { %8117 = vmatpush1.bf16.msra.mxu0 %v12861_v14  ;;  %v12871_v14 = vld [vmem:[#allocation89_spill] sm:$0xff] }
 0x67d   : > { %8291 = vmatpush3.bf16.msra.mxu1 %v12791_v58  ;;  %8119 = vmatprep.subr.bf16.mxu0 %v12792_v35 }
 0x67e   : > { %8292 = vmatprep.subr.bf16.mxu1 %v12785_v29 }
 0x67f   : > { %3853 = vmatmul.mubr.f32.vlgmr.msra.gmra.mrb[8].mxu0 %v11396_v8  ;;  %v12862_v8 = vld [vmem:[#allocation82_spill] sm:$0xff] }
 0x680   : > { %8121 = vmatpush1.bf16.msra.mxu0 %v12793_v61  ;;  %3955 = vmatprep.mubr.f32.mxu0 %v12789_v9 }
 0x681   : > { %8294 = vmatpush3.bf16.msra.mxu1 %v12794_v56  ;;  %8123 = vmatprep.subr.bf16.mxu0 %v12795_v18 }
 0x682   : > { %8295 = vmatprep.subr.bf16.mxu1 %v12785_v29 }
 0x684   : > { %8125 = vmatpush1.bf16.msra.mxu0 %v12796_v28 }
 0x685   : > { %8297 = vmatpush3.bf16.msra.mxu1 %v12797_v51  ;;  %8127 = vmatprep.subr.bf16.mxu0 %v12798_v5 }
 0x686   : > { %8298 = vmatprep.subr.bf16.mxu1 %v12785_v29 }
 0x688   : > { %8129 = vmatpush1.bf16.msra.mxu0 %v12799_v34 }
 0x689   : > { %8300 = vmatpush3.bf16.msra.mxu1 %v12800_v15  ;;  %8131 = vmatprep.subr.bf16.mxu0 %v12801_v42 }
 0x68a   : > { %8301 = vmatprep.subr.bf16.mxu1 %v12785_v29 }
 0x68c   : > { %8133 = vmatpush1.bf16.msra.mxu0 %v12802_v24 }
 0x68d   : > { %8303 = vmatpush3.bf16.msra.mxu1 %v12803_v19  ;;  %8135 = vmatprep.subr.bf16.mxu0 %v12804_v1 }
 0x68e   : > { %8304 = vmatprep.subr.bf16.mxu1 %v12785_v29 }
 0x690   : > { %8137 = vmatpush1.bf16.msra.mxu0 %v12805_v31 }
 0x691   : > { %8306 = vmatpush3.bf16.msra.mxu1 %v12806_v55  ;;  %8139 = vmatprep.subr.bf16.mxu0 %v12807_v32 }
 0x692   : > { %8307 = vmatprep.subr.bf16.mxu1 %v12785_v29 }
 0x694   : > { %8141 = vmatpush1.bf16.msra.mxu0 %v12808_v20 }
 0x695   : > { %8309 = vmatpush3.bf16.msra.mxu1 %v12809_v47  ;;  %8143 = vmatprep.subr.bf16.mxu0 %v12810_v22 }
 0x696   : > { %8310 = vmatprep.subr.bf16.mxu1 %v12785_v29 }
 0x698   : > { %7422 = vmatmul.mubr.f32.vlgmr.msra.gmra.mrb[8].mxu1 %v11403_v27  ;;  %8145 = vmatpush1.bf16.msra.mxu0 %v12811_v40 }
 0x699   : > { %8312 = vmatpush3.bf16.msra.mxu1 %v12862_v8  ;;  %8147 = vmatprep.subr.bf16.mxu0 %v12813_v46  ;;  %v12873_v8 = vld [vmem:[#allocation90_spill] sm:$0xff] }
 0x69a   : > { %8313 = vmatprep.subr.bf16.mxu1 %v12785_v29  ;;  %7456 = vmatprep.mubr.msk.f32.mxu1 %vm9034_vm0, %v12789_v9 }
 0x69c   : > { %8149 = vmatpush1.bf16.msra.mxu0 %v12814_v7 }
 0x69d   : > { %8315 = vmatpush3.bf16.msra.mxu1 %v12863_v63  ;;  %8151 = vmatprep.subr.bf16.mxu0 %v12864_v57 }
 0x69e   : > { %8316 = vmatprep.subr.bf16.mxu1 %v12785_v29 }
 0x69f   : > { %3959 = vmatmul.mubr.f32.vlgmr.msra.gmra.mrb[8].mxu0 %v11403_v27  ;;  %v12872_v27 = vld [vmem:[#allocation94_spill] sm:$0xff] }
 0x6a0   : > { %8153 = vmatpush1.bf16.msra.mxu0 %v12865_v48  ;;  %4125 = vmatprep.mubr.f32.mxu0 %v12789_v9 }
 0x6a1   : > { %8318 = vmatpush3.bf16.msra.mxu1 %v12866_v50  ;;  %8155 = vmatprep.subr.bf16.mxu0 %v12867_v0  ;;  %v12874_v50 = vld [vmem:[#allocation92_spill] sm:$0xff]  ;;  %v12875_v0 = vld [vmem:[#allocation97_spill] sm:$0xff] }
 0x6a2   : > { %8319 = vmatprep.subr.bf16.mxu1 %v12785_v29 }
 0x6a4   : > { %8157 = vmatpush1.bf16.msra.mxu0 %v12868_v52  ;;  %v12876_v52 = vld [vmem:[#allocation93_spill] sm:$0xff] }
 0x6a5   : > { %8321 = vmatpush3.bf16.msra.mxu1 %v12869_v4  ;;  %8159 = vmatprep.subr.bf16.mxu0 %v12870_v36  ;;  %v12877_v4 = vld [vmem:[#allocation95_spill] sm:$0xff]  ;;  %v12878_v36 = vld [vmem:[#allocation100_spill] sm:$0xff] }
 0x6a6   : > { %8322 = vmatprep.subr.bf16.mxu1 %v12785_v29 }
 0x6a8   : > { %8161 = vmatpush1.bf16.msra.mxu0 %v12871_v14  ;;  %v12879_v14 = vld [vmem:[#allocation96_spill] sm:$0xff] }
 0x6a9   : > { %8324 = vmatpush3.bf16.msra.mxu1 %v12872_v27  ;;  %8163 = vmatprep.subr.bf16.mxu0 %v12873_v8  ;;  %v11560_v8 = vld [vmem:[%s11929_s6] ss:$0 sm:$0xff] }
 0x6aa   : > { %v6619_v63 = vpop.f32.mrb[2].mxu1  ;;  %8325 = vmatprep.subr.bf16.mxu1 %v12785_v29  ;;  %12880 = vst [vmem:[#allocation151_spill] sm:$0xff] %v11560_v8 }
 0x6ab   : > { %v6620_v57 = vpop.f32.mrb[3].mxu1 }
 0x6ac   : > { %v6621_v48 = vadd.f32 %v6620_v57, %v6619_v63  ;;  %8165 = vmatpush1.bf16.msra.mxu0 %v12874_v50  ;;  %v12881_v50 = vld [vmem:[#allocation98_spill] sm:$0xff] }
 0x6ad   : > { %8327 = vmatpush3.bf16.msra.mxu1 %v12875_v0  ;;  %8167 = vmatprep.subr.bf16.mxu0 %v12876_v52  ;;  %v12882_v0 = vld [vmem:[#allocation103_spill] sm:$0xff] }
 0x6ae   : > { %8328 = vmatprep.subr.bf16.mxu1 %v12785_v29  ;;  %v12883_v52 = vld [vmem:[#allocation99_spill] sm:$0xff] }
 0x6b0   : > { %8169 = vmatpush1.bf16.msra.mxu0 %v12877_v4 }
 0x6b1   : > { %8330 = vmatpush3.bf16.msra.mxu1 %v12878_v36  ;;  %8171 = vmatprep.subr.bf16.mxu0 %v12879_v14  ;;  %v12884_v36 = vld [vmem:[#allocation101_spill] sm:$0xff] }
 0x6b2   : > { %v6584_v27 = vpop.f32.mrb[2].mxu0  ;;  %8331 = vmatprep.subr.bf16.mxu1 %v12785_v29 }
 0x6b3   : > { %v6585_v63 = vpop.f32.mrb[3].mxu0 }
 0x6b4   : > { %v6586_v57 = vadd.f32 %v6585_v63, %v6584_v27  ;;  %8173 = vmatpush1.bf16.msra.mxu0 %v12881_v50  ;;  %v12886_v27 = vld [vmem:[#allocation43_spill] sm:$0xff]  ;;  %v12902_v63 = vld [vmem:[#allocation169_spill] sm:$0xff] }
 0x6b5   : > { %8333 = vmatpush3.bf16.msra.mxu1 %v12882_v0  ;;  %8175 = vmatprep.subr.bf16.mxu0 %v12883_v52  ;;  %v12903_v0 = vld [vmem:[#allocation168_spill] sm:$0xff] }
 0x6b6   : > { %v2620_v4 = vadd.f32 %v6586_v57, %v11560_v8  ;;  %8334 = vmatprep.subr.bf16.mxu1 %v12785_v29 }
 0x6b8   : > { %7457 = vmatmul.mubr.f32.vlgmr.msra.gmra.mrb[8].mxu1 %v11388_v62  ;;  %8177 = vmatpush1.bf16.msra.mxu0 %v12884_v36  ;;  %v2852_v14 = vadd.f32 %v6621_v48, %v2620_v4 }
 0x6b9   : > { %8336 = vmatpush3.bf16.msra.mxu1 %v12787_v16  ;;  %8179 = vmatprep.subr.bf16.mxu0 %v12885_v33 }
 0x6ba   : > { %8337 = vmatprep.subr.bf16.mxu1 %v12785_v29  ;;  %7491 = vmatprep.mubr.msk.f32.mxu1 %vm9034_vm0, %v12789_v9 }
 0x6bc   : > { %8181 = vmatpush1.bf16.msra.mxu0 %v12886_v27 }
 0x6bd   : > { %8339 = vmatpush3.bf16.msra.mxu1 %v12791_v58  ;;  %8183 = vmatprep.subr.bf16.mxu0 %v12792_v35 }
 0x6be   : > { %8340 = vmatprep.subr.bf16.mxu1 %v12785_v29 }
 0x6bf   : > { %4127 = vmatmul.mubr.f32.vlgmr.msra.gmra.mrb[8].mxu0 %v11388_v62 }
 0x6c0   : > { %8185 = vmatpush1.bf16.msra.mxu0 %v12793_v61  ;;  %4229 = vmatprep.mubr.f32.mxu0 %v12789_v9 }
 0x6c1   : > { %8342 = vmatpush3.bf16.msra.mxu1 %v12794_v56  ;;  %8187 = vmatprep.subr.bf16.mxu0 %v12795_v18 }
 0x6c2   : > { %8343 = vmatprep.subr.bf16.mxu1 %v12785_v29 }
 0x6c4   : > { %8189 = vmatpush1.bf16.msra.mxu0 %v12796_v28 }
 0x6c5   : > { %8345 = vmatpush3.bf16.msra.mxu1 %v12797_v51  ;;  %8191 = vmatprep.subr.bf16.mxu0 %v12798_v5  ;;  %v12898_v51 = vld [vmem:[#allocation160_spill] sm:$0xff]  ;;  %v12899_v5 = vld [vmem:[#allocation162_spill] sm:$0xff] }
 0x6c6   : > { %8346 = vmatprep.subr.bf16.mxu1 %v12785_v29 }
 0x6c8   : > { %8193 = vmatpush1.bf16.msra.mxu0 %v12799_v34 }
 0x6c9   : > { %8348 = vmatpush3.bf16.msra.mxu1 %v12800_v15  ;;  %8195 = vmatprep.subr.bf16.mxu0 %v12801_v42  ;;  %v12901_v15 = vld [vmem:[#allocation166_spill] sm:$0xff] }
 0x6ca   : > { %v6689_v33 = vpop.f32.mrb[4].mxu1  ;;  %8349 = vmatprep.subr.bf16.mxu1 %v12785_v29 }
 0x6cb   : > { %v6690_v16 = vpop.f32.mrb[5].mxu1 }
 0x6cc   : > { %v6691_v9 = vadd.f32 %v6690_v16, %v6689_v33  ;;  %8197 = vmatpush1.bf16.msra.mxu0 %v12802_v24  ;;  %v12897_v24 = vld [vmem:[#allocation159_spill] sm:$0xff] }
 0x6cd   : > { %8351 = vmatpush3.bf16.msra.mxu1 %v12803_v19  ;;  %8199 = vmatprep.subr.bf16.mxu0 %v12804_v1  ;;  %v12887_v19 = vld [vmem:[#allocation132_spill] sm:$0xff]  ;;  %v12904_v33 = vld [vmem:[#allocation51_spill] sm:$0xff] }
 0x6ce   : > { %8352 = vmatprep.subr.bf16.mxu1 %v12785_v29 }
 0x6d0   : > { %8201 = vmatpush1.bf16.msra.mxu0 %v12805_v31  ;;  %v12889_v31 = vld [vmem:[#allocation134_spill] sm:$0xff] }
 0x6d1   : > { %8354 = vmatpush3.bf16.msra.mxu1 %v12806_v55  ;;  %8203 = vmatprep.subr.bf16.mxu0 %v12807_v32  ;;  %v12888_v32 = vld [vmem:[#allocation133_spill] sm:$0xff] }
 0x6d2   : > { %v6654_v58 = vpop.f32.mrb[4].mxu0  ;;  %8355 = vmatprep.subr.bf16.mxu1 %v12785_v29  ;;  %v12896_v29 = vld [vmem:[#allocation157_spill] sm:$0xff] }
 0x6d3   : > { %v6655_v35 = vpop.f32.mrb[5].mxu0 }
 0x6d4   : > { %v6656_v61 = vadd.f32 %v6655_v35, %v6654_v58  ;;  %8205 = vmatpush1.bf16.msra.mxu0 %v12808_v20  ;;  %v12890_v20 = vld [vmem:[#allocation136_spill] sm:$0xff]  ;;  %v12905_v58 = vld [vmem:[#allocation119_spill] sm:$0xff] }
 0x6d5   : > { %8357 = vmatpush3.bf16.msra.mxu1 %v12809_v47  ;;  %8207 = vmatprep.subr.bf16.mxu0 %v12810_v22  ;;  %v12891_v22 = vld [vmem:[#allocation144_spill] sm:$0xff] }
 0x6d6   : > { %v2990_v1 = vadd.f32 %v6656_v61, %v2852_v14  ;;  %8391 = vmatprep.subr.bf16.mxu1 %v12887_v19  ;;  %v12894_v47 = vld [vmem:[#allocation152_spill] sm:$0xff] }
 0x6d7   : > { %v6433_v14 = vld [vmem:[%s9301_s25 + $0x18] sm:$0xff] }
 0x6d8   : > { %7492 = vmatmul.mubr.f32.vlgmr.msra.gmra.mrb[8].mxu1 %v11388_v62  ;;  %8209 = vmatpush1.bf16.msra.mxu0 %v12811_v40  ;;  %v3098_v55 = vadd.f32 %v6691_v9, %v2990_v1  ;;  %v12892_v40 = vld [vmem:[#allocation146_spill] sm:$0xff]  ;;  %v6434_v1 = vld [vmem:[%s9301_s25 + $0x20] sm:$0xff] }
 0x6d9   : > { %8211 = vmatprep.subr.bf16.mxu0 %v12813_v46  ;;  %8393 = vmatpush3.bf16.msra.mxu1 %v12888_v32  ;;  %v12893_v46 = vld [vmem:[#allocation148_spill] sm:$0xff] }
 0x6da   : > { %8395 = vmatprep.subr.bf16.mxu1 %v12889_v31 }
 0x6dc   : > { %8213 = vmatpush1.bf16.msra.mxu0 %v12814_v7  ;;  %v12895_v7 = vld [vmem:[#allocation156_spill] sm:$0xff] }
 0x6dd   : > { %8397 = vmatpush3.bf16.msra.mxu1 %v12890_v20  ;;  %8359 = vmatprep.subr.bf16.mxu0 %v10876_v10 }
 0x6de   : > { %8399 = vmatprep.subr.bf16.mxu1 %v12891_v22 }
 0x6df   : > { %4231 = vmatmul.mubr.f32.vlgmr.msra.gmra.mrb[8].mxu0 %v11388_v62  ;;  %v12900_v62 = vld [vmem:[#allocation164_spill] sm:$0xff] }
 0x6e0   : > { %8361 = vmatpush3.bf16.msra.mxu0 %v12740_v2 }
 0x6e1   : > { %8401 = vmatpush3.bf16.msra.mxu1 %v12892_v40  ;;  %8363 = vmatprep.subr.bf16.mxu0 %v12741_v6 }
 0x6e2   : > { %8403 = vmatprep.subr.bf16.mxu1 %v12893_v46  ;;  %v12906_v46 = vld [vmem:[#allocation121_spill] sm:$0xff] }
 0x6e4   : > { %8365 = vmatpush3.bf16.msra.mxu0 %v12742_v44 }
 0x6e5   : > { %8405 = vmatpush3.bf16.msra.mxu1 %v12894_v47  ;;  %8367 = vmatprep.subr.bf16.mxu0 %v12743_v60 }
 0x6e6   : > { %8407 = vmatprep.subr.bf16.mxu1 %v12895_v7 }
 0x6e8   : > { %8369 = vmatpush3.bf16.msra.mxu0 %v12744_v39 }
 0x6e9   : > { %8409 = vmatpush3.bf16.msra.mxu1 %v12896_v29  ;;  %8371 = vmatprep.subr.bf16.mxu0 %v12745_v43  ;;  %v6435_v29 = vld [vmem:[%s9301_s25 + $0x28] sm:$0xff]  ;;  %s8916_s25 = scalar_lea.vmem %s11838_s10, 256 }
 0x6ea   : > { %8411 = vmatprep.subr.bf16.mxu1 %v12897_v24  ;;  %p8917_p6 = scmp.ne.s32.totalorder %s11838_s10, %s8916_s25  ;;  %p8924_p10 = scmp.lt.s32.totalorder %s8922_s20, %s8916_s25 }
 0x6eb   : > { %v6759_v56 = vpop.f32.mrb[6].mxu1 }
 0x6ec   : > { %v6760_v18 = vpop.f32.mrb[7].mxu1  ;;  %8373 = vmatpush3.bf16.msra.mxu0 %v12746_v37  ;;  %p8918_p9 = pnand %p8917_p6, %p9242_p1  ;;  %p8925_p13 = por %p8924_p10, %p8923_p7 }
 0x6ed   : > { %v6761_v28 = vadd.f32 %v6760_v18, %v6759_v56  ;;  %8413 = vmatpush3.bf16.msra.mxu1 %v12898_v51  ;;  %8375 = vmatprep.subr.bf16.mxu0 %v12747_v13 }
 0x6ee   : > { %8415 = vmatprep.subr.bf16.mxu1 %v12899_v5  ;;  %p8919_p3 = pneg %p8918_p9 }
 0x6f0   : > { %8377 = vmatpush3.bf16.msra.mxu0 %v12748_v45  ;;  %p8926_p0 = pnand %p8925_p13, %p8919_p3 }
 0x6f1   : > { %8417 = vmatpush3.bf16.msra.mxu1 %v12900_v62  ;;  %8379 = vmatprep.subr.bf16.mxu0 %v12749_v26 }
 0x6f2   : > { %v6724_v34 = vpop.f32.mrb[6].mxu0  ;;  %8419 = vmatprep.subr.bf16.mxu1 %v12901_v15  ;;  %v12907_v15 = vld [vmem:[#allocation122_spill] sm:$0xff] }
 0x6f3   : > { %v6725_v42 = vpop.f32.mrb[7].mxu0 }
 0x6f4   : > { %v6726_v48 = vadd.f32 %v6725_v42, %v6724_v34  ;;  %8381 = vmatpush3.bf16.msra.mxu0 %v11106_v21 }
 0x6f5   : > { %8421 = vmatpush3.bf16.msra.mxu1 %v12902_v63  ;;  %8383 = vmatprep.subr.bf16.mxu0 %v11089_v17 }
 0x6f6   : > { %v3266_v57 = vadd.f32 %v6726_v48, %v3098_v55  ;;  %8455 = vmatprep.subr.bf16.mxu1 %v10876_v10 }
 0x6f8   : > { %v3370_v50 = vadd.f32 %v6761_v28, %v3266_v57  ;;  %8385 = vmatpush3.bf16.msra.mxu0 %v11113_v30  ;;  %v12916_v30 = vld [vmem:[#allocation131_spill] sm:$0xff] }
 0x6f9   : > { %8387 = vmatprep.subr.bf16.mxu0 %v11118_v59 }
 0x6fa   : > { %8732 = vtanh.f32 %v3370_v50 }
 0x6fc   : > { %8389 = vmatpush3.bf16.msra.mxu0 %v11137_v25 }
 0x6fd   : > { %8423 = vmatprep.subr.bf16.mxu0 %v12903_v0  ;;  %v12908_v0 = vld [vmem:[#allocation53_spill] sm:$0xff] }
 0x704   : > { %v8733_v52 = vpop.eup %8732 }
 0x705   : > { %3374 = vst [vmem:[%s9316_s23] sm:$0xff] %v8733_v52 }
 0x7ab   : > { %v4874_v4 = vpop.f32.mrb[8].mxu1 }
 0x7ac   : > { %v7493_v36 = vpop.f32.mrb[9].mxu1  ;;  %v8555_v47 = vadd.f32 %v4874_v4, %v12906_v46 }
 0x7ad   : > { %v11663_v36 = vld [vmem:[#allocation8] sm:$0xff] }
 0x7b2   : > { %v4232_v27 = vpop.f32.mrb[8].mxu0 }
 0x7b3   : > { %v8553_v16 = vadd.f32 %v4232_v27, %v12904_v33  ;;  %v4234_v9 = vpop.f32.mrb[9].mxu0 }
 0x7b4   : > { %v8554_v35 = vadd.f32 %v4234_v9, %v12905_v58  ;;  %v11669_v9 = vld [vmem:[#allocation8 + $0x8] sm:$0xff] }
 0x7b5   : > { %v4878_v61 = vadd.f32 %v8553_v16, %v6433_v14 }
 0x7b6   : > { %v4885_v55 = vadd.f32 %v8554_v35, %v6434_v1  ;;  %v11672_v35 = vld [vmem:[#allocation8 + $0x10] sm:$0xff] }
 0x7b7   : > { %v6436_v19 = vmul.f32 -1.442695, %v4878_v61 }
 0x7b8   : > { %v6437_v32 = vmul.f32 -1.442695, %v4885_v55 }
 0x7b9   : > { %8734 = vpow2.f32 %v6436_v19 }
 0x7ba   : > { %8736 = vpow2.f32 %v6437_v32  ;;  %v11676_v32 = vld [vmem:[#allocation8 + $0x20] sm:$0xff] }
 0x7c3   : > { %v8735_v31 = vpop.eup %8734 }
 0x7c4   : > { %v4882_v20 = vadd.f32 1.0, %v8735_v31  ;;  %v8737_v22 = vpop.eup %8736 }
 0x7c5   : > { %v4889_v40 = vadd.f32 1.0, %v8737_v22 }
 0x7c6   : > { %8738 = vrcp.f32 %v4882_v20 }
 0x7c7   : > { %8740 = vrcp.f32 %v4889_v40  ;;  %v11681_v40 = vld [vmem:[#allocation8 + $0x18] sm:$0xff] }
 0x7d0   : > { %v8739_v7 = vpop.eup %8738 }
 0x7d1   : > { %v4892_v24 = vmul.f32 %v8739_v7, %v8555_v47  ;;  %v8741_v18 = vpop.eup %8740 }
 0x7d2   : > { %v4895_v28 = vsub.f32 1.0, %v8741_v18  ;;  %v4897_v62 = vmul.f32 %v8741_v18, %v11381_v49 }
 0x7d3   : > { %v4893_v56 = vadd.f32 %v6435_v29, %v4892_v24  ;;  %v11685_v29 = vld [vmem:[#allocation8 + $0x28] sm:$0xff] }
 0x7d5   : > { %8742 = vtanh.f32 %v4893_v56 }
 0x7df   : > { %v8743_v51 = vpop.eup %8742 }
 0x7e0   : > { %v4896_v5 = vmul.f32 %v8743_v51, %v4895_v28  ;;  %v11689_v28 = vld [vmem:[#allocation8 + $0x30] sm:$0xff] }
 0x7e2   : > { %v11650_v34 = vadd.f32 %v4897_v62, %v4896_v5  ;;  %v11693_v62 = vld [vmem:[#allocation8 + $0x38] sm:$0xff] }
 0x7e4   : > { %6233 = vst [vmem:[#allocation2] sm:$0xff] %v11650_v34  ;;  %6439 = vst [vmem:[%s9318_s15 + $0x8] sm:$0xff] %v11650_v34  ;;  %v4907_v42 = vrot.slane %v11650_v34, %v12907_v15  ;;  %v4900_v48 = vcombine.high %v11650_v34, %v11650_v34 }
 0x7e6   : > { %v4923_v63 = vrot.slane %v4907_v42, %v12907_v15  ;;  %v4915_v57 = vcombine.high %v4907_v42, %v4907_v42  ;;  %v4914_v50 = vrot.slane %v4900_v48, %v12907_v15 }
 0x7e8   : > { %v4952_v52 = vrot.slane %v4923_v63, %v12908_v0  ;;  %v4937_v49 = vrot.slane %v4915_v57, %v12907_v15  ;;  %v4945_v4 = vcombine.high %v4923_v63, %v4923_v63  ;;  %v4930_v16 = vrot.slane %v4914_v50, %v12907_v15 }
 0x7e9   : > { %v4916_v55 = vcombine.high %v4914_v50, %v4914_v50 }
 0x7ea   : > { %v4989_v14 = vmul.f32 %v11663_v36, %v4952_v52  ;;  %v4956_v27 = vrot.slane %v4937_v49, %v12908_v0  ;;  %v4960_v33 = vrot.slane %v4945_v4, %v12908_v0  ;;  %v4968_v1 = vrot.slane %v4930_v16, %v12908_v0  ;;  %v12909_v52 = vld [vmem:[#allocation126_spill] sm:$0xff] }
 0x7eb   : > { %v4947_v19 = vcombine.high %v4937_v49, %v4937_v49  ;;  %v4944_v22 = vrot.slane %v4916_v55, %v12907_v15  ;;  %v4946_v7 = vcombine.high %v4930_v16, %v4930_v16 }
 0x7ec   : > { %4997 = vadd.xlane.f32.xlu1 %v4989_v14  ;;  %v4990_v58 = vmul.f32 %v11669_v9, %v4956_v27  ;;  %v4991_v61 = vmul.f32 %v11672_v35, %v4960_v33  ;;  %v4993_v31 = vmul.f32 %v11676_v32, %v4968_v1 }
 0x7ed   : > { %v4964_v20 = vrot.slane %v4947_v19, %v12908_v0  ;;  %v4972_v47 = vrot.slane %v4944_v22, %v12908_v0  ;;  %v4976_v56 = vrot.slane %v4946_v7, %v12908_v0  ;;  %v4948_v18 = vcombine.high %v4944_v22, %v4944_v22 }
 0x7ee   : > { %4999 = vadd.xlane.f32.xlu0 %v4990_v58 }
 0x7ef   : > { %v4992_v46 = vmul.f32 %v11681_v40, %v4964_v20  ;;  %v4994_v24 = vmul.f32 %v11685_v29, %v4972_v47  ;;  %v4995_v51 = vmul.f32 %v11689_v28, %v4976_v56  ;;  %v4980_v5 = vrot.slane %v4948_v18, %v12908_v0 }
 0x7f0   : > { %5001 = vadd.xlane.f32.xlu1 %v4991_v61 }
 0x7f1   : > { %v4996_v15 = vmul.f32 %v11693_v62, %v4980_v5  ;;  %v12910_v5 = vld [vmem:[#allocation56_spill] sm:$0xff] }
 0x7f4   : > { %5005 = vadd.xlane.f32.xlu1 %v4993_v31 }
 0x7f8   : > { %5003 = vadd.xlane.f32.xlu1 %v4992_v46 }
 0x7fc   : > { %5007 = vadd.xlane.f32.xlu1 %v4994_v24 }
 0x800   : > { %5009 = vadd.xlane.f32.xlu1 %v4995_v51 }
 0x804   : > { %5011 = vadd.xlane.f32.xlu1 %v4996_v15 }
 0x879   : > { %v4998_v42 = vpop.xlane.xlu1 %4997 }
 0x87a   : > { %v5024_v4 = vrot.slane %v4998_v42, %v12909_v52 }
 0x87b   : > { %v5000_v57 = vpop.xlane.xlu0 %4999 }
 0x87c   : > { %v5028_v49 = vrot.slane %v5000_v57, %v12909_v52 }
 0x87d   : > { %v5002_v48 = vpop.xlane.xlu1 %5001 }
 0x87e   : > { %v5032_v14 = vrot.slane %v5002_v48, %v12909_v52  ;;  %v5053_v33 = vsel %vm2184_vm1, %v5028_v49, %v5024_v4  ;;  %v12911_v49 = vld [vmem:[#allocation120_spill] sm:$0xff] }
 0x880   : > { %v5054_v58 = vsel %vm2186_vm2, %v5032_v14, %v5053_v33  ;;  %v12912_v14 = vld [vmem:[#allocation128_spill] sm:$0xff] }
 0x881   : > { %v5006_v63 = vpop.xlane.xlu1 %5005 }
 0x882   : > { %v5040_v55 = vrot.slane %v5006_v63, %v12909_v52 }
 0x885   : > { %v5004_v50 = vpop.xlane.xlu1 %5003 }
 0x886   : > { %v5036_v16 = vrot.slane %v5004_v50, %v12909_v52 }
 0x888   : > { %v5055_v1 = vsel %vm2188_vm3, %v5036_v16, %v5054_v58  ;;  %v12913_v16 = vld [vmem:[#allocation127_spill] sm:$0xff] }
 0x889   : > { %v5008_v27 = vpop.xlane.xlu1 %5007  ;;  %v5056_v22 = vsel %vm2190_vm4, %v5040_v55, %v5055_v1 }
 0x88a   : > { %v5044_v19 = vrot.slane %v5008_v27, %v12909_v52 }
 0x88c   : > { %v5057_v47 = vsel %vm2192_vm5, %v5044_v19, %v5056_v22 }
 0x88d   : > { %v5010_v61 = vpop.xlane.xlu1 %5009 }
 0x88e   : > { %v5048_v31 = vrot.slane %v5010_v61, %v12909_v52 }
 0x890   : > { %v5058_v7 = vsel %vm2194_vm6, %v5048_v31, %v5057_v47  ;;  %v12914_v31 = vld [vmem:[#allocation130_spill] sm:$0xff] }
 0x891   : > { %v5012_v20 = vpop.xlane.xlu1 %5011 }
 0x892   : > { %v5052_v46 = vrot.slane %v5012_v20, %v12909_v52 }
 0x894   : > { %v5059_v24 = vsel %vm2196_vm7, %v5052_v46, %v5058_v7 }
 0x895   : > { %v5061_v56 = vsel %vm2199_vm8, %v5059_v24, -inf  ;;  %v12915_v24 = vld [vmem:[#allocation129_spill] sm:$0xff] }
 0x896   : > { %5062 = vmax.xlane.f32.xlu1 %v5061_v56 }
 0x923   : > { %v5063_v18 = vpop.xlane.xlu1 %5062 }
 0x924   : > { %v5068_v51 = vrot.slane %v5063_v18, %v12908_v0  ;;  %v5072_v15 = vrot.slane %v5063_v18, %v12910_v5  ;;  %v5076_v4 = vrot.slane %v5063_v18, %v12911_v49  ;;  %v5084_v33 = vrot.slane %v5063_v18, %v12912_v14 }
 0x925   : > { %v5080_v58 = vrot.slane %v5063_v18, %v12913_v16  ;;  %v5092_v22 = vrot.slane %v5063_v18, %v12914_v31  ;;  %v5088_v56 = vrot.slane %v5063_v18, %v12915_v24  ;;  %v5096_v17 = vrot.slane %v5063_v18, %v12916_v30 }
 0x926   : > { %v5105_v1 = vsub.f32 %v4998_v42, %v5068_v51  ;;  %v5106_v19 = vsub.f32 %v5000_v57, %v5072_v15  ;;  %v5107_v55 = vsub.f32 %v5002_v48, %v5076_v4  ;;  %v5109_v46 = vsub.f32 %v5006_v63, %v5084_v33 }
 0x927   : > { %v5108_v8 = vsub.f32 %v5004_v50, %v5080_v58  ;;  %v5111_v25 = vsub.f32 %v5010_v61, %v5092_v22  ;;  %v5110_v38 = vsub.f32 %v5008_v27, %v5088_v56  ;;  %v5112_v57 = vsub.f32 %v5012_v20, %v5096_v17 }
 0x928   : > { %v5113_v47 = vmul.f32 1.442695, %v5105_v1  ;;  %v5115_v7 = vmul.f32 1.442695, %v5106_v19  ;;  %v5117_v10 = vmul.f32 1.442695, %v5107_v55 }
 0x929   : > { %v5121_v59 = vmul.f32 1.442695, %v5109_v46  ;;  %v5119_v42 = vmul.f32 1.442695, %v5108_v8  ;;  %v5125_v48 = vmul.f32 1.442695, %v5111_v25 }
 0x92a   : > { %8744 = vpow2.f32 %v5113_v47  ;;  %v5123_v63 = vmul.f32 1.442695, %v5110_v38  ;;  %v5127_v50 = vmul.f32 1.442695, %v5112_v57 }
 0x92b   : > { %8746 = vpow2.f32 %v5115_v7 }
 0x92c   : > { %8748 = vpow2.f32 %v5117_v10 }
 0x92d   : > { %8750 = vpow2.f32 %v5121_v59 }
 0x92e   : > { %8752 = vpow2.f32 %v5119_v42 }
 0x92f   : > { %8754 = vpow2.f32 %v5125_v48 }
 0x930   : > { %8756 = vpow2.f32 %v5123_v63 }
 0x931   : > { %8758 = vpow2.f32 %v5127_v50 }
 0x934   : > { %v8745_v51 = vpop.eup %8744 }
 0x935   : > { %v8747_v15 = vpop.eup %8746  ;;  %5138 = vperm.xlu1 %8702, %v8745_v51  }
 0x936   : > { %5141 = vperm.xlu0 %8703, %v8747_v15   ;;  %v8749_v61 = vpop.eup %8748 }
 0x937   : > { %v8751_v4 = vpop.eup %8750 }
 0x938   : > { %v8753_v27 = vpop.eup %8752 }
 0x939   : > { %5144 = vperm.xlu1 %8702, %v8749_v61   ;;  %v8755_v10 = vpop.eup %8754 }
 0x93a   : > { %5150 = vperm.xlu0 %8703, %v8751_v4   ;;  %v8757_v59 = vpop.eup %8756 }
 0x93b   : > { %v8759_v17 = vpop.eup %8758 }
 0x93d   : > { %5147 = vperm.xlu1 %8702, %v8753_v27  }
 0x93e   : > { %5156 = vperm.xlu0 %8703, %v8755_v10  }
 0x941   : > { %5153 = vperm.xlu1 %8702, %v8757_v59  }
 0x945   : > { %5159 = vperm.xlu1 %8702, %v8759_v17  }
 0x9b4   : > { %v5139_v25 = vpop.permute.xlu1 %5138 }
 0x9b5   : > { %v5142_v38 = vpop.permute.xlu0 %5141  ;;  %v5164_v18 = vrot.slane %v5139_v25, %v12909_v52 }
 0x9b6   : > { %v5168_v20 = vrot.slane %v5142_v38, %v12909_v52 }
 0x9b8   : > { %v5145_v8 = vpop.permute.xlu1 %5144  ;;  %v5193_v19 = vsel %vm2184_vm1, %v5168_v20, %v5164_v18 }
 0x9b9   : > { %v5172_v33 = vrot.slane %v5145_v8, %v12909_v52  ;;  %v5151_v58 = vpop.permute.xlu0 %5150 }
 0x9ba   : > { %v5180_v47 = vrot.slane %v5151_v58, %v12909_v52 }
 0x9bb   : > { %v5194_v22 = vsel %vm2186_vm2, %v5172_v33, %v5193_v19 }
 0x9bc   : > { %v5148_v1 = vpop.permute.xlu1 %5147 }
 0x9bd   : > { %v5176_v55 = vrot.slane %v5148_v1, %v12909_v52  ;;  %v5157_v56 = vpop.permute.xlu0 %5156 }
 0x9be   : > { %v5188_v63 = vrot.slane %v5157_v56, %v12909_v52 }
 0x9bf   : > { %v5195_v46 = vsel %vm2188_vm3, %v5176_v55, %v5194_v22 }
 0x9c0   : > { %v5154_v7 = vpop.permute.xlu1 %5153  ;;  %v5196_v48 = vsel %vm2190_vm4, %v5180_v47, %v5195_v46 }
 0x9c1   : > { %v5184_v42 = vrot.slane %v5154_v7, %v12909_v52 }
 0x9c3   : > { %v5197_v57 = vsel %vm2192_vm5, %v5184_v42, %v5196_v48 }
 0x9c4   : > { %v5160_v50 = vpop.permute.xlu1 %5159  ;;  %v5198_v38 = vsel %vm2194_vm6, %v5188_v63, %v5197_v57 }
 0x9c5   : > { %v5192_v25 = vrot.slane %v5160_v50, %v12909_v52 }
 0x9c7   : > { %v5199_v8 = vsel %vm2196_vm7, %v5192_v25, %v5198_v38 }
 0x9c8   : > { %v5201_v20 = vsel %vm2199_vm8, %v5199_v8, 0.0 }
 0x9c9   : > { %5202 = vadd.xlane.f32.xlu0 %v5201_v20 }
 0xa56   : > { %v5203_v18 = vpop.xlane.xlu0 %5202 }
 0xa57   : > { %8760 = vrcp.f32 %v5203_v18 }
 0xa61   : > { %v8761_v33 = vpop.eup %8760 }
 0xa62   : > { %v5209_v58 = vrot.slane %v8761_v33, %v12908_v0  ;;  %v5213_v19 = vrot.slane %v8761_v33, %v12910_v5  ;;  %v5217_v22 = vrot.slane %v8761_v33, %v12911_v49  ;;  %v5221_v46 = vrot.slane %v8761_v33, %v12913_v16 }
 0xa63   : > { %v5225_v7 = vrot.slane %v8761_v33, %v12912_v14  ;;  %v5229_v42 = vrot.slane %v8761_v33, %v12915_v24  ;;  %v5233_v5 = vrot.slane %v8761_v33, %v12914_v31  ;;  %v5237_v49 = vrot.slane %v8761_v33, %v12916_v30 }
 0xa64   : > { %v5246_v1 = vmul.f32 %v8745_v51, %v5209_v58  ;;  %v5247_v55 = vmul.f32 %v8747_v15, %v5213_v19  ;;  %v5248_v52 = vmul.f32 %v8749_v61, %v5217_v22  ;;  %v5249_v47 = vmul.f32 %v8753_v27, %v5221_v46 }
 0xa65   : > { %v5250_v56 = vmul.f32 %v8751_v4, %v5225_v7  ;;  %v5251_v0 = vmul.f32 %v8757_v59, %v5229_v42  ;;  %v5252_v51 = vmul.f32 %v8755_v10, %v5233_v5  ;;  %v5253_v15 = vmul.f32 %v8759_v17, %v5237_v49 }
 0xa66   : > { %5256 = vperm.xlu1 %8702, %v5246_v1  }
 0xa6a   : > { %5261 = vperm.xlu1 %8702, %v5247_v55  }
 0xa6e   : > { %5266 = vperm.xlu1 %8702, %v5248_v52  }
 0xa72   : > { %5271 = vperm.xlu1 %8702, %v5249_v47  }
 0xa76   : > { %5276 = vperm.xlu1 %8702, %v5250_v56  }
 0xa7a   : > { %5281 = vperm.xlu1 %8702, %v5251_v0  }
 0xa7e   : > { %5286 = vperm.xlu1 %8702, %v5252_v51  }
 0xa82   : > { %5291 = vperm.xlu1 %8702, %v5253_v15  }
 0xae5   : > { %v5257_v16 = vpop.permute.xlu1 %5256 }
 0xae6   : > { %v5294_v24 = vmul.f32 %v11663_v36, %v5257_v16 }
 0xae8   : > { %v5302_v10 = vrot.slane %v5294_v24, 4 }
 0xae9   : > { %v5262_v61 = vpop.permute.xlu1 %5261 }
 0xaea   : > { %v5295_v14 = vmul.f32 %v11669_v9, %v5262_v61  ;;  %v5303_v38 = vadd.f32 %v5302_v10, %v5294_v24 }
 0xaec   : > { %v5308_v59 = vrot.slane %v5295_v14, 4  ;;  %v5304_v58 = vrot.slane %v5303_v38, 2 }
 0xaed   : > { %v5267_v27 = vpop.permute.xlu1 %5266 }
 0xaee   : > { %v5296_v4 = vmul.f32 %v11672_v35, %v5267_v27  ;;  %v5309_v50 = vadd.f32 %v5308_v59, %v5295_v14  ;;  %v5305_v47 = vadd.f32 %v5304_v58, %v5303_v38 }
 0xaf0   : > { %v5314_v57 = vrot.slane %v5296_v4, 4  ;;  %v5310_v18 = vrot.slane %v5309_v50, 2  ;;  %v5306_v61 = vrot.slane %v5305_v47, 1 }
 0xaf1   : > { %v5272_v48 = vpop.permute.xlu1 %5271 }
 0xaf2   : > { %v5297_v31 = vmul.f32 %v11681_v40, %v5272_v48  ;;  %v5315_v25 = vadd.f32 %v5314_v57, %v5296_v4  ;;  %v5311_v22 = vadd.f32 %v5310_v18, %v5309_v50  ;;  %v5307_v10 = vadd.f32 %v5306_v61, %v5305_v47  ;;  %v12944_v61 = vld [vmem:[#allocation184_spill] sm:$0xff] }
 0xaf4   : > { %v5320_v63 = vrot.slane %v5297_v31, 4  ;;  %v5316_v33 = vrot.slane %v5315_v25, 2  ;;  %v5312_v51 = vrot.slane %v5311_v22, 1 }
 0xaf5   : > { %v5277_v30 = vpop.permute.xlu1 %5276 }
 0xaf6   : > { %v5298_v17 = vmul.f32 %v11676_v32, %v5277_v30  ;;  %v5321_v8 = vadd.f32 %v5320_v63, %v5297_v31  ;;  %v5317_v32 = vadd.f32 %v5316_v33, %v5315_v25  ;;  %v5313_v48 = vadd.f32 %v5312_v51, %v5311_v22  ;;  %v12928_v51 = vld [vmem:[#allocation176_spill] sm:$0xff] }
 0xaf8   : > { %v5326_v20 = vrot.slane %v5298_v17, 4  ;;  %v5322_v1 = vrot.slane %v5321_v8, 2  ;;  %v5318_v16 = vrot.slane %v5317_v32, 1  ;;  %v5358_v25 = vsel %vm2184_vm1, %v5313_v48, %v5307_v10 }
 0xaf9   : > { %v5282_v9 = vpop.permute.xlu1 %5281 }
 0xafa   : > { %v5327_v35 = vadd.f32 %v5326_v20, %v5298_v17  ;;  %v5299_v36 = vmul.f32 %v11685_v29, %v5282_v9  ;;  %v5323_v7 = vadd.f32 %v5322_v1, %v5321_v8  ;;  %v5319_v57 = vadd.f32 %v5318_v16, %v5317_v32  ;;  %v12933_v16 = vld [vmem:[#allocation141_spill] sm:$0xff] }
 0xafb   : > { %v11754_v8 = vand.u32 4294901760, %v11650_v34 }
 0xafc   : > { %v5332_v40 = vrot.slane %v5299_v36, 4  ;;  %v5328_v19 = vrot.slane %v5327_v35, 2  ;;  %v5324_v27 = vrot.slane %v5323_v7, 1  ;;  %v5359_v20 = vsel %vm2186_vm2, %v5319_v57, %v5358_v25 }
 0xafd   : > { %v5287_v55 = vpop.permute.xlu1 %5286  ;;  %v5469_v1 = vsub.f32 %v11650_v34, %v11754_v8 }
 0xafe   : > { %v5333_v52 = vadd.f32 %v5332_v40, %v5299_v36  ;;  %v5300_v46 = vmul.f32 %v11689_v28, %v5287_v55  ;;  %v5329_v0 = vadd.f32 %v5328_v19, %v5327_v35  ;;  %v5325_v63 = vadd.f32 %v5324_v27, %v5323_v7  ;;  %v12945_v27 = vld [vmem:[#allocation185_spill] sm:$0xff] }
 0xaff   : > { %v5470_v22 = vand.u32 4294901760, %v5469_v1 }
 0xb00   : > { %v5334_v56 = vrot.slane %v5333_v52, 2  ;;  %v5338_v42 = vrot.slane %v5300_v46, 4  ;;  %v5330_v24 = vrot.slane %v5329_v0, 1  ;;  %v5360_v18 = vsel %vm2188_vm3, %v5325_v63, %v5359_v20 }
 0xb01   : > { %v5292_v5 = vpop.permute.xlu1 %5291  ;;  %v5471_v32 = vsub.f32 %v5469_v1, %v5470_v22 }
 0xb02   : > { %v5335_v49 = vadd.f32 %v5334_v56, %v5333_v52  ;;  %v5339_v29 = vadd.f32 %v5338_v42, %v5300_v46  ;;  %v5301_v15 = vmul.f32 %v11693_v62, %v5292_v5  ;;  %v5331_v17 = vadd.f32 %v5330_v24, %v5329_v0  ;;  %v12921_v56 = vld [vmem:[#allocation172_spill] sm:$0xff]  ;;  %v12923_v42 = vld [vmem:[#allocation173_spill] sm:$0xff]  ;;  %v12925_v0 = vld [vmem:[#allocation174_spill] sm:$0xff] }
 0xb03   : > { %v5472_v7 = vand.u32 4294901760, %v5471_v32  ;;  %v12927_v5 = vld [vmem:[#allocation175_spill] sm:$0xff] }
 0xb04   : > { %v5340_v14 = vrot.slane %v5339_v29, 2  ;;  %v5344_v4 = vrot.slane %v5301_v15, 4  ;;  %v5336_v28 = vrot.slane %v5335_v49, 1  ;;  %v5361_v36 = vsel %vm2190_vm4, %v5331_v17, %v5360_v18 }
 0xb06   : > { %v5341_v59 = vadd.f32 %v5340_v14, %v5339_v29  ;;  %v5345_v31 = vadd.f32 %v5344_v4, %v5301_v15  ;;  %v5337_v38 = vadd.f32 %v5336_v28, %v5335_v49  ;;  %v12929_v49 = vld [vmem:[#allocation177_spill] sm:$0xff]  ;;  %v12930_v29 = vld [vmem:[#allocation123_spill] sm:$0xff]  ;;  %v12931_v15 = vld [vmem:[#allocation124_spill] sm:$0xff] }
 0xb08   : > { %v5342_v30 = vrot.slane %v5341_v59, 1  ;;  %v5346_v50 = vrot.slane %v5345_v31, 2  ;;  %v5362_v33 = vsel %vm2192_vm5, %v5337_v38, %v5361_v36 }
 0xb0a   : > { %v5347_v62 = vadd.f32 %v5346_v50, %v5345_v31  ;;  %v5343_v9 = vadd.f32 %v5342_v30, %v5341_v59 }
 0xb0c   : > { %v5348_v35 = vrot.slane %v5347_v62, 1  ;;  %v5363_v40 = vsel %vm2194_vm6, %v5343_v9, %v5362_v33 }
 0xb0e   : > { %v5349_v58 = vadd.f32 %v5348_v35, %v5347_v62 }
 0xb10   : > { %v5364_v19 = vsel %vm2196_vm7, %v5349_v58, %v5363_v40 }
 0xb11   : > { %v5462_v55 = vand.u32 4294901760, %v5364_v19 }
 0xb13   : > { %5703 = vmatprep.mubr.f32.mxu1 %v5462_v55  ;;  %v5463_v52 = vsub.f32 %v5364_v19, %v5462_v55 }
 0xb14   : > { %5705 = vmatmul.mubr.f32.vlgmr.msra.gmra.mrb[10].mxu1 %v11754_v8 }
 0xb15   : > { %8457 = vmatpush3.bf16.msra.mxu1 %v12740_v2  ;;  %v5464_v46 = vand.u32 4294901760, %v5463_v52 }
 0xb16   : > { %8459 = vmatprep.subr.bf16.mxu1 %v12741_v6 }
 0xb17   : > { %5947 = vmatprep.mubr.f32.mxu1 %v5464_v46  ;;  %v5465_v47 = vsub.f32 %v5463_v52, %v5464_v46 }
 0xb19   : > { %8461 = vmatpush3.bf16.msra.mxu1 %v12742_v44  ;;  %v5466_v34 = vand.u32 4294901760, %v5465_v47 }
 0xb1a   : > { %8463 = vmatprep.subr.bf16.mxu1 %v12743_v60 }
 0xb1b   : > { %5467 = vmatprep.mubr.f32.mxu0 %v5466_v34 }
 0xb1c   : > { %5473 = vmatmul.mubr.f32.vlgmr.msra.gmra.mrb[10].mxu0 %v5472_v7 }
 0xb1d   : > { %8425 = vmatpush3.bf16.msra.mxu0 %v11123_v23  ;;  %8465 = vmatpush3.bf16.msra.mxu1 %v12744_v39  ;;  %v12917_v23 = vld [vmem:[#allocation170_spill] sm:$0xff] }
 0xb1e   : > { %5840 = vmatprep.mubr.f32.mxu0 %v5463_v52  ;;  %8427 = vmatprep.subr.bf16.mxu0 %v11128_v12  ;;  %v12918_v12 = vld [vmem:[#allocation161_spill] sm:$0xff] }
 0xb1f   : > { %8467 = vmatprep.subr.bf16.mxu1 %v12745_v43 }
 0xb21   : > { %8429 = vmatpush3.bf16.msra.mxu0 %v11132_v11  ;;  %8469 = vmatpush3.bf16.msra.mxu1 %v12746_v37  ;;  %v12919_v11 = vld [vmem:[#allocation171_spill] sm:$0xff] }
 0xb22   : > { %8431 = vmatprep.subr.bf16.mxu0 %v11146_v41  ;;  %8471 = vmatprep.subr.bf16.mxu1 %v12747_v13  ;;  %v12920_v41 = vld [vmem:[#allocation163_spill] sm:$0xff] }
 0xb25   : > { %8433 = vmatpush3.bf16.msra.mxu0 %v11151_v53  ;;  %8473 = vmatpush3.bf16.msra.mxu1 %v12748_v45  ;;  %v12922_v53 = vld [vmem:[#allocation165_spill] sm:$0xff] }
 0xb26   : > { %8435 = vmatprep.subr.bf16.mxu0 %v11159_v3  ;;  %8475 = vmatprep.subr.bf16.mxu1 %v12749_v26  ;;  %v12924_v3 = vld [vmem:[#allocation167_spill] sm:$0xff] }
 0xb29   : > { %8437 = vmatpush3.bf16.msra.mxu0 %v11164_v54  ;;  %8477 = vmatpush3.bf16.msra.mxu1 %v11106_v21  ;;  %v12926_v54 = vld [vmem:[#allocation140_spill] sm:$0xff] }
 0xb2a   : > { %8439 = vmatprep.subr.bf16.mxu0 %v12917_v23  ;;  %8479 = vmatprep.subr.bf16.mxu1 %v12918_v12 }
 0xb2d   : > { %8441 = vmatpush3.bf16.msra.mxu0 %v12919_v11  ;;  %8481 = vmatpush3.bf16.msra.mxu1 %v12920_v41 }
 0xb2e   : > { %8443 = vmatprep.subr.bf16.mxu0 %v12921_v56  ;;  %8483 = vmatprep.subr.bf16.mxu1 %v12922_v53 }
 0xb31   : > { %8445 = vmatpush3.bf16.msra.mxu0 %v12923_v42  ;;  %8485 = vmatpush3.bf16.msra.mxu1 %v12924_v3 }
 0xb32   : > { %8447 = vmatprep.subr.bf16.mxu0 %v12925_v0  ;;  %8519 = vmatprep.subr.bf16.mxu1 %v12926_v54 }
 0xb34   : > { %5951 = vmatmul.mubr.f32.vlgmr.msra.gmra.mrb[12].mxu1 %v5470_v22 }
 0xb35   : > { %8449 = vmatpush3.bf16.msra.mxu0 %v12927_v5  ;;  %8521 = vmatpush3.bf16.msra.mxu1 %v12740_v2  ;;  %v12932_v2 = vld [vmem:[#allocation125_spill] sm:$0xff] }
 0xb36   : > { %6221 = vmatprep.mubr.f32.mxu1 %v5462_v55  ;;  %8451 = vmatprep.subr.bf16.mxu0 %v12928_v51 }
 0xb37   : > { %8523 = vmatprep.subr.bf16.mxu1 %v12741_v6  ;;  %v12934_v6 = vld [vmem:[#allocation145_spill] sm:$0xff] }
 0xb39   : > { %8453 = vmatpush3.bf16.msra.mxu0 %v12929_v49  ;;  %8525 = vmatpush3.bf16.msra.mxu1 %v12742_v44  ;;  %v12935_v44 = vld [vmem:[#allocation147_spill] sm:$0xff] }
 0xb3a   : > { %8487 = vmatprep.subr.bf16.mxu0 %v12930_v29  ;;  %8527 = vmatprep.subr.bf16.mxu1 %v12743_v60  ;;  %v12936_v60 = vld [vmem:[#allocation149_spill] sm:$0xff] }
 0xb3c   : > { %5843 = vmatmul.mubr.f32.vlgmr.msra.gmra.mrb[12].mxu0 %v5469_v1 }
 0xb3d   : > { %8489 = vmatpush3.bf16.msra.mxu0 %v12931_v15  ;;  %6117 = vmatprep.mubr.f32.mxu0 %v5462_v55 }
 0xb3e   : > { %8529 = vmatpush3.bf16.msra.mxu1 %v12744_v39  ;;  %8491 = vmatprep.subr.bf16.mxu0 %v12932_v2  ;;  %v12937_v39 = vld [vmem:[#allocation150_spill] sm:$0xff] }
 0xb3f   : > { %8531 = vmatprep.subr.bf16.mxu1 %v12745_v43  ;;  %v12938_v43 = vld [vmem:[#allocation178_spill] sm:$0xff] }
 0xb41   : > { %8493 = vmatpush3.bf16.msra.mxu0 %v12933_v16 }
 0xb42   : > { %8533 = vmatpush3.bf16.msra.mxu1 %v12746_v37  ;;  %8495 = vmatprep.subr.bf16.mxu0 %v12934_v6  ;;  %v12939_v37 = vld [vmem:[#allocation179_spill] sm:$0xff] }
 0xb43   : > { %8535 = vmatprep.subr.bf16.mxu1 %v12747_v13  ;;  %v12940_v13 = vld [vmem:[#allocation180_spill] sm:$0xff] }
 0xb45   : > { %8497 = vmatpush3.bf16.msra.mxu0 %v12935_v44 }
 0xb46   : > { %8537 = vmatpush3.bf16.msra.mxu1 %v12748_v45  ;;  %8499 = vmatprep.subr.bf16.mxu0 %v12936_v60  ;;  %v12941_v45 = vld [vmem:[#allocation181_spill] sm:$0xff] }
 0xb47   : > { %8539 = vmatprep.subr.bf16.mxu1 %v12749_v26  ;;  %v12943_v26 = vld [vmem:[#allocation183_spill] sm:$0xff] }
 0xb49   : > { %8501 = vmatpush3.bf16.msra.mxu0 %v12937_v39 }
 0xb4a   : > { %8541 = vmatpush3.bf16.msra.mxu1 %v11106_v21  ;;  %8503 = vmatprep.subr.bf16.mxu0 %v12938_v43  ;;  %v12942_v21 = vld [vmem:[#allocation182_spill] sm:$0xff] }
 0xb4b   : > { %8543 = vmatprep.subr.bf16.mxu1 %v12918_v12 }
 0xb4d   : > { %8505 = vmatpush3.bf16.msra.mxu0 %v12939_v37 }
 0xb4e   : > { %8545 = vmatpush3.bf16.msra.mxu1 %v12920_v41  ;;  %8507 = vmatprep.subr.bf16.mxu0 %v12940_v13 }
 0xb4f   : > { %8547 = vmatprep.subr.bf16.mxu1 %v12922_v53 }
 0xb51   : > { %8509 = vmatpush3.bf16.msra.mxu0 %v12941_v45 }
 0xb52   : > { %8549 = vmatpush3.bf16.msra.mxu1 %v12924_v3  ;;  %8511 = vmatprep.subr.bf16.mxu0 %v12942_v21 }
 0xb55   : > { %6223 = vmatmul.mubr.f32.vlgmr.msra.gmra.mrb[14].mxu1 %v11754_v8  ;;  %8513 = vmatpush3.bf16.msra.mxu0 %v12943_v26 }
 0xb56   : > { %8515 = vmatprep.subr.bf16.mxu0 %v12944_v61 }
 0xb59   : > { %8517 = vmatpush3.bf16.msra.mxu0 %v12945_v27 }
 0xb5c   : > { %6119 = vmatmul.mubr.f32.vlgmr.msra.gmra.mrb[14].mxu0 %v11754_v8 }
 0xb5d   : > { %8929 = shalt.err (!%p8926_p0)
}
 0xb5e   : > { %s8930_s15 = scalar_lea.hbm %s11835_s18, 256  ;;  %s8934_s26 = scalar_lea.hbm %s11931_s8, 768 }
 0xb5f   : > { %p8931_p5 = scmp.ne.s32.totalorder %s11835_s18, %s8930_s15  ;;  %p8935_p12 = scmp.lt.u32.totalorder %s11835_s18, %s11931_s8 }
 0xb60   : > { %p8936_p2 = scmp.lt.u32.totalorder %s8934_s26, %s8930_s15  ;;  %p8938_p6 = scmp.lt.u32.totalorder %s8930_s15, %s11835_s18 }
 0xb61   : > { %p8932_p11 = pnand %p8931_p5, %p9242_p1 }
 0xb62   : > { %p8937_p4 = por %p8936_p2, %p8935_p12 }
 0xb63   : > { %p8933_p8 = pneg %p8932_p11 }
 0xb64   : > { %p8939_p9 = por %p8938_p6, %p8937_p4 }
 0xb66   : > { %p8940_p3 = pnand %p8939_p9, %p8933_p8 }
 0xb68   : > { %8943 = shalt.err (!%p8940_p3)
}
 0xb69   : > { %s9039_s25 = smov 128   ;;  %s9040_s11 = smov 8   ;;  %v12946_v31 = vld [vmem:[#allocation151_spill] sm:$0xff] }
 0xb6a   : > { %8618 = dma.vmem_to_hbm [thread:$0]  (%p9242_p1), %s11838_s10, 256, %s11835_s18, %s6240_s16, %s9039_s25, %s9039_s25, %s9040_s11  }
 0xb6b   : > { %s6253_s18 = sshll.u32 %s9316_s23, 4  ;;  %s11874_s20 = scalar_lea.hbm %s11930_s7, %s6448_s22  ;;  %s11876_s18 = int_to_ptr.vmem [resolvable:$true] %s6253_s18 }
 0xb6c   : > { %s6235_s15 = scalar_lea.sflag [#allocation5], %s9297_s17  ;;  %s8944_s19 = scalar_lea.vmem %s11876_s18, 256 }
 0xb6d   : > { %p8945_p7 = scmp.ne.s32.totalorder %s11876_s18, %s8944_s19  ;;  %s9041_s14 = smov [#allocation12]  }
 0xb6e   : > { %s8948_s9 = sshll.u32 %s9041_s14, 4  ;;  %s8949_s9 = int_to_ptr.vmem [resolvable:$false] %s8948_s9 }
 0xb6f   : > { %p8946_p10 = pnand %p8945_p7, %p9242_p1  ;;  %s8950_s26 = scalar_lea.vmem %s8949_s9, 512 }
 0xb70   : > { %p8951_p0 = scmp.lt.s32.totalorder %s11876_s18, %s8949_s9  ;;  %p8952_p5 = scmp.lt.s32.totalorder %s8950_s26, %s8944_s19 }
 0xb71   : > { %p8947_p13 = pneg %p8946_p10 }
 0xb72   : > { %p8953_p11 = por %p8952_p5, %p8951_p0 }
 0xb74   : > { %p8954_p8 = pnand %p8953_p11, %p8947_p13 }
 0xbe7   : > { %v6931_v14 = vpop.f32.mrb[10].mxu1 }
 0xbe8   : > { %v6932_v4 = vpop.f32.mrb[11].mxu1 }
 0xbe9   : > { %v6933_v24 = vadd.f32 %v6932_v4, %v6931_v14 }
 0xbef   : > { %v6896_v48 = vpop.f32.mrb[10].mxu0 }
 0xbf0   : > { %v6897_v28 = vpop.f32.mrb[11].mxu0 }
 0xbf1   : > { %v6898_v59 = vadd.f32 %v6897_v28, %v6896_v48 }
 0xbf3   : > { %v5475_v57 = vadd.f32 %v6898_v59, %v12946_v31 }
 0xbf5   : > { %v5707_v10 = vadd.f32 %v6933_v24, %v5475_v57 }
 0xc07   : > { %v7001_v63 = vpop.f32.mrb[12].mxu1 }
 0xc08   : > { %v7002_v30 = vpop.f32.mrb[13].mxu1 }
 0xc09   : > { %v7003_v50 = vadd.f32 %v7002_v30, %v7001_v63 }
 0xc0f   : > { %v6966_v17 = vpop.f32.mrb[12].mxu0 }
 0xc10   : > { %v6967_v25 = vpop.f32.mrb[13].mxu0 }
 0xc11   : > { %v6968_v38 = vadd.f32 %v6967_v25, %v6966_v17 }
 0xc13   : > { %v5845_v62 = vadd.f32 %v6968_v38, %v5707_v10 }
 0xc15   : > { %v5953_v8 = vadd.f32 %v7003_v50, %v5845_v62 }
 0xc28   : > { %v7071_v20 = vpop.f32.mrb[14].mxu1 }
 0xc29   : > { %v7072_v9 = vpop.f32.mrb[15].mxu1 }
 0xc2a   : > { %v7073_v18 = vadd.f32 %v7072_v9, %v7071_v20 }
 0xc2f   : > { %v7036_v35 = vpop.f32.mrb[14].mxu0 }
 0xc30   : > { %v7037_v36 = vpop.f32.mrb[15].mxu0 }
 0xc31   : > { %v7038_v33 = vadd.f32 %v7037_v36, %v7036_v35 }
 0xc33   : > { %v6121_v58 = vadd.f32 %v7038_v33, %v5953_v8 }
 0xc35   : > { %v6225_v1 = vadd.f32 %v7073_v18, %v6121_v58 }
 0xc37   : > { %8762 = vtanh.f32 %v6225_v1 }
 0xc41   : > { %v8763_v40 = vpop.eup %8762 }
 0xc42   : > { %6438 = vst [vmem:[%s9316_s23 + $0x8] sm:$0xff] %v8763_v40 }
 0xc43   : > { %8957 = shalt.err (!%p8954_p8)
}
 0xc44   : > { %s8958_s23 = scalar_lea.hbm %s11874_s20, 256  ;;  %s8962_s13 = scalar_lea.hbm %s11930_s7, 768 }
 0xc45   : > { %p8959_p12 = scmp.ne.s32.totalorder %s11874_s20, %s8958_s23  ;;  %p8963_p6 = scmp.lt.u32.totalorder %s11874_s20, %s11930_s7 }
 0xc46   : > { %p8964_p9 = scmp.lt.u32.totalorder %s8962_s13, %s8958_s23  ;;  %p8966_p7 = scmp.lt.u32.totalorder %s8958_s23, %s11874_s20 }
 0xc47   : > { %p8960_p2 = pnand %p8959_p12, %p9242_p1 }
 0xc48   : > { %p8965_p3 = por %p8964_p9, %p8963_p6 }
 0xc49   : > { %p8961_p4 = pneg %p8960_p2 }
 0xc4a   : > { %p8967_p10 = por %p8966_p7, %p8965_p3 }
 0xc4c   : > { %p8968_p13 = pnand %p8967_p10, %p8961_p4 }
 0xc4e   : > { %8971 = shalt.err (!%p8968_p13)
}
 0xc4f   : > { %8617 = dma.vmem_to_hbm [thread:$0]  (%p9242_p1), %s11876_s18, 256, %s11874_s20, %s6235_s15, %s9039_s25, %s9039_s25, %s9040_s11  }
 0xc50 PF: > { %p8654_p0 = scmp.ge.s32.totalorder %s9022_s30, 2  ;;  %s6284_s19 = sand.u32 1, %s9010_s27  }
 0xc51   : > { %p12947_p5 = scmp.ne.s32.totalorder %s12327_s12, 0  ;;  %s6285_s14 = scalar_lea.sflag [#allocation5], %s6284_s19 }
 0xc53   : > { %p8639_p11 = pnand %p8654_p0, %p12947_p5 }
 0xc55   : > { %9001 = dma.done.wait (!%p8639_p11), %s6285_s14, 256  }
 0xc56   : > { %9003 = vsyncadd (!%p8639_p11), %s6285_s14, 4294967040  ;;  %s6294_s21 = scalar_lea.sflag [#allocation14], %s6284_s19 }
 0xc57   : > { %9005 = dma.done.wait (!%p8639_p11), %s6294_s21, 256  }
 0xc58   : > { %9007 = vsyncadd (!%p8639_p11), %s6294_s21, 4294967040  ;;  %p27_p1 = scmp.ge.s32.totalorder %s9232_s3, 5   ;;  %s12948_s27 = smov %s9014_s28 }
 0xc59   : > { %s12949_s28 = smov %s9018_s29  ;;  %s12950_s29 = smov %s9248_s24 }
 0xc5a   : > { %s12951_s30 = smov %s9232_s3  ;;  %29 = sbr.rel (!%p27_p1) target bundleno = 12 (0xc), region = 133 }
 0xc61   :  { %6299 = vsyncpa [#allocation4], 1 }
 0xc62   :  { %6301 = vsyncpa [#allocation4 + $0x1], 1 }
 0xc63   :  { %6302 = vsyncpa [#allocation7], 1 }
 0xc64   :  { %6303 = vsyncpa [#allocation10], 1 }
 0xc65   :  { %6304 = vsyncpa [#allocation5], 1 }
 0xc66   :  { %6306 = vsyncpa [#allocation5 + $0x1], 1 }
 0xc67   :  { %6307 = vsyncpa [#allocation14], 1 }
 0xc68   :  { %6309 = vsyncpa [#allocation14 + $0x1], 1 }

</bundles_post_ra>
